<compile_context>
chip_gen: v6e
topology: v6e:2x2x1
jax: 0.10.0
libtpu: 0.0.40
codegen_flags: <defaults>
</compile_context>

<pallas_src>
import functools

import jax
import jax.numpy as jnp
from jax import lax
from jax.experimental import pallas as pl
from jax.experimental.pallas import tpu as pltpu


# ----------------------------------------------------------------------------
# Pallas kernels
# ----------------------------------------------------------------------------
def _conv_fused_kernel(w_ref, p_ref, b_ref, o_ref, *, mode, eps):
    # w_ref: (Cout, K) bf16; p_ref: (K, N) bf16 (N = OH*OW of one batch);
    # b_ref: (Cout, 1) f32.  Each output row is exactly one (b, c) instance.
    acc = jnp.dot(w_ref[...], p_ref[...], preferred_element_type=jnp.float32)
    acc = acc + b_ref[...]
    if mode == "in_relu":
        # InstanceNorm2d(affine=False): biased variance, eps inside rsqrt.
        mean = jnp.mean(acc, axis=-1, keepdims=True)
        xc = acc - mean
        var = jnp.mean(xc * xc, axis=-1, keepdims=True)
        acc = jnp.maximum(xc * lax.rsqrt(var + eps), 0.0)
    elif mode == "tanh":
        acc = jnp.tanh(acc)
    o_ref[...] = acc.astype(o_ref.dtype)


def conv_matmul_fused(w_mat, patches, bias, mode="in_relu", eps=1e-5):
    """out[b] = epilogue(w_mat @ patches[b] + bias).

    w_mat: (Cout, K); patches: (B, K, N); bias: (Cout,).
    Output is (B, Cout, N) with the spatial dim on the lane axis
    (lane-dense stores, NCHW-native).  Grid is parallel over batch so the
    two TensorCores on v7x both get work.
    """
    B, K, N = patches.shape
    Cout, K2 = w_mat.shape
    assert K == K2
    return pl.pallas_call(
        functools.partial(_conv_fused_kernel, mode=mode, eps=eps),
        out_shape=jax.ShapeDtypeStruct((B, Cout, N), jnp.float32),
        grid=(B,),
        in_specs=[
            pl.BlockSpec((Cout, K), lambda b: (0, 0)),
            pl.BlockSpec((None, K, N), lambda b: (b, 0, 0)),
            pl.BlockSpec((Cout, 1), lambda b: (0, 0)),
        ],
        out_specs=pl.BlockSpec((None, Cout, N), lambda b: (b, 0, 0)),
        compiler_params=pltpu.CompilerParams(dimension_semantics=("parallel",)),
    )(
        w_mat.astype(jnp.bfloat16),
        patches.astype(jnp.bfloat16),
        bias.reshape(Cout, 1).astype(jnp.float32),
    )


def _style_kernel(x_ref, w1_ref, b1_ref, w2_ref, b2_ref, o_ref):
    # relu(relu(x @ w1 + b1) @ w2 + b2) fused in a single kernel.
    h = jnp.dot(x_ref[...], w1_ref[...], preferred_element_type=jnp.float32)
    h = jnp.maximum(h + b1_ref[...], 0.0)
    y = jnp.dot(h.astype(w2_ref.dtype), w2_ref[...],
                preferred_element_type=jnp.float32)
    o_ref[...] = jnp.maximum(y + b2_ref[...], 0.0)


def style_modulation(flat, w1, b1, w2, b2):
    """Both style Linears (+ReLU) in one pallas_call.  flat: (B, E)."""
    B, E = flat.shape
    S = w1.shape[1]
    E2 = w2.shape[1]
    return pl.pallas_call(
        _style_kernel,
        out_shape=jax.ShapeDtypeStruct((B, E2), jnp.float32),
        grid=(1,),
        in_specs=[
            pl.BlockSpec((B, E), lambda i: (0, 0)),
            pl.BlockSpec((E, S), lambda i: (0, 0)),
            pl.BlockSpec((1, S), lambda i: (0, 0)),
            pl.BlockSpec((S, E2), lambda i: (0, 0)),
            pl.BlockSpec((1, E2), lambda i: (0, 0)),
        ],
        out_specs=pl.BlockSpec((B, E2), lambda i: (0, 0)),
    )(
        flat.astype(jnp.bfloat16),
        w1.astype(jnp.bfloat16),
        b1.reshape(1, S).astype(jnp.float32),
        w2.astype(jnp.bfloat16),
        b2.reshape(1, E2).astype(jnp.float32),
    )


# ----------------------------------------------------------------------------
# Plain-JAX glue: im2col oriented (B, K, OH*OW) + conv / conv_transpose wrappers
# ----------------------------------------------------------------------------
# TODO(synk): the im2col patch gather stays as plain-JAX glue; the stride-2
# lane-axis gather has no clean in-kernel BlockSpec expression, so only the
# matmul + bias + norm/activation is in Pallas.
def _im2col(x_pad, KH, KW, stride, OH, OW):
    # x_pad: (B, C, Hp, Wp) -> (B, C*KH*KW, OH*OW), flattened (C, KH, KW)-major.
    B, C, _, _ = x_pad.shape
    cols = []
    for dh in range(KH):
        for dw in range(KW):
            cols.append(
                x_pad[:, :, dh:dh + stride * (OH - 1) + 1:stride,
                      dw:dw + stride * (OW - 1) + 1:stride]
            )
    patches = jnp.stack(cols, axis=2)            # (B, C, KH*KW, OH, OW)
    return patches.reshape(B, C * KH * KW, OH * OW)


def conv2d_fused(x, W, b, stride, pad, mode):
    # x: (B, Cin, H, W) NCHW;  W: (Cout, Cin, KH, KW) (PyTorch layout)
    B, Cin, H, Wsp = x.shape
    Cout, _, KH, KW = W.shape
    OH = (H + 2 * pad - KH) // stride + 1
    OW = (Wsp + 2 * pad - KW) // stride + 1
    xp = jnp.pad(x, ((0, 0), (0, 0), (pad, pad), (pad, pad)))
    patches = _im2col(xp, KH, KW, stride, OH, OW)          # (B, K, OH*OW)
    w_mat = W.reshape(Cout, Cin * KH * KW)                  # (Cout, K)
    y = conv_matmul_fused(w_mat, patches, b, mode=mode)     # (B, Cout, OH*OW)
    return y.reshape(B, Cout, OH, OW)                       # free NCHW reshape


def conv_transpose2d_fused(x, W, b, stride, pad, mode):
    # x: (B, Cin, H, W);  W: (Cin, Cout, KH, KW) (PyTorch ConvTranspose layout).
    # Zero-insert (dilate) input, pad by K-1-pad, stride-1 conv with the
    # spatially-flipped, (Cin,Cout)-transposed kernel.
    # TODO(synk): sub-pixel (phase) decomposition would skip the structurally
    # zero MXU work but complicates the fused instance-norm epilogue.
    B, Cin, H, Wsp = x.shape
    _, Cout, KH, KW = W.shape
    Hd, Wd = stride * (H - 1) + 1, stride * (Wsp - 1) + 1
    z = jnp.zeros((B, Cin, Hd, Wd), x.dtype).at[:, :, ::stride, ::stride].set(x)
    p = KH - 1 - pad
    zp = jnp.pad(z, ((0, 0), (0, 0), (p, p), (p, p)))
    OH, OW = stride * H, stride * Wsp
    patches = _im2col(zp, KH, KW, 1, OH, OW)                # (B, Cin*KH*KW, OH*OW)
    W_conv = jnp.transpose(W[:, :, ::-1, ::-1], (1, 0, 2, 3))  # (Cout,Cin,KH,KW)
    w_mat = W_conv.reshape(Cout, Cin * KH * KW)
    y = conv_matmul_fused(w_mat, patches, b, mode=mode)
    return y.reshape(B, Cout, OH, OW)


# ----------------------------------------------------------------------------
# StyledGenerator forward
# ----------------------------------------------------------------------------
def init_params(key, input_dim=3, hidden_dim=8, style_dim=32):
    ks = jax.random.split(key, 16)
    s = 0.05
    p = {}
    # encoder convs: Conv2d(Cin, Cout, 3, 2, 1)
    p["e1_w"] = s * jax.random.normal(ks[0], (hidden_dim, input_dim, 3, 3), jnp.float32)
    p["e1_b"] = jnp.zeros((hidden_dim,), jnp.float32)
    p["e2_w"] = s * jax.random.normal(ks[1], (hidden_dim * 2, hidden_dim, 3, 3), jnp.float32)
    p["e2_b"] = jnp.zeros((hidden_dim * 2,), jnp.float32)
    p["e3_w"] = s * jax.random.normal(ks[2], (hidden_dim * 4, hidden_dim * 2, 3, 3), jnp.float32)
    p["e3_b"] = jnp.zeros((hidden_dim * 4,), jnp.float32)
    # style modulation: Linear(encoded, style), Linear(style, encoded)
    enc = hidden_dim * 4 * 8 * 8
    p["fc1_w"] = s * jax.random.normal(ks[3], (style_dim, enc), jnp.float32)
    p["fc1_b"] = jnp.zeros((style_dim,), jnp.float32)
    p["fc2_w"] = s * jax.random.normal(ks[4], (enc, style_dim), jnp.float32)
    p["fc2_b"] = jnp.zeros((enc,), jnp.float32)
    # decoder: ConvTranspose2d(Cin, Cout, 4, 2, 1) -> weight (Cin, Cout, 4, 4)
    p["d1_w"] = s * jax.random.normal(ks[5], (hidden_dim * 4, hidden_dim * 2, 4, 4), jnp.float32)
    p["d1_b"] = jnp.zeros((hidden_dim * 2,), jnp.float32)
    p["d2_w"] = s * jax.random.normal(ks[6], (hidden_dim * 2, hidden_dim, 4, 4), jnp.float32)
    p["d2_b"] = jnp.zeros((hidden_dim,), jnp.float32)
    p["d3_w"] = s * jax.random.normal(ks[7], (hidden_dim, input_dim, 4, 4), jnp.float32)
    p["d3_b"] = jnp.zeros((input_dim,), jnp.float32)
    return p


def styled_generator_forward(params, x, hidden_dim=8):
    B = x.shape[0]
    # --- encoder: (Conv -> InstanceNorm -> ReLU) x 3, stride-2 downsampling,
    #     instance-norm/ReLU fused into each conv kernel's epilogue.
    h = conv2d_fused(x, params["e1_w"], params["e1_b"], 2, 1, "in_relu")
    h = conv2d_fused(h, params["e2_w"], params["e2_b"], 2, 1, "in_relu")
    h = conv2d_fused(h, params["e3_w"], params["e3_b"], 2, 1, "in_relu")
    # h: (B, 4*hidden, 8, 8)

    # --- style modulation: Linear -> ReLU -> Linear -> ReLU (single kernel)
    flat = h.reshape(B, -1)                                 # (B, 4*hidden*8*8)
    s2 = style_modulation(flat, params["fc1_w"].T, params["fc1_b"],
                          params["fc2_w"].T, params["fc2_b"])
    styled = s2.reshape(B, hidden_dim * 4, 8, 8)

    # --- decoder: (ConvT -> InstanceNorm -> ReLU) x 2, then ConvT -> Tanh,
    #     all epilogues fused into the matmul kernels.
    d = conv_transpose2d_fused(styled, params["d1_w"], params["d1_b"], 2, 1, "in_relu")
    d = conv_transpose2d_fused(d, params["d2_w"], params["d2_b"], 2, 1, "in_relu")
    out = conv_transpose2d_fused(d, params["d3_w"], params["d3_b"], 2, 1, "tanh")
    return out                                              # (B, input_dim, 64, 64)


if __name__ == "__main__":
    INPUT_DIM, HIDDEN_DIM, STYLE_DIM, BATCH = 3, 8, 32, 2
    key = jax.random.PRNGKey(0)
    k_param, k_x = jax.random.split(key)
    params = init_params(k_param, INPUT_DIM, HIDDEN_DIM, STYLE_DIM)
    # 64x64 input is required by the module's hard-coded 8x8 bottleneck view.
    x = jax.random.normal(k_x, (BATCH, INPUT_DIM, 64, 64), jnp.float32)

    fwd = jax.jit(functools.partial(styled_generator_forward, hidden_dim=HIDDEN_DIM))
    out = fwd(params, x)
    jax.block_until_ready(out)

    assert out.shape == (BATCH, INPUT_DIM, 64, 64), out.shape
    assert bool(jnp.all(jnp.isfinite(out)))
    assert bool(jnp.all(jnp.abs(out) <= 1.0 + 1e-6))  # tanh range
    print("KERNEL_OK")
</pallas_src>

<mosaic_0001>
module attributes {stable_mosaic.version = 11 : i64} {
  func.func @_conv_fused_kernel(%arg0: i32, %arg1: memref<8x27xbf16, #tpu.memory_space<vmem>>, %arg2: memref<1x27x1024xbf16, #tpu.memory_space<vmem>>, %arg3: memref<8x1xf32, #tpu.memory_space<vmem>>, %arg4: memref<1x8x1024xf32, #tpu.memory_space<vmem>>) attributes {dimension_semantics = [#tpu.dimension_semantics<parallel>], iteration_bounds = array<i64: 2>, scalar_prefetch = 0 : i64, scratch_operands = 0 : i64, tpu.core_type = #tpu.core_type<tc>, window_params = [{pipeline_mode = #tpu.pipeline_mode<synchronous>, transform_indices = @transform_0, window_bounds = array<i64: 8, 27>}, {transform_indices = @transform_1, window_bounds = array<i64: 1, 27, 1024>}, {pipeline_mode = #tpu.pipeline_mode<synchronous>, transform_indices = @transform_2, window_bounds = array<i64: 8, 1>}, {transform_indices = @transform_3, window_bounds = array<i64: 1, 8, 1024>}]} {
    %c0 = arith.constant 0 : index
    %c0_0 = arith.constant 0 : index
    %0 = vector.load %arg1[%c0, %c0_0] : memref<8x27xbf16, #tpu.memory_space<vmem>>, vector<8x27xbf16>
    %c0_1 = arith.constant 0 : index
    %c0_2 = arith.constant 0 : index
    %c0_3 = arith.constant 0 : index
    %1 = vector.load %arg2[%c0_1, %c0_2, %c0_3] : memref<1x27x1024xbf16, #tpu.memory_space<vmem>>, vector<1x27x1024xbf16>
    %2 = vector.shape_cast %1 : vector<1x27x1024xbf16> to vector<27x1024xbf16>
    %cst = arith.constant dense<0.000000e+00> : vector<8x1024xf32>
    %3 = tpu.matmul %0, %2, %cst {dimension_numbers = #tpu.dot_dimension_numbers<[1], [0], [0], [1], [0, 0, 1, 1], [], []>} : vector<8x27xbf16>, vector<27x1024xbf16>, vector<8x1024xf32> -> vector<8x1024xf32>
    %c0_4 = arith.constant 0 : index
    %c0_5 = arith.constant 0 : index
    %4 = vector.load %arg3[%c0_4, %c0_5] : memref<8x1xf32, #tpu.memory_space<vmem>>, vector<8x1xf32>
    %5 = vector.broadcast %4 : vector<8x1xf32> to vector<8x1024xf32>
    %6 = arith.addf %3, %5 : vector<8x1024xf32>
    %cst_6 = arith.constant dense<0.000000e+00> : vector<8xf32>
    %7 = vector.multi_reduction <add>, %6, %cst_6 [1] : vector<8x1024xf32> to vector<8xf32>
    %8 = vector.shape_cast %7 : vector<8xf32> to vector<8x1xf32>
    %cst_7 = arith.constant 1.024000e+03 : f32
    %9 = vector.broadcast %cst_7 : f32 to vector<8x1xf32>
    %10 = arith.divf %8, %9 : vector<8x1xf32>
    %11 = vector.broadcast %10 : vector<8x1xf32> to vector<8x1024xf32>
    %12 = arith.subf %6, %11 : vector<8x1024xf32>
    %13 = arith.mulf %12, %12 : vector<8x1024xf32>
    %cst_8 = arith.constant dense<0.000000e+00> : vector<8xf32>
    %14 = vector.multi_reduction <add>, %13, %cst_8 [1] : vector<8x1024xf32> to vector<8xf32>
    %15 = vector.shape_cast %14 : vector<8xf32> to vector<8x1xf32>
    %cst_9 = arith.constant 1.024000e+03 : f32
    %16 = vector.broadcast %cst_9 : f32 to vector<8x1xf32>
    %17 = arith.divf %15, %16 : vector<8x1xf32>
    %cst_10 = arith.constant 9.99999974E-6 : f32
    %18 = vector.broadcast %cst_10 : f32 to vector<8x1xf32>
    %19 = arith.addf %17, %18 : vector<8x1xf32>
    %20 = math.rsqrt %19 : vector<8x1xf32>
    %21 = vector.broadcast %20 : vector<8x1xf32> to vector<8x1024xf32>
    %22 = arith.mulf %12, %21 : vector<8x1024xf32>
    %cst_11 = arith.constant 0.000000e+00 : f32
    %23 = vector.broadcast %cst_11 : f32 to vector<8x1024xf32>
    %24 = arith.maximumf %22, %23 : vector<8x1024xf32>
    %c0_12 = arith.constant 0 : index
    %c0_13 = arith.constant 0 : index
    %c0_14 = arith.constant 0 : index
    %25 = vector.load %arg4[%c0_12, %c0_13, %c0_14] : memref<1x8x1024xf32, #tpu.memory_space<vmem>>, vector<1x8x1024xf32>
    %26 = vector.shape_cast %25 : vector<1x8x1024xf32> to vector<8x1024xf32>
    %27 = vector.shape_cast %24 : vector<8x1024xf32> to vector<1x8x1024xf32>
    tpu.vector_store %arg4[%c0_12, %c0_13, %c0_14], %27 {strides = array<i32>} : memref<1x8x1024xf32, #tpu.memory_space<vmem>>, vector<1x8x1024xf32>,
    return
  }
  func.func @transform_0(%arg0: i32) -> (i32, i32) {
    %c0_i32 = arith.constant 0 : i32
    %c0_i32_0 = arith.constant 0 : i32
    %c0_i32_1 = arith.constant 0 : i32
    return %c0_i32, %c0_i32_0 : i32, i32
  }
  func.func @transform_1(%arg0: i32) -> (i32, i32, i32) {
    %c0_i32 = arith.constant 0 : i32
    %c0_i32_0 = arith.constant 0 : i32
    %c0_i32_1 = arith.constant 0 : i32
    return %arg0, %c0_i32, %c0_i32_0 : i32, i32, i32
  }
  func.func @transform_2(%arg0: i32) -> (i32, i32) {
    %c0_i32 = arith.constant 0 : i32
    %c0_i32_0 = arith.constant 0 : i32
    %c0_i32_1 = arith.constant 0 : i32
    return %c0_i32, %c0_i32_0 : i32, i32
  }
  func.func @transform_3(%arg0: i32) -> (i32, i32, i32) {
    %c0_i32 = arith.constant 0 : i32
    %c0_i32_0 = arith.constant 0 : i32
    %c0_i32_1 = arith.constant 0 : i32
    return %arg0, %c0_i32, %c0_i32_0 : i32, i32, i32
  }
}

module attributes {stable_mosaic.version = 11 : i64} {
  func.func @_conv_fused_kernel(%arg0: i32, %arg1: memref<16x72xbf16, #tpu.memory_space<vmem>>, %arg2: memref<1x72x256xbf16, #tpu.memory_space<vmem>>, %arg3: memref<16x1xf32, #tpu.memory_space<vmem>>, %arg4: memref<1x16x256xf32, #tpu.memory_space<vmem>>) attributes {dimension_semantics = [#tpu.dimension_semantics<parallel>], iteration_bounds = array<i64: 2>, scalar_prefetch = 0 : i64, scratch_operands = 0 : i64, tpu.core_type = #tpu.core_type<tc>, window_params = [{pipeline_mode = #tpu.pipeline_mode<synchronous>, transform_indices = @transform_0, window_bounds = array<i64: 16, 72>}, {transform_indices = @transform_1, window_bounds = array<i64: 1, 72, 256>}, {pipeline_mode = #tpu.pipeline_mode<synchronous>, transform_indices = @transform_2, window_bounds = array<i64: 16, 1>}, {transform_indices = @transform_3, window_bounds = array<i64: 1, 16, 256>}]} {
    %c0 = arith.constant 0 : index
    %c0_0 = arith.constant 0 : index
    %0 = vector.load %arg1[%c0, %c0_0] : memref<16x72xbf16, #tpu.memory_space<vmem>>, vector<16x72xbf16>
    %c0_1 = arith.constant 0 : index
    %c0_2 = arith.constant 0 : index
    %c0_3 = arith.constant 0 : index
    %1 = vector.load %arg2[%c0_1, %c0_2, %c0_3] : memref<1x72x256xbf16, #tpu.memory_space<vmem>>, vector<1x72x256xbf16>
    %2 = vector.shape_cast %1 : vector<1x72x256xbf16> to vector<72x256xbf16>
    %cst = arith.constant dense<0.000000e+00> : vector<16x256xf32>
    %3 = tpu.matmul %0, %2, %cst {dimension_numbers = #tpu.dot_dimension_numbers<[1], [0], [0], [1], [0, 0, 1, 1], [], []>} : vector<16x72xbf16>, vector<72x256xbf16>, vector<16x256xf32> -> vector<16x256xf32>
    %c0_4 = arith.constant 0 : index
    %c0_5 = arith.constant 0 : index
    %4 = vector.load %arg3[%c0_4, %c0_5] : memref<16x1xf32, #tpu.memory_space<vmem>>, vector<16x1xf32>
    %5 = vector.broadcast %4 : vector<16x1xf32> to vector<16x256xf32>
    %6 = arith.addf %3, %5 : vector<16x256xf32>
    %cst_6 = arith.constant dense<0.000000e+00> : vector<16xf32>
    %7 = vector.multi_reduction <add>, %6, %cst_6 [1] : vector<16x256xf32> to vector<16xf32>
    %8 = vector.shape_cast %7 : vector<16xf32> to vector<16x1xf32>
    %cst_7 = arith.constant 2.560000e+02 : f32
    %9 = vector.broadcast %cst_7 : f32 to vector<16x1xf32>
    %10 = arith.divf %8, %9 : vector<16x1xf32>
    %11 = vector.broadcast %10 : vector<16x1xf32> to vector<16x256xf32>
    %12 = arith.subf %6, %11 : vector<16x256xf32>
    %13 = arith.mulf %12, %12 : vector<16x256xf32>
    %cst_8 = arith.constant dense<0.000000e+00> : vector<16xf32>
    %14 = vector.multi_reduction <add>, %13, %cst_8 [1] : vector<16x256xf32> to vector<16xf32>
    %15 = vector.shape_cast %14 : vector<16xf32> to vector<16x1xf32>
    %cst_9 = arith.constant 2.560000e+02 : f32
    %16 = vector.broadcast %cst_9 : f32 to vector<16x1xf32>
    %17 = arith.divf %15, %16 : vector<16x1xf32>
    %cst_10 = arith.constant 9.99999974E-6 : f32
    %18 = vector.broadcast %cst_10 : f32 to vector<16x1xf32>
    %19 = arith.addf %17, %18 : vector<16x1xf32>
    %20 = math.rsqrt %19 : vector<16x1xf32>
    %21 = vector.broadcast %20 : vector<16x1xf32> to vector<16x256xf32>
    %22 = arith.mulf %12, %21 : vector<16x256xf32>
    %cst_11 = arith.constant 0.000000e+00 : f32
    %23 = vector.broadcast %cst_11 : f32 to vector<16x256xf32>
    %24 = arith.maximumf %22, %23 : vector<16x256xf32>
    %c0_12 = arith.constant 0 : index
    %c0_13 = arith.constant 0 : index
    %c0_14 = arith.constant 0 : index
    %25 = vector.load %arg4[%c0_12, %c0_13, %c0_14] : memref<1x16x256xf32, #tpu.memory_space<vmem>>, vector<1x16x256xf32>
    %26 = vector.shape_cast %25 : vector<1x16x256xf32> to vector<16x256xf32>
    %27 = vector.shape_cast %24 : vector<16x256xf32> to vector<1x16x256xf32>
    tpu.vector_store %arg4[%c0_12, %c0_13, %c0_14], %27 {strides = array<i32>} : memref<1x16x256xf32, #tpu.memory_space<vmem>>, vector<1x16x256xf32>,
    return
  }
  func.func @transform_0(%arg0: i32) -> (i32, i32) {
    %c0_i32 = arith.constant 0 : i32
    %c0_i32_0 = arith.constant 0 : i32
    %c0_i32_1 = arith.constant 0 : i32
    return %c0_i32, %c0_i32_0 : i32, i32
  }
  func.func @transform_1(%arg0: i32) -> (i32, i32, i32) {
    %c0_i32 = arith.constant 0 : i32
    %c0_i32_0 = arith.constant 0 : i32
    %c0_i32_1 = arith.constant 0 : i32
    return %arg0, %c0_i32, %c0_i32_0 : i32, i32, i32
  }
  func.func @transform_2(%arg0: i32) -> (i32, i32) {
    %c0_i32 = arith.constant 0 : i32
    %c0_i32_0 = arith.constant 0 : i32
    %c0_i32_1 = arith.constant 0 : i32
    return %c0_i32, %c0_i32_0 : i32, i32
  }
  func.func @transform_3(%arg0: i32) -> (i32, i32, i32) {
    %c0_i32 = arith.constant 0 : i32
    %c0_i32_0 = arith.constant 0 : i32
    %c0_i32_1 = arith.constant 0 : i32
    return %arg0, %c0_i32, %c0_i32_0 : i32, i32, i32
  }
}

module attributes {stable_mosaic.version = 11 : i64} {
  func.func @_conv_fused_kernel(%arg0: i32, %arg1: memref<32x144xbf16, #tpu.memory_space<vmem>>, %arg2: memref<1x144x64xbf16, #tpu.memory_space<vmem>>, %arg3: memref<32x1xf32, #tpu.memory_space<vmem>>, %arg4: memref<1x32x64xf32, #tpu.memory_space<vmem>>) attributes {dimension_semantics = [#tpu.dimension_semantics<parallel>], iteration_bounds = array<i64: 2>, scalar_prefetch = 0 : i64, scratch_operands = 0 : i64, tpu.core_type = #tpu.core_type<tc>, window_params = [{pipeline_mode = #tpu.pipeline_mode<synchronous>, transform_indices = @transform_0, window_bounds = array<i64: 32, 144>}, {transform_indices = @transform_1, window_bounds = array<i64: 1, 144, 64>}, {pipeline_mode = #tpu.pipeline_mode<synchronous>, transform_indices = @transform_2, window_bounds = array<i64: 32, 1>}, {transform_indices = @transform_3, window_bounds = array<i64: 1, 32, 64>}]} {
    %c0 = arith.constant 0 : index
    %c0_0 = arith.constant 0 : index
    %0 = vector.load %arg1[%c0, %c0_0] : memref<32x144xbf16, #tpu.memory_space<vmem>>, vector<32x144xbf16>
    %c0_1 = arith.constant 0 : index
    %c0_2 = arith.constant 0 : index
    %c0_3 = arith.constant 0 : index
    %1 = vector.load %arg2[%c0_1, %c0_2, %c0_3] : memref<1x144x64xbf16, #tpu.memory_space<vmem>>, vector<1x144x64xbf16>
    %2 = vector.shape_cast %1 : vector<1x144x64xbf16> to vector<144x64xbf16>
    %cst = arith.constant dense<0.000000e+00> : vector<32x64xf32>
    %3 = tpu.matmul %0, %2, %cst {dimension_numbers = #tpu.dot_dimension_numbers<[1], [0], [0], [1], [0, 0, 1, 1], [], []>} : vector<32x144xbf16>, vector<144x64xbf16>, vector<32x64xf32> -> vector<32x64xf32>
    %c0_4 = arith.constant 0 : index
    %c0_5 = arith.constant 0 : index
    %4 = vector.load %arg3[%c0_4, %c0_5] : memref<32x1xf32, #tpu.memory_space<vmem>>, vector<32x1xf32>
    %5 = vector.broadcast %4 : vector<32x1xf32> to vector<32x64xf32>
    %6 = arith.addf %3, %5 : vector<32x64xf32>
    %cst_6 = arith.constant dense<0.000000e+00> : vector<32xf32>
    %7 = vector.multi_reduction <add>, %6, %cst_6 [1] : vector<32x64xf32> to vector<32xf32>
    %8 = vector.shape_cast %7 : vector<32xf32> to vector<32x1xf32>
    %cst_7 = arith.constant 6.400000e+01 : f32
    %9 = vector.broadcast %cst_7 : f32 to vector<32x1xf32>
    %10 = arith.divf %8, %9 : vector<32x1xf32>
    %11 = vector.broadcast %10 : vector<32x1xf32> to vector<32x64xf32>
    %12 = arith.subf %6, %11 : vector<32x64xf32>
    %13 = arith.mulf %12, %12 : vector<32x64xf32>
    %cst_8 = arith.constant dense<0.000000e+00> : vector<32xf32>
    %14 = vector.multi_reduction <add>, %13, %cst_8 [1] : vector<32x64xf32> to vector<32xf32>
    %15 = vector.shape_cast %14 : vector<32xf32> to vector<32x1xf32>
    %cst_9 = arith.constant 6.400000e+01 : f32
    %16 = vector.broadcast %cst_9 : f32 to vector<32x1xf32>
    %17 = arith.divf %15, %16 : vector<32x1xf32>
    %cst_10 = arith.constant 9.99999974E-6 : f32
    %18 = vector.broadcast %cst_10 : f32 to vector<32x1xf32>
    %19 = arith.addf %17, %18 : vector<32x1xf32>
    %20 = math.rsqrt %19 : vector<32x1xf32>
    %21 = vector.broadcast %20 : vector<32x1xf32> to vector<32x64xf32>
    %22 = arith.mulf %12, %21 : vector<32x64xf32>
    %cst_11 = arith.constant 0.000000e+00 : f32
    %23 = vector.broadcast %cst_11 : f32 to vector<32x64xf32>
    %24 = arith.maximumf %22, %23 : vector<32x64xf32>
    %c0_12 = arith.constant 0 : index
    %c0_13 = arith.constant 0 : index
    %c0_14 = arith.constant 0 : index
    %25 = vector.load %arg4[%c0_12, %c0_13, %c0_14] : memref<1x32x64xf32, #tpu.memory_space<vmem>>, vector<1x32x64xf32>
    %26 = vector.shape_cast %25 : vector<1x32x64xf32> to vector<32x64xf32>
    %27 = vector.shape_cast %24 : vector<32x64xf32> to vector<1x32x64xf32>
    tpu.vector_store %arg4[%c0_12, %c0_13, %c0_14], %27 {strides = array<i32>} : memref<1x32x64xf32, #tpu.memory_space<vmem>>, vector<1x32x64xf32>,
    return
  }
  func.func @transform_0(%arg0: i32) -> (i32, i32) {
    %c0_i32 = arith.constant 0 : i32
    %c0_i32_0 = arith.constant 0 : i32
    %c0_i32_1 = arith.constant 0 : i32
    return %c0_i32, %c0_i32_0 : i32, i32
  }
  func.func @transform_1(%arg0: i32) -> (i32, i32, i32) {
    %c0_i32 = arith.constant 0 : i32
    %c0_i32_0 = arith.constant 0 : i32
    %c0_i32_1 = arith.constant 0 : i32
    return %arg0, %c0_i32, %c0_i32_0 : i32, i32, i32
  }
  func.func @transform_2(%arg0: i32) -> (i32, i32) {
    %c0_i32 = arith.constant 0 : i32
    %c0_i32_0 = arith.constant 0 : i32
    %c0_i32_1 = arith.constant 0 : i32
    return %c0_i32, %c0_i32_0 : i32, i32
  }
  func.func @transform_3(%arg0: i32) -> (i32, i32, i32) {
    %c0_i32 = arith.constant 0 : i32
    %c0_i32_0 = arith.constant 0 : i32
    %c0_i32_1 = arith.constant 0 : i32
    return %arg0, %c0_i32, %c0_i32_0 : i32, i32, i32
  }
}

module attributes {stable_mosaic.version = 11 : i64} {
  func.func @_style_kernel(%arg0: i32, %arg1: memref<2x2048xbf16, #tpu.memory_space<vmem>>, %arg2: memref<2048x32xbf16, #tpu.memory_space<vmem>>, %arg3: memref<1x32xf32, #tpu.memory_space<vmem>>, %arg4: memref<32x2048xbf16, #tpu.memory_space<vmem>>, %arg5: memref<1x2048xf32, #tpu.memory_space<vmem>>, %arg6: memref<2x2048xf32, #tpu.memory_space<vmem>>) attributes {dimension_semantics = [#tpu.dimension_semantics<arbitrary>], iteration_bounds = array<i64: 1>, scalar_prefetch = 0 : i64, scratch_operands = 0 : i64, tpu.core_type = #tpu.core_type<tc>, window_params = [{pipeline_mode = #tpu.pipeline_mode<synchronous>, transform_indices = @transform_0, window_bounds = array<i64: 2, 2048>}, {pipeline_mode = #tpu.pipeline_mode<synchronous>, transform_indices = @transform_1, window_bounds = array<i64: 2048, 32>}, {pipeline_mode = #tpu.pipeline_mode<synchronous>, transform_indices = @transform_2, window_bounds = array<i64: 1, 32>}, {pipeline_mode = #tpu.pipeline_mode<synchronous>, transform_indices = @transform_3, window_bounds = array<i64: 32, 2048>}, {pipeline_mode = #tpu.pipeline_mode<synchronous>, transform_indices = @transform_4, window_bounds = array<i64: 1, 2048>}, {pipeline_mode = #tpu.pipeline_mode<synchronous>, transform_indices = @transform_5, window_bounds = array<i64: 2, 2048>}]} {
    %c0 = arith.constant 0 : index
    %c0_0 = arith.constant 0 : index
    %0 = vector.load %arg1[%c0, %c0_0] : memref<2x2048xbf16, #tpu.memory_space<vmem>>, vector<2x2048xbf16>
    %c0_1 = arith.constant 0 : index
    %c0_2 = arith.constant 0 : index
    %1 = vector.load %arg2[%c0_1, %c0_2] : memref<2048x32xbf16, #tpu.memory_space<vmem>>, vector<2048x32xbf16>
    %cst = arith.constant dense<0.000000e+00> : vector<2x32xf32>
    %2 = tpu.matmul %0, %1, %cst {dimension_numbers = #tpu.dot_dimension_numbers<[1], [0], [0], [1], [0, 0, 1, 1], [], []>} : vector<2x2048xbf16>, vector<2048x32xbf16>, vector<2x32xf32> -> vector<2x32xf32>
    %c0_3 = arith.constant 0 : index
    %c0_4 = arith.constant 0 : index
    %3 = vector.load %arg3[%c0_3, %c0_4] : memref<1x32xf32, #tpu.memory_space<vmem>>, vector<1x32xf32>
    %4 = vector.broadcast %3 : vector<1x32xf32> to vector<2x32xf32>
    %5 = arith.addf %2, %4 : vector<2x32xf32>
    %cst_5 = arith.constant 0.000000e+00 : f32
    %6 = vector.broadcast %cst_5 : f32 to vector<2x32xf32>
    %7 = arith.maximumf %5, %6 : vector<2x32xf32>
    %8 = arith.truncf %7 : vector<2x32xf32> to vector<2x32xbf16>
    %c0_6 = arith.constant 0 : index
    %c0_7 = arith.constant 0 : index
    %9 = vector.load %arg4[%c0_6, %c0_7] : memref<32x2048xbf16, #tpu.memory_space<vmem>>, vector<32x2048xbf16>
    %cst_8 = arith.constant dense<0.000000e+00> : vector<2x2048xf32>
    %10 = tpu.matmul %8, %9, %cst_8 {dimension_numbers = #tpu.dot_dimension_numbers<[1], [0], [0], [1], [0, 0, 1, 1], [], []>} : vector<2x32xbf16>, vector<32x2048xbf16>, vector<2x2048xf32> -> vector<2x2048xf32>
    %c0_9 = arith.constant 0 : index
    %c0_10 = arith.constant 0 : index
    %11 = vector.load %arg5[%c0_9, %c0_10] : memref<1x2048xf32, #tpu.memory_space<vmem>>, vector<1x2048xf32>
    %12 = vector.broadcast %11 : vector<1x2048xf32> to vector<2x2048xf32>
    %13 = arith.addf %10, %12 : vector<2x2048xf32>
    %cst_11 = arith.constant 0.000000e+00 : f32
    %14 = vector.broadcast %cst_11 : f32 to vector<2x2048xf32>
    %15 = arith.maximumf %13, %14 : vector<2x2048xf32>
    %c0_12 = arith.constant 0 : index
    %c0_13 = arith.constant 0 : index
    %16 = vector.load %arg6[%c0_12, %c0_13] : memref<2x2048xf32, #tpu.memory_space<vmem>>, vector<2x2048xf32>
    tpu.vector_store %arg6[%c0_12, %c0_13], %15 {strides = array<i32>} : memref<2x2048xf32, #tpu.memory_space<vmem>>, vector<2x2048xf32>,
    return
  }
  func.func @transform_0(%arg0: i32) -> (i32, i32) {
    %c0_i32 = arith.constant 0 : i32
    %c0_i32_0 = arith.constant 0 : i32
    %c0_i32_1 = arith.constant 0 : i32
    return %c0_i32, %c0_i32_0 : i32, i32
  }
  func.func @transform_1(%arg0: i32) -> (i32, i32) {
    %c0_i32 = arith.constant 0 : i32
    %c0_i32_0 = arith.constant 0 : i32
    %c0_i32_1 = arith.constant 0 : i32
    return %c0_i32, %c0_i32_0 : i32, i32
  }
  func.func @transform_2(%arg0: i32) -> (i32, i32) {
    %c0_i32 = arith.constant 0 : i32
    %c0_i32_0 = arith.constant 0 : i32
    %c0_i32_1 = arith.constant 0 : i32
    return %c0_i32, %c0_i32_0 : i32, i32
  }
  func.func @transform_3(%arg0: i32) -> (i32, i32) {
    %c0_i32 = arith.constant 0 : i32
    %c0_i32_0 = arith.constant 0 : i32
    %c0_i32_1 = arith.constant 0 : i32
    return %c0_i32, %c0_i32_0 : i32, i32
  }
  func.func @transform_4(%arg0: i32) -> (i32, i32) {
    %c0_i32 = arith.constant 0 : i32
    %c0_i32_0 = arith.constant 0 : i32
    %c0_i32_1 = arith.constant 0 : i32
    return %c0_i32, %c0_i32_0 : i32, i32
  }
  func.func @transform_5(%arg0: i32) -> (i32, i32) {
    %c0_i32 = arith.constant 0 : i32
    %c0_i32_0 = arith.constant 0 : i32
    %c0_i32_1 = arith.constant 0 : i32
    return %c0_i32, %c0_i32_0 : i32, i32
  }
}

module attributes {stable_mosaic.version = 11 : i64} {
  func.func @_conv_fused_kernel(%arg0: i32, %arg1: memref<16x512xbf16, #tpu.memory_space<vmem>>, %arg2: memref<1x512x256xbf16, #tpu.memory_space<vmem>>, %arg3: memref<16x1xf32, #tpu.memory_space<vmem>>, %arg4: memref<1x16x256xf32, #tpu.memory_space<vmem>>) attributes {dimension_semantics = [#tpu.dimension_semantics<parallel>], iteration_bounds = array<i64: 2>, scalar_prefetch = 0 : i64, scratch_operands = 0 : i64, tpu.core_type = #tpu.core_type<tc>, window_params = [{pipeline_mode = #tpu.pipeline_mode<synchronous>, transform_indices = @transform_0, window_bounds = array<i64: 16, 512>}, {transform_indices = @transform_1, window_bounds = array<i64: 1, 512, 256>}, {pipeline_mode = #tpu.pipeline_mode<synchronous>, transform_indices = @transform_2, window_bounds = array<i64: 16, 1>}, {transform_indices = @transform_3, window_bounds = array<i64: 1, 16, 256>}]} {
    %c0 = arith.constant 0 : index
    %c0_0 = arith.constant 0 : index
    %0 = vector.load %arg1[%c0, %c0_0] : memref<16x512xbf16, #tpu.memory_space<vmem>>, vector<16x512xbf16>
    %c0_1 = arith.constant 0 : index
    %c0_2 = arith.constant 0 : index
    %c0_3 = arith.constant 0 : index
    %1 = vector.load %arg2[%c0_1, %c0_2, %c0_3] : memref<1x512x256xbf16, #tpu.memory_space<vmem>>, vector<1x512x256xbf16>
    %2 = vector.shape_cast %1 : vector<1x512x256xbf16> to vector<512x256xbf16>
    %cst = arith.constant dense<0.000000e+00> : vector<16x256xf32>
    %3 = tpu.matmul %0, %2, %cst {dimension_numbers = #tpu.dot_dimension_numbers<[1], [0], [0], [1], [0, 0, 1, 1], [], []>} : vector<16x512xbf16>, vector<512x256xbf16>, vector<16x256xf32> -> vector<16x256xf32>
    %c0_4 = arith.constant 0 : index
    %c0_5 = arith.constant 0 : index
    %4 = vector.load %arg3[%c0_4, %c0_5] : memref<16x1xf32, #tpu.memory_space<vmem>>, vector<16x1xf32>
    %5 = vector.broadcast %4 : vector<16x1xf32> to vector<16x256xf32>
    %6 = arith.addf %3, %5 : vector<16x256xf32>
    %cst_6 = arith.constant dense<0.000000e+00> : vector<16xf32>
    %7 = vector.multi_reduction <add>, %6, %cst_6 [1] : vector<16x256xf32> to vector<16xf32>
    %8 = vector.shape_cast %7 : vector<16xf32> to vector<16x1xf32>
    %cst_7 = arith.constant 2.560000e+02 : f32
    %9 = vector.broadcast %cst_7 : f32 to vector<16x1xf32>
    %10 = arith.divf %8, %9 : vector<16x1xf32>
    %11 = vector.broadcast %10 : vector<16x1xf32> to vector<16x256xf32>
    %12 = arith.subf %6, %11 : vector<16x256xf32>
    %13 = arith.mulf %12, %12 : vector<16x256xf32>
    %cst_8 = arith.constant dense<0.000000e+00> : vector<16xf32>
    %14 = vector.multi_reduction <add>, %13, %cst_8 [1] : vector<16x256xf32> to vector<16xf32>
    %15 = vector.shape_cast %14 : vector<16xf32> to vector<16x1xf32>
    %cst_9 = arith.constant 2.560000e+02 : f32
    %16 = vector.broadcast %cst_9 : f32 to vector<16x1xf32>
    %17 = arith.divf %15, %16 : vector<16x1xf32>
    %cst_10 = arith.constant 9.99999974E-6 : f32
    %18 = vector.broadcast %cst_10 : f32 to vector<16x1xf32>
    %19 = arith.addf %17, %18 : vector<16x1xf32>
    %20 = math.rsqrt %19 : vector<16x1xf32>
    %21 = vector.broadcast %20 : vector<16x1xf32> to vector<16x256xf32>
    %22 = arith.mulf %12, %21 : vector<16x256xf32>
    %cst_11 = arith.constant 0.000000e+00 : f32
    %23 = vector.broadcast %cst_11 : f32 to vector<16x256xf32>
    %24 = arith.maximumf %22, %23 : vector<16x256xf32>
    %c0_12 = arith.constant 0 : index
    %c0_13 = arith.constant 0 : index
    %c0_14 = arith.constant 0 : index
    %25 = vector.load %arg4[%c0_12, %c0_13, %c0_14] : memref<1x16x256xf32, #tpu.memory_space<vmem>>, vector<1x16x256xf32>
    %26 = vector.shape_cast %25 : vector<1x16x256xf32> to vector<16x256xf32>
    %27 = vector.shape_cast %24 : vector<16x256xf32> to vector<1x16x256xf32>
    tpu.vector_store %arg4[%c0_12, %c0_13, %c0_14], %27 {strides = array<i32>} : memref<1x16x256xf32, #tpu.memory_space<vmem>>, vector<1x16x256xf32>,
    return
  }
  func.func @transform_0(%arg0: i32) -> (i32, i32) {
    %c0_i32 = arith.constant 0 : i32
    %c0_i32_0 = arith.constant 0 : i32
    %c0_i32_1 = arith.constant 0 : i32
    return %c0_i32, %c0_i32_0 : i32, i32
  }
  func.func @transform_1(%arg0: i32) -> (i32, i32, i32) {
    %c0_i32 = arith.constant 0 : i32
    %c0_i32_0 = arith.constant 0 : i32
    %c0_i32_1 = arith.constant 0 : i32
    return %arg0, %c0_i32, %c0_i32_0 : i32, i32, i32
  }
  func.func @transform_2(%arg0: i32) -> (i32, i32) {
    %c0_i32 = arith.constant 0 : i32
    %c0_i32_0 = arith.constant 0 : i32
    %c0_i32_1 = arith.constant 0 : i32
    return %c0_i32, %c0_i32_0 : i32, i32
  }
  func.func @transform_3(%arg0: i32) -> (i32, i32, i32) {
    %c0_i32 = arith.constant 0 : i32
    %c0_i32_0 = arith.constant 0 : i32
    %c0_i32_1 = arith.constant 0 : i32
    return %arg0, %c0_i32, %c0_i32_0 : i32, i32, i32
  }
}

module attributes {stable_mosaic.version = 11 : i64} {
  func.func @_conv_fused_kernel(%arg0: i32, %arg1: memref<8x256xbf16, #tpu.memory_space<vmem>>, %arg2: memref<1x256x1024xbf16, #tpu.memory_space<vmem>>, %arg3: memref<8x1xf32, #tpu.memory_space<vmem>>, %arg4: memref<1x8x1024xf32, #tpu.memory_space<vmem>>) attributes {dimension_semantics = [#tpu.dimension_semantics<parallel>], iteration_bounds = array<i64: 2>, scalar_prefetch = 0 : i64, scratch_operands = 0 : i64, tpu.core_type = #tpu.core_type<tc>, window_params = [{pipeline_mode = #tpu.pipeline_mode<synchronous>, transform_indices = @transform_0, window_bounds = array<i64: 8, 256>}, {transform_indices = @transform_1, window_bounds = array<i64: 1, 256, 1024>}, {pipeline_mode = #tpu.pipeline_mode<synchronous>, transform_indices = @transform_2, window_bounds = array<i64: 8, 1>}, {transform_indices = @transform_3, window_bounds = array<i64: 1, 8, 1024>}]} {
    %c0 = arith.constant 0 : index
    %c0_0 = arith.constant 0 : index
    %0 = vector.load %arg1[%c0, %c0_0] : memref<8x256xbf16, #tpu.memory_space<vmem>>, vector<8x256xbf16>
    %c0_1 = arith.constant 0 : index
    %c0_2 = arith.constant 0 : index
    %c0_3 = arith.constant 0 : index
    %1 = vector.load %arg2[%c0_1, %c0_2, %c0_3] : memref<1x256x1024xbf16, #tpu.memory_space<vmem>>, vector<1x256x1024xbf16>
    %2 = vector.shape_cast %1 : vector<1x256x1024xbf16> to vector<256x1024xbf16>
    %cst = arith.constant dense<0.000000e+00> : vector<8x1024xf32>
    %3 = tpu.matmul %0, %2, %cst {dimension_numbers = #tpu.dot_dimension_numbers<[1], [0], [0], [1], [0, 0, 1, 1], [], []>} : vector<8x256xbf16>, vector<256x1024xbf16>, vector<8x1024xf32> -> vector<8x1024xf32>
    %c0_4 = arith.constant 0 : index
    %c0_5 = arith.constant 0 : index
    %4 = vector.load %arg3[%c0_4, %c0_5] : memref<8x1xf32, #tpu.memory_space<vmem>>, vector<8x1xf32>
    %5 = vector.broadcast %4 : vector<8x1xf32> to vector<8x1024xf32>
    %6 = arith.addf %3, %5 : vector<8x1024xf32>
    %cst_6 = arith.constant dense<0.000000e+00> : vector<8xf32>
    %7 = vector.multi_reduction <add>, %6, %cst_6 [1] : vector<8x1024xf32> to vector<8xf32>
    %8 = vector.shape_cast %7 : vector<8xf32> to vector<8x1xf32>
    %cst_7 = arith.constant 1.024000e+03 : f32
    %9 = vector.broadcast %cst_7 : f32 to vector<8x1xf32>
    %10 = arith.divf %8, %9 : vector<8x1xf32>
    %11 = vector.broadcast %10 : vector<8x1xf32> to vector<8x1024xf32>
    %12 = arith.subf %6, %11 : vector<8x1024xf32>
    %13 = arith.mulf %12, %12 : vector<8x1024xf32>
    %cst_8 = arith.constant dense<0.000000e+00> : vector<8xf32>
    %14 = vector.multi_reduction <add>, %13, %cst_8 [1] : vector<8x1024xf32> to vector<8xf32>
    %15 = vector.shape_cast %14 : vector<8xf32> to vector<8x1xf32>
    %cst_9 = arith.constant 1.024000e+03 : f32
    %16 = vector.broadcast %cst_9 : f32 to vector<8x1xf32>
    %17 = arith.divf %15, %16 : vector<8x1xf32>
    %cst_10 = arith.constant 9.99999974E-6 : f32
    %18 = vector.broadcast %cst_10 : f32 to vector<8x1xf32>
    %19 = arith.addf %17, %18 : vector<8x1xf32>
    %20 = math.rsqrt %19 : vector<8x1xf32>
    %21 = vector.broadcast %20 : vector<8x1xf32> to vector<8x1024xf32>
    %22 = arith.mulf %12, %21 : vector<8x1024xf32>
    %cst_11 = arith.constant 0.000000e+00 : f32
    %23 = vector.broadcast %cst_11 : f32 to vector<8x1024xf32>
    %24 = arith.maximumf %22, %23 : vector<8x1024xf32>
    %c0_12 = arith.constant 0 : index
    %c0_13 = arith.constant 0 : index
    %c0_14 = arith.constant 0 : index
    %25 = vector.load %arg4[%c0_12, %c0_13, %c0_14] : memref<1x8x1024xf32, #tpu.memory_space<vmem>>, vector<1x8x1024xf32>
    %26 = vector.shape_cast %25 : vector<1x8x1024xf32> to vector<8x1024xf32>
    %27 = vector.shape_cast %24 : vector<8x1024xf32> to vector<1x8x1024xf32>
    tpu.vector_store %arg4[%c0_12, %c0_13, %c0_14], %27 {strides = array<i32>} : memref<1x8x1024xf32, #tpu.memory_space<vmem>>, vector<1x8x1024xf32>,
    return
  }
  func.func @transform_0(%arg0: i32) -> (i32, i32) {
    %c0_i32 = arith.constant 0 : i32
    %c0_i32_0 = arith.constant 0 : i32
    %c0_i32_1 = arith.constant 0 : i32
    return %c0_i32, %c0_i32_0 : i32, i32
  }
  func.func @transform_1(%arg0: i32) -> (i32, i32, i32) {
    %c0_i32 = arith.constant 0 : i32
    %c0_i32_0 = arith.constant 0 : i32
    %c0_i32_1 = arith.constant 0 : i32
    return %arg0, %c0_i32, %c0_i32_0 : i32, i32, i32
  }
  func.func @transform_2(%arg0: i32) -> (i32, i32) {
    %c0_i32 = arith.constant 0 : i32
    %c0_i32_0 = arith.constant 0 : i32
    %c0_i32_1 = arith.constant 0 : i32
    return %c0_i32, %c0_i32_0 : i32, i32
  }
  func.func @transform_3(%arg0: i32) -> (i32, i32, i32) {
    %c0_i32 = arith.constant 0 : i32
    %c0_i32_0 = arith.constant 0 : i32
    %c0_i32_1 = arith.constant 0 : i32
    return %arg0, %c0_i32, %c0_i32_0 : i32, i32, i32
  }
}

module attributes {stable_mosaic.version = 11 : i64} {
  func.func @_conv_fused_kernel(%arg0: i32, %arg1: memref<3x128xbf16, #tpu.memory_space<vmem>>, %arg2: memref<1x128x4096xbf16, #tpu.memory_space<vmem>>, %arg3: memref<3x1xf32, #tpu.memory_space<vmem>>, %arg4: memref<1x3x4096xf32, #tpu.memory_space<vmem>>) attributes {dimension_semantics = [#tpu.dimension_semantics<parallel>], iteration_bounds = array<i64: 2>, scalar_prefetch = 0 : i64, scratch_operands = 0 : i64, tpu.core_type = #tpu.core_type<tc>, window_params = [{pipeline_mode = #tpu.pipeline_mode<synchronous>, transform_indices = @transform_0, window_bounds = array<i64: 3, 128>}, {transform_indices = @transform_1, window_bounds = array<i64: 1, 128, 4096>}, {pipeline_mode = #tpu.pipeline_mode<synchronous>, transform_indices = @transform_2, window_bounds = array<i64: 3, 1>}, {transform_indices = @transform_3, window_bounds = array<i64: 1, 3, 4096>}]} {
    %c0 = arith.constant 0 : index
    %c0_0 = arith.constant 0 : index
    %0 = vector.load %arg1[%c0, %c0_0] : memref<3x128xbf16, #tpu.memory_space<vmem>>, vector<3x128xbf16>
    %c0_1 = arith.constant 0 : index
    %c0_2 = arith.constant 0 : index
    %c0_3 = arith.constant 0 : index
    %1 = vector.load %arg2[%c0_1, %c0_2, %c0_3] : memref<1x128x4096xbf16, #tpu.memory_space<vmem>>, vector<1x128x4096xbf16>
    %2 = vector.shape_cast %1 : vector<1x128x4096xbf16> to vector<128x4096xbf16>
    %cst = arith.constant dense<0.000000e+00> : vector<3x4096xf32>
    %3 = tpu.matmul %0, %2, %cst {dimension_numbers = #tpu.dot_dimension_numbers<[1], [0], [0], [1], [0, 0, 1, 1], [], []>} : vector<3x128xbf16>, vector<128x4096xbf16>, vector<3x4096xf32> -> vector<3x4096xf32>
    %c0_4 = arith.constant 0 : index
    %c0_5 = arith.constant 0 : index
    %4 = vector.load %arg3[%c0_4, %c0_5] : memref<3x1xf32, #tpu.memory_space<vmem>>, vector<3x1xf32>
    %5 = vector.broadcast %4 : vector<3x1xf32> to vector<3x4096xf32>
    %6 = arith.addf %3, %5 : vector<3x4096xf32>
    %7 = math.tanh %6 : vector<3x4096xf32>
    %c0_6 = arith.constant 0 : index
    %c0_7 = arith.constant 0 : index
    %c0_8 = arith.constant 0 : index
    %8 = vector.load %arg4[%c0_6, %c0_7, %c0_8] : memref<1x3x4096xf32, #tpu.memory_space<vmem>>, vector<1x3x4096xf32>
    %9 = vector.shape_cast %8 : vector<1x3x4096xf32> to vector<3x4096xf32>
    %10 = vector.shape_cast %7 : vector<3x4096xf32> to vector<1x3x4096xf32>
    tpu.vector_store %arg4[%c0_6, %c0_7, %c0_8], %10 {strides = array<i32>} : memref<1x3x4096xf32, #tpu.memory_space<vmem>>, vector<1x3x4096xf32>,
    return
  }
  func.func @transform_0(%arg0: i32) -> (i32, i32) {
    %c0_i32 = arith.constant 0 : i32
    %c0_i32_0 = arith.constant 0 : i32
    %c0_i32_1 = arith.constant 0 : i32
    return %c0_i32, %c0_i32_0 : i32, i32
  }
  func.func @transform_1(%arg0: i32) -> (i32, i32, i32) {
    %c0_i32 = arith.constant 0 : i32
    %c0_i32_0 = arith.constant 0 : i32
    %c0_i32_1 = arith.constant 0 : i32
    return %arg0, %c0_i32, %c0_i32_0 : i32, i32, i32
  }
  func.func @transform_2(%arg0: i32) -> (i32, i32) {
    %c0_i32 = arith.constant 0 : i32
    %c0_i32_0 = arith.constant 0 : i32
    %c0_i32_1 = arith.constant 0 : i32
    return %c0_i32, %c0_i32_0 : i32, i32
  }
  func.func @transform_3(%arg0: i32) -> (i32, i32, i32) {
    %c0_i32 = arith.constant 0 : i32
    %c0_i32_0 = arith.constant 0 : i32
    %c0_i32_1 = arith.constant 0 : i32
    return %arg0, %c0_i32, %c0_i32_0 : i32, i32, i32
  }
}

</mosaic_0001>

<bundles_post_ra>
// kernel: styled_generator_forward.7
= control target key start
LH: loop header
LB: loop body
LE: loop exit
PB: predicated region body
PF: predicated region fallthrough
CT: control target
= control target key end

     0   :  { %s657_s12 = smov 0   ;;  %s711_s0 = inlined_call_operand.vmem [shape: bf16[8,27], index: 0, kind: input, shape index: {}]   ;;  %s712_s1 = inlined_call_operand.vmem [shape: bf16[2,27,1024], index: 1, kind: input, shape index: {}]   ;;  %s713_s2 = inlined_call_operand.vmem [shape: f32[8,1], index: 2, kind: input, shape index: {}]   ;;  %s714_s3 = inlined_call_operand.vmem [shape: f32[2,8,1024], index: 3, kind: output, shape index: {}]  }
   0x1 LB: > { %s581_s13 = sadd.s32 4294967295, %s633_s12   ;;  %p585_p0 = scmp.ge.s32.totalorder %s633_s12, 1  ;;  %s633_s12 = sphi %s657_s12, %s13_s12  }
   0x2   : > { %p137_p1 = scmp.lt.s32.totalorder %s633_s12, 3 }
   0x4   : > { %p138_p2 = pnand %p585_p0, %p137_p1 }
   0x5   : > { %p161_p3 = scmp.lt.s32.totalorder (!%p138_p2), %s581_s13, 1 }
   0x6   : > { %141 = sbr.rel (%p138_p2) target bundleno = 561 (0x231), region = 32 }
   0xb   : > { %vm271_vm0 = vcmask 1044480   ;;  %v189_v0 = vld [vmem:[%s713_s2] sm:$0xff]  ;;  %v635_v1 = vmov 0   ;;  %s716_s13 = smov (!%p161_p3, %s581_s13), 1  ;;  %vm272_vm1 = vcmask 1045504   ;;  %v636_v2 = vmov 65535  }
   0xc   : > { %331 = vmatprep.mubr.bf16.mxu0 %v635_v1  ;;  %372 = vmatprep.mubr.bf16.mxu1 %v635_v1  ;;  %v273_v3 = vsel %vm271_vm0, 4294967295, %v636_v2  ;;  %s612_s16 = sshll.u32 %s716_s13, 7  ;;  %v172_v39 = vld [vmem:[%s711_s0] sm:$0xf]  ;;  %vm267_vm2 = vcmask 220160   ;;  %s613_s22 = sshll.u32 %s716_s13, 6 }
   0xd   : > { %624 = vset.pattern.permute.xlu0 %v635_v1  ;;  %s677_s19 = scalar_lea.vmem %s712_s1, %s612_s16  ;;  %v274_v6 = vsel %vm272_vm1, %v273_v3, 0  ;;  %s170_s25 = scalar_lea.vmem %s714_s3, %s613_s22 }
   0xe   : > { %192 = vperm.xlu0 %624, %v189_v0   ;;  %v181_v4 = vld [vmem:[%s677_s19 + $0x40] sm:$0xff]  ;;  %v182_v7 = vld [vmem:[%s677_s19 + $0x48] sm:$0xff]  ;;  %v183_v17 = vld [vmem:[%s677_s19 + $0x50] sm:$0xff] }
   0xf   : > { %v185_v5 = vld [vmem:[%s677_s19 + $0x60] sm:$0x33]  ;;  %v186_v9 = vld [vmem:[%s677_s19 + $0x68] sm:$0x33]  ;;  %v187_v21 = vld [vmem:[%s677_s19 + $0x70] sm:$0x33] }
  0x10   : > { %v599_v8 = vcombine.high %v181_v4, %v185_v5  ;;  %v598_v10 = vcombine.low %v181_v4, %v185_v5  ;;  %v173_v11 = vld [vmem:[%s677_s19] sm:$0xff]  ;;  %v601_v13 = vcombine.high %v182_v7, %v186_v9  ;;  %v600_v14 = vcombine.low %v182_v7, %v186_v9  ;;  %v174_v15 = vld [vmem:[%s677_s19 + $0x8] sm:$0xff]  ;;  %v184_v22 = vld [vmem:[%s677_s19 + $0x58] sm:$0xff] }
  0x11   : > { %v177_v12 = vld [vmem:[%s677_s19 + $0x20] sm:$0xff]  ;;  %v178_v16 = vld [vmem:[%s677_s19 + $0x28] sm:$0xff]  ;;  %v188_v23 = vld [vmem:[%s677_s19 + $0x78] sm:$0x33]  ;;  %v603_v27 = vcombine.high %v183_v17, %v187_v21  ;;  %v602_v30 = vcombine.low %v183_v17, %v187_v21 }
  0x12   : > { %v279_v18 = vand.u32 %v599_v8, %v274_v6  ;;  %v276_v19 = vand.u32 %v598_v10, %v274_v6  ;;  %v591_v20 = vcombine.high %v173_v11, %v177_v12  ;;  %v285_v24 = vand.u32 %v601_v13, %v274_v6  ;;  %v175_v35 = vld [vmem:[%s677_s19 + $0x10] sm:$0xff]  ;;  %v176_v37 = vld [vmem:[%s677_s19 + $0x18] sm:$0xff] }
  0x13   : > { %v282_v25 = vand.u32 %v600_v14, %v274_v6  ;;  %v593_v26 = vcombine.high %v174_v15, %v178_v16  ;;  %v605_v28 = vcombine.high %v184_v22, %v188_v23  ;;  %v590_v29 = vcombine.low %v173_v11, %v177_v12  ;;  %v179_v36 = vld [vmem:[%s677_s19 + $0x30] sm:$0xff]  ;;  %v180_v38 = vld [vmem:[%s677_s19 + $0x38] sm:$0xff] }
  0x14   : > { %311 = vmatprep.subr.bf16.mxu0 %v279_v18  ;;  %352 = vmatprep.subr.bf16.mxu1 %v285_v24  ;;  %v592_v31 = vcombine.low %v174_v15, %v178_v16  ;;  %v291_v32 = vand.u32 %v603_v27, %v274_v6  ;;  %v604_v33 = vcombine.low %v184_v22, %v188_v23 }
  0x15   : > { %312 = vmatpush1.bf16.msra.mxu0 %v276_v19  ;;  %353 = vmatpush1.bf16.msra.mxu1 %v282_v25  ;;  %v297_v34 = vand.u32 %v605_v28, %v274_v6  ;;  %v288_v40 = vand.u32 %v602_v30, %v274_v6  ;;  %v595_v42 = vcombine.high %v175_v35, %v179_v36 }
  0x16   : > { %313 = vmatprep.subr.bf16.mxu0 %v591_v20  ;;  %354 = vmatprep.subr.bf16.mxu1 %v593_v26  ;;  %v294_v41 = vand.u32 %v604_v33, %v274_v6  ;;  %v597_v43 = vcombine.high %v176_v37, %v180_v38  ;;  %v594_v44 = vcombine.low %v175_v35, %v179_v36 }
  0x17   : > { %v596_v45 = vcombine.low %v176_v37, %v180_v38 }
  0x19   : > { %314 = vmatpush1.bf16.msra.mxu0 %v590_v29  ;;  %355 = vmatpush1.bf16.msra.mxu1 %v592_v31 }
  0x1a   : > { %393 = vmatprep.subr.bf16.mxu0 %v291_v32  ;;  %434 = vmatprep.subr.bf16.mxu1 %v297_v34 }
  0x1c   : > { %606 = vmatmul.mubr.msk.bf16.vlgmr.msra.gmra.mxu0 %vm267_vm2, %v172_v39  ;;  %607 = vmatmul.mubr.msk.bf16.vlgmr.msra.gmra.mxu1 %vm267_vm2, %v172_v39 }
  0x1d   : > { %394 = vmatpush1.bf16.msra.mxu0 %v288_v40  ;;  %435 = vmatpush1.bf16.msra.mxu1 %v294_v41 }
  0x1e   : > { %395 = vmatprep.subr.bf16.mxu0 %v595_v42  ;;  %436 = vmatprep.subr.bf16.mxu1 %v597_v43 }
  0x1f   : > { %413 = vmatprep.mubr.bf16.mxu0 %v635_v1  ;;  %454 = vmatprep.mubr.bf16.mxu1 %v635_v1 }
  0x21   : > { %396 = vmatpush1.bf16.msra.mxu0 %v594_v44  ;;  %437 = vmatpush1.bf16.msra.mxu1 %v596_v45 }
  0x24   : > { %608 = vmatmul.mubr.msk.bf16.vlgmr.msra.gmra.mxu0 %vm267_vm2, %v172_v39  ;;  %609 = vmatmul.mubr.msk.bf16.vlgmr.msra.gmra.mxu1 %vm267_vm2, %v172_v39 }
  0x89   : > { %v193_v47 = vpop.permute.xlu0 %192 }
  0xdc   : > { %v333_v46 = vpop.f32.mrf.mxu0  ;;  %v374_v48 = vpop.f32.mrf.mxu1 }
  0xdd   : > { %v334_v50 = vadd.f32 %v333_v46, %v193_v47  ;;  %v375_v55 = vadd.f32 %v374_v48, %v193_v47 }
  0xde   : > { %v335_v49 = vpop.f32.mrf.mxu0  ;;  %v376_v52 = vpop.f32.mrf.mxu1 }
  0xdf   : > { %v336_v51 = vadd.f32 %v335_v49, %v193_v47  ;;  %v377_v58 = vadd.f32 %v376_v52, %v193_v47 }
  0xe0   : > { %v337_v53 = vpop.f32.mrf.mxu0  ;;  %v378_v56 = vpop.f32.mrf.mxu1 }
  0xe1   : > { %v463_v54 = vadd.f32 %v336_v51, %v334_v50 }
  0xe2   : > { %v338_v57 = vpop.f32.mrf.mxu0  ;;  %v379_v60 = vpop.f32.mrf.mxu1 }
  0xe3   : > { %v464_v59 = vadd.f32 %v463_v54, %v375_v55 }
  0xe4   : > { %v415_v61 = vpop.f32.mrf.mxu0  ;;  %v456_v0 = vpop.f32.mrf.mxu1 }
  0xe5   : > { %v465_v62 = vadd.f32 %v464_v59, %v377_v58  ;;  %v416_v63 = vadd.f32 %v415_v61, %v193_v47  ;;  %v457_v6 = vadd.f32 %v456_v0, %v193_v47 }
  0xe6   : > { %v417_v1 = vpop.f32.mrf.mxu0  ;;  %v458_v4 = vpop.f32.mrf.mxu1 }
  0xe7   : > { %v466_v2 = vadd.f32 %v465_v62, %v416_v63  ;;  %v418_v3 = vadd.f32 %v417_v1, %v193_v47  ;;  %v459_v10 = vadd.f32 %v458_v4, %v193_v47 }
  0xe8   : > { %v419_v5 = vpop.f32.mrf.mxu0  ;;  %v460_v8 = vpop.f32.mrf.mxu1 }
  0xe9   : > { %v467_v7 = vadd.f32 %v466_v2, %v418_v3 }
  0xea   : > { %v420_v9 = vpop.f32.mrf.mxu0  ;;  %v461_v11 = vpop.f32.mrf.mxu1 }
  0xeb   : > { %v468_v12 = vadd.f32 %v467_v7, %v457_v6 }
  0xed   : > { %v469_v13 = vadd.f32 %v468_v12, %v459_v10 }
  0xef   : > { %470 = vadd.xlane.f32.xlu0 %v469_v13 }
 0x178   : > { %v471_v14 = vpop.xlane.xlu0 %470 }
 0x179   : > { %v473_v15 = vmul.f32 0.0009765625, %v471_v14 }
 0x17b   : > { %v474_v16 = vsub.f32 %v334_v50, %v473_v15  ;;  %v475_v17 = vsub.f32 %v336_v51, %v473_v15  ;;  %v476_v18 = vsub.f32 %v375_v55, %v473_v15  ;;  %v477_v19 = vsub.f32 %v377_v58, %v473_v15 }
 0x17c   : > { %v478_v22 = vsub.f32 %v416_v63, %v473_v15  ;;  %v479_v25 = vsub.f32 %v418_v3, %v473_v15  ;;  %v480_v28 = vsub.f32 %v457_v6, %v473_v15  ;;  %v481_v31 = vsub.f32 %v459_v10, %v473_v15 }
 0x17d   : > { %v482_v20 = vmul.f32 %v474_v16, %v474_v16  ;;  %v483_v21 = vmul.f32 %v475_v17, %v475_v17  ;;  %v484_v23 = vmul.f32 %v476_v18, %v476_v18  ;;  %v485_v26 = vmul.f32 %v477_v19, %v477_v19 }
 0x17e   : > { %v486_v29 = vmul.f32 %v478_v22, %v478_v22  ;;  %v487_v32 = vmul.f32 %v479_v25, %v479_v25  ;;  %v488_v34 = vmul.f32 %v480_v28, %v480_v28  ;;  %v489_v36 = vmul.f32 %v481_v31, %v481_v31 }
 0x17f   : > { %v490_v24 = vadd.f32 %v483_v21, %v482_v20 }
 0x181   : > { %v491_v27 = vadd.f32 %v490_v24, %v484_v23 }
 0x183   : > { %v492_v30 = vadd.f32 %v491_v27, %v485_v26 }
 0x185   : > { %v493_v33 = vadd.f32 %v492_v30, %v486_v29 }
 0x187   : > { %v494_v35 = vadd.f32 %v493_v33, %v487_v32 }
 0x189   : > { %v495_v37 = vadd.f32 %v494_v35, %v488_v34 }
 0x18b   : > { %v496_v38 = vadd.f32 %v495_v37, %v489_v36 }
 0x18d   : > { %497 = vadd.xlane.f32.xlu1 %v496_v38 }
 0x216   : > { %v498_v39 = vpop.xlane.xlu1 %497 }
 0x217   : > { %v499_v40 = vmul.f32 0.0009765625, %v498_v39 }
 0x219   : > { %v500_v41 = vadd.f32 1e-05, %v499_v40 }
 0x21b   : > { %625 = vrsqrt.f32 %v500_v41 }
 0x228   : > { %v626_v42 = vpop.eup %625 }
 0x229   : > { %v502_v43 = vmul.f32 %v626_v42, %v474_v16  ;;  %v503_v44 = vmul.f32 %v626_v42, %v475_v17  ;;  %v504_v45 = vmul.f32 %v626_v42, %v476_v18  ;;  %v505_v46 = vmul.f32 %v626_v42, %v477_v19 }
 0x22a   : > { %v506_v47 = vmul.f32 %v626_v42, %v478_v22  ;;  %v507_v48 = vmul.f32 %v626_v42, %v479_v25  ;;  %v508_v49 = vmul.f32 %v626_v42, %v480_v28  ;;  %v509_v50 = vmul.f32 %v626_v42, %v481_v31 }
 0x22b   : > { %v510_v51 = vmax.f32 %v502_v43, 0.0  ;;  %v511_v52 = vmax.f32 %v503_v44, 0.0  ;;  %v512_v53 = vmax.f32 %v504_v45, 0.0  ;;  %v513_v54 = vmax.f32 %v505_v46, 0.0 }
 0x22c   : > { %v514_v55 = vmax.f32 %v506_v47, 0.0  ;;  %v515_v56 = vmax.f32 %v507_v48, 0.0  ;;  %v516_v57 = vmax.f32 %v508_v49, 0.0  ;;  %v517_v58 = vmax.f32 %v509_v50, 0.0 }
 0x22d   : > { %518 = vst [vmem:[%s170_s25] sm:$0xff] %v510_v51  ;;  %519 = vst [vmem:[%s170_s25 + $0x8] sm:$0xff] %v511_v52 }
 0x22e   : > { %520 = vst [vmem:[%s170_s25 + $0x10] sm:$0xff] %v512_v53  ;;  %521 = vst [vmem:[%s170_s25 + $0x18] sm:$0xff] %v513_v54 }
 0x22f   : > { %522 = vst [vmem:[%s170_s25 + $0x20] sm:$0xff] %v514_v55  ;;  %523 = vst [vmem:[%s170_s25 + $0x28] sm:$0xff] %v515_v56 }
 0x230   : > { %524 = vst [vmem:[%s170_s25 + $0x30] sm:$0xff] %v516_v57  ;;  %525 = vst [vmem:[%s170_s25 + $0x38] sm:$0xff] %v517_v58 }
 0x231 PF: > { %s13_s12 = sadd.s32 1, %s633_s12  }
 0x232   : > { %p10_p4 = scmp.ge.s32.totalorder %s13_s12, 4  }
 0x234   :  { %12 = sbr.rel (!%p10_p4) target bundleno = 1 (0x1), region = 62 }

// kernel: styled_generator_forward.8
= control target key start
LH: loop header
LB: loop body
LE: loop exit
PB: predicated region body
PF: predicated region fallthrough
CT: control target
= control target key end

     0   :  { %s478_s12 = smov 0   ;;  %s508_s0 = inlined_call_operand.vmem [shape: bf16[16,72], index: 0, kind: input, shape index: {}]   ;;  %s509_s1 = inlined_call_operand.vmem [shape: bf16[2,72,256], index: 1, kind: input, shape index: {}]   ;;  %s510_s2 = inlined_call_operand.vmem [shape: f32[16,1], index: 2, kind: input, shape index: {}]   ;;  %s511_s3 = inlined_call_operand.vmem [shape: f32[2,16,256], index: 3, kind: output, shape index: {}]  }
   0x1 LB: > { %s395_s13 = sadd.s32 4294967295, %s455_s12   ;;  %p399_p0 = scmp.ge.s32.totalorder %s455_s12, 1  ;;  %s455_s12 = sphi %s478_s12, %s13_s12  }
   0x2   : > { %p137_p1 = scmp.lt.s32.totalorder %s455_s12, 3 }
   0x4   : > { %p138_p2 = pnand %p399_p0, %p137_p1 }
   0x5   : > { %p161_p3 = scmp.lt.s32.totalorder (!%p138_p2), %s395_s13, 1 }
   0x6   : > { %141 = sbr.rel (%p138_p2) target bundleno = 548 (0x224), region = 32 }
   0xb   : > { %v457_v0 = vmov 0   ;;  %v183_v1 = vld [vmem:[%s510_s2] sm:$0xff]  ;;  %s513_s13 = smov (!%p161_p3, %s395_s13), 1  ;;  %v184_v2 = vld [vmem:[%s510_s2 + $0x8] sm:$0xff]  ;;  %vm249_vm0 = vcmask 1043456   ;;  %vm245_vm1 = vcmask 588800  }
   0xc   : > { %288 = vmatprep.mubr.bf16.mxu0 %v457_v0  ;;  %429 = vset.pattern.permute.xlu0 %v457_v0  ;;  %s419_s18 = smul.u32 72, %s513_s13  ;;  %v444_v15 = vld [vmem:[%s508_s0] sm:$0xff]   ;;  %s418_s24 = sshll.u32 %s513_s13, 5 }
   0xd   : > { %187 = vperm.xlu0 %429, %v183_v1   ;;  %s170_s27 = scalar_lea.vmem %s511_s3, %s418_s24 }
   0xe   : > { %s165_s21 = scalar_lea.vmem %s509_s1, %s419_s18 }
   0xf   : > { %v182_v3 = vld [vmem:[%s165_s21 + $0x40] sm:$0xff]  ;;  %v432_v6 = vld [vmem:[%s165_s21 + $0x34] ss:$8 sps:$4 sm:$0xff]   ;;  %v434_v8 = vld [vmem:[%s165_s21 + $0x30] ss:$8 sps:$4 sm:$0xff]  }
  0x10   : > { %v413_v4 = vcombine.high %v182_v3, %v182_v3  ;;  %v412_v5 = vcombine.low %v182_v3, %v182_v3  ;;  %v435_v9 = vld [vmem:[%s165_s21 + $0x24] ss:$8 sps:$4 sm:$0xff]   ;;  %v437_v10 = vld [vmem:[%s165_s21 + $0x20] ss:$8 sps:$4 sm:$0xff]   ;;  %v438_v11 = vld [vmem:[%s165_s21 + $0x14] ss:$8 sps:$4 sm:$0xff]  }
  0x11   : > { %192 = vperm.xlu0 %429, %v184_v2   ;;  %v440_v12 = vld [vmem:[%s165_s21 + $0x10] ss:$8 sps:$4 sm:$0xff]   ;;  %v441_v13 = vld [vmem:[%s165_s21 + $0x4] ss:$8 sps:$4 sm:$0xff]   ;;  %v443_v14 = vld [vmem:[%s165_s21] ss:$8 sps:$4 sm:$0xff]  }
  0x12   : > { %414 = vmatprep.subr.msk.bf16.mxu0 %vm249_vm0, %v413_v4  ;;  %v251_v7 = vsel %vm249_vm0, %v412_v5, 0 }
  0x13   : > { %263 = vmatpush1.bf16.msra.mxu0 %v251_v7 }
  0x14   : > { %264 = vmatprep.subr.bf16.mxu0 %v432_v6 }
  0x17   : > { %265 = vmatpush1.bf16.msra.mxu0 %v434_v8 }
  0x18   : > { %266 = vmatprep.subr.bf16.mxu0 %v435_v9 }
  0x1b   : > { %267 = vmatpush1.bf16.msra.mxu0 %v437_v10 }
  0x1c   : > { %268 = vmatprep.subr.bf16.mxu0 %v438_v11 }
  0x1f   : > { %269 = vmatpush1.bf16.msra.mxu0 %v440_v12 }
  0x20   : > { %270 = vmatprep.subr.bf16.mxu0 %v441_v13 }
  0x23   : > { %271 = vmatpush1.bf16.msra.mxu0 %v443_v14 }
  0x26   : > { %415 = vmatmul.mubr.msk.bf16.vlgmr.msra.gmra.mxu0 %vm245_vm1, %v444_v15 }
  0x88   : > { %v188_v16 = vpop.permute.xlu0 %187 }
  0x8c   : > { %v193_v23 = vpop.permute.xlu0 %192 }
  0xe6   : > { %v290_v17 = vpop.f32.mrf.mxu0 }
  0xe7   : > { %v291_v19 = vadd.f32 %v290_v17, %v188_v16 }
  0xe8   : > { %v292_v18 = vpop.f32.mrf.mxu0 }
  0xe9   : > { %v293_v20 = vadd.f32 %v292_v18, %v188_v16 }
  0xea   : > { %v294_v21 = vpop.f32.mrf.mxu0 }
  0xeb   : > { %v299_v22 = vadd.f32 %v293_v20, %v291_v19  ;;  %v295_v25 = vadd.f32 %v294_v21, %v193_v23 }
  0xec   : > { %v296_v24 = vpop.f32.mrf.mxu0 }
  0xed   : > { %v297_v26 = vadd.f32 %v296_v24, %v193_v23  ;;  %300 = vadd.xlane.f32.xlu1 %v299_v22 }
  0xef   : > { %v302_v27 = vadd.f32 %v297_v26, %v295_v25 }
  0xf1   : > { %303 = vadd.xlane.f32.xlu1 %v302_v27 }
 0x176   : > { %v301_v28 = vpop.xlane.xlu1 %300 }
 0x177   : > { %v306_v29 = vmul.f32 0.00390625, %v301_v28 }
 0x179   : > { %v308_v30 = vsub.f32 %v291_v19, %v306_v29  ;;  %v309_v31 = vsub.f32 %v293_v20, %v306_v29 }
 0x17a   : > { %v304_v32 = vpop.xlane.xlu1 %303 }
 0x17b   : > { %v307_v33 = vmul.f32 0.00390625, %v304_v32  ;;  %v312_v34 = vmul.f32 %v308_v30, %v308_v30  ;;  %v313_v35 = vmul.f32 %v309_v31, %v309_v31 }
 0x17d   : > { %v310_v36 = vsub.f32 %v295_v25, %v307_v33  ;;  %v311_v37 = vsub.f32 %v297_v26, %v307_v33  ;;  %v316_v38 = vadd.f32 %v313_v35, %v312_v34 }
 0x17f   : > { %317 = vadd.xlane.f32.xlu0 %v316_v38  ;;  %v314_v39 = vmul.f32 %v310_v36, %v310_v36  ;;  %v315_v40 = vmul.f32 %v311_v37, %v311_v37 }
 0x181   : > { %v319_v41 = vadd.f32 %v315_v40, %v314_v39 }
 0x183   : > { %320 = vadd.xlane.f32.xlu1 %v319_v41 }
 0x208   : > { %v318_v42 = vpop.xlane.xlu0 %317 }
 0x209   : > { %v322_v43 = vmul.f32 0.00390625, %v318_v42 }
 0x20b   : > { %v324_v44 = vadd.f32 1e-05, %v322_v43 }
 0x20c   : > { %v321_v45 = vpop.xlane.xlu1 %320 }
 0x20d   : > { %445 = vrsqrt.f32 %v324_v44  ;;  %v323_v46 = vmul.f32 0.00390625, %v321_v45 }
 0x20f   : > { %v325_v47 = vadd.f32 1e-05, %v323_v46 }
 0x211   : > { %447 = vrsqrt.f32 %v325_v47 }
 0x21a   : > { %v446_v48 = vpop.eup %445 }
 0x21b   : > { %v328_v49 = vmul.f32 %v446_v48, %v308_v30  ;;  %v329_v50 = vmul.f32 %v446_v48, %v309_v31 }
 0x21d   : > { %v332_v51 = vmax.f32 %v328_v49, 0.0  ;;  %v333_v52 = vmax.f32 %v329_v50, 0.0 }
 0x21e   : > { %v448_v53 = vpop.eup %447 }
 0x21f   : > { %336 = vst [vmem:[%s170_s27] sm:$0xff] %v332_v51  ;;  %337 = vst [vmem:[%s170_s27 + $0x8] sm:$0xff] %v333_v52  ;;  %v330_v54 = vmul.f32 %v448_v53, %v310_v36  ;;  %v331_v55 = vmul.f32 %v448_v53, %v311_v37 }
 0x221   : > { %v334_v56 = vmax.f32 %v330_v54, 0.0  ;;  %v335_v57 = vmax.f32 %v331_v55, 0.0 }
 0x223   : > { %338 = vst [vmem:[%s170_s27 + $0x10] sm:$0xff] %v334_v56  ;;  %339 = vst [vmem:[%s170_s27 + $0x18] sm:$0xff] %v335_v57 }
 0x224 PF: > { %s13_s12 = sadd.s32 1, %s455_s12  }
 0x225   : > { %p10_p4 = scmp.ge.s32.totalorder %s13_s12, 4  }
 0x227   :  { %12 = sbr.rel (!%p10_p4) target bundleno = 1 (0x1), region = 62 }

// kernel: styled_generator_forward.9
= control target key start
LH: loop header
LB: loop body
LE: loop exit
PB: predicated region body
PF: predicated region fallthrough
CT: control target
= control target key end

     0   :  { %s571_s12 = smov 0   ;;  %s639_s0 = inlined_call_operand.vmem [shape: bf16[32,144], index: 0, kind: input, shape index: {}]   ;;  %s640_s1 = inlined_call_operand.vmem [shape: bf16[2,144,64], index: 1, kind: input, shape index: {}]   ;;  %s641_s2 = inlined_call_operand.vmem [shape: f32[32,1], index: 2, kind: input, shape index: {}]   ;;  %s642_s3 = inlined_call_operand.vmem [shape: f32[2,32,64], index: 3, kind: output, shape index: {}]  }
   0x1 LB: > { %s463_s13 = sadd.s32 4294967295, %s548_s12   ;;  %p467_p0 = scmp.ge.s32.totalorder %s548_s12, 1  ;;  %s548_s12 = sphi %s571_s12, %s13_s12  }
   0x2   : > { %p137_p1 = scmp.lt.s32.totalorder %s548_s12, 3 }
   0x4   : > { %p138_p2 = pnand %p467_p0, %p137_p1 }
   0x5   : > { %p161_p3 = scmp.lt.s32.totalorder (!%p138_p2), %s463_s13, 1 }
   0x6   : > { %141 = sbr.rel (%p138_p2) target bundleno = 561 (0x231), region = 32 }
   0xb   : > { %v550_v0 = vmov 0   ;;  %v530_v1 = vld [vmem:[%s639_s0 + $0x4] ss:$8 sps:$4 sm:$0xff]   ;;  %vm290_vm0 = vcmask 130048   ;;  %s644_s13 = smov (!%p161_p3, %s463_s13), 1  ;;  %v196_v4 = vld [vmem:[%s641_s2 + $0x10] sm:$0xff] }
   0xc   : > { %297 = vmatprep.subr.bf16.mxu0 %v550_v0  ;;  %489 = vmatprep.subr.bf16.mxu1 %v550_v0  ;;  %v533_v2 = vld [vmem:[%s639_s0 + $0x14] ss:$8 sps:$4 sm:$0xff]   ;;  %v194_v3 = vld [vmem:[%s641_s2] sm:$0xff]  ;;  %s507_s22 = smul.u32 72, %s644_s13  ;;  %v195_v5 = vld [vmem:[%s641_s2 + $0x8] sm:$0xff]  ;;  %vm346_vm1 = vcmask 523264  }
   0xd   : > { %517 = vset.pattern.permute.xlu0 %v550_v0  ;;  %518 = vset.pattern.permute.xlu1 %v550_v0  ;;  %v197_v6 = vld [vmem:[%s641_s2 + $0x18] sm:$0xff]  ;;  %v528_v16 = vld [vmem:[%s639_s0] ss:$8 sps:$4 sm:$0xff]   ;;  %s488_s7 = sshll.u32 %s644_s13, 5 }
   0xe   : > { %484 = vmatprep.mubr.msk.bf16.mxu0 %vm290_vm0, %v530_v1  ;;  %200 = vperm.xlu0 %517, %v194_v3   ;;  %s603_s29 = scalar_lea.vmem %s640_s1, %s507_s22  ;;  %v531_v17 = vld [vmem:[%s639_s0 + $0x10] ss:$8 sps:$4 sm:$0xff]   ;;  %s170_s10 = scalar_lea.vmem %s642_s3, %s488_s7 }
   0xf   : > { %485 = vmatprep.mubr.msk.bf16.mxu1 %vm290_vm0, %v533_v2  ;;  %210 = vperm.xlu1 %518, %v196_v4   ;;  %v519_v7 = vld [vmem:[%s603_s29 + $0x38] sm:$0xff]   ;;  %v520_v8 = vld [vmem:[%s603_s29 + $0x30] sm:$0xff]   ;;  %v521_v9 = vld [vmem:[%s603_s29 + $0x28] sm:$0xff]  }
  0x10   : > { %298 = vmatpush1.bf16.msra.mxu0 %v519_v7  ;;  %498 = vmatpush1.bf16.msra.mxu1 %v519_v7  ;;  %v522_v10 = vld [vmem:[%s603_s29 + $0x20] sm:$0xff]   ;;  %v523_v11 = vld [vmem:[%s603_s29 + $0x18] sm:$0xff]   ;;  %v524_v12 = vld [vmem:[%s603_s29 + $0x10] sm:$0xff]  }
  0x11   : > { %299 = vmatprep.subr.bf16.mxu0 %v550_v0  ;;  %490 = vmatprep.subr.bf16.mxu1 %v550_v0  ;;  %v525_v13 = vld [vmem:[%s603_s29 + $0x8] sm:$0xff]   ;;  %v526_v14 = vld [vmem:[%s603_s29] sm:$0xff]  }
  0x12   : > { %205 = vperm.xlu0 %517, %v195_v5   ;;  %v527_v15 = vld [vmem:[%s603_s29 + $0x40] sm:$0xff]  }
  0x13   : > { %215 = vperm.xlu1 %518, %v197_v6  }
  0x14   : > { %300 = vmatpush1.bf16.msra.mxu0 %v520_v8  ;;  %499 = vmatpush1.bf16.msra.mxu1 %v520_v8 }
  0x15   : > { %301 = vmatprep.subr.bf16.mxu0 %v550_v0  ;;  %491 = vmatprep.subr.bf16.mxu1 %v550_v0 }
  0x18   : > { %302 = vmatpush1.bf16.msra.mxu0 %v521_v9  ;;  %500 = vmatpush1.bf16.msra.mxu1 %v521_v9 }
  0x19   : > { %303 = vmatprep.subr.bf16.mxu0 %v550_v0  ;;  %492 = vmatprep.subr.bf16.mxu1 %v550_v0 }
  0x1c   : > { %304 = vmatpush1.bf16.msra.mxu0 %v522_v10  ;;  %501 = vmatpush1.bf16.msra.mxu1 %v522_v10 }
  0x1d   : > { %305 = vmatprep.subr.bf16.mxu0 %v550_v0  ;;  %493 = vmatprep.subr.bf16.mxu1 %v550_v0 }
  0x20   : > { %306 = vmatpush1.bf16.msra.mxu0 %v523_v11  ;;  %502 = vmatpush1.bf16.msra.mxu1 %v523_v11 }
  0x21   : > { %307 = vmatprep.subr.bf16.mxu0 %v550_v0  ;;  %494 = vmatprep.subr.bf16.mxu1 %v550_v0 }
  0x24   : > { %308 = vmatpush1.bf16.msra.mxu0 %v524_v12  ;;  %503 = vmatpush1.bf16.msra.mxu1 %v524_v12 }
  0x25   : > { %309 = vmatprep.subr.bf16.mxu0 %v550_v0  ;;  %495 = vmatprep.subr.bf16.mxu1 %v550_v0 }
  0x28   : > { %310 = vmatpush1.bf16.msra.mxu0 %v525_v13  ;;  %504 = vmatpush1.bf16.msra.mxu1 %v525_v13 }
  0x29   : > { %311 = vmatprep.subr.bf16.mxu0 %v550_v0  ;;  %496 = vmatprep.subr.bf16.mxu1 %v550_v0 }
  0x2c   : > { %312 = vmatpush1.bf16.msra.mxu0 %v526_v14  ;;  %505 = vmatpush1.bf16.msra.mxu1 %v526_v14 }
  0x2d   : > { %327 = vmatprep.subr.bf16.mxu0 %v550_v0  ;;  %497 = vmatprep.subr.bf16.mxu1 %v550_v0 }
  0x30   : > { %328 = vmatpush2.bf16.msra.mxu0 %v527_v15  ;;  %506 = vmatpush2.bf16.msra.mxu1 %v527_v15 }
  0x33   : > { %330 = vmatmul.mubr.bf16.vlgmr.msra.gmra.mxu0 %v528_v16  ;;  %338 = vmatmul.mubr.bf16.vlgmr.msra.gmra.mxu1 %v531_v17 }
  0x89   : > { %v201_v18 = vpop.permute.xlu0 %200 }
  0x8a   : > { %v211_v19 = vpop.permute.xlu1 %210 }
  0x8d   : > { %v206_v26 = vpop.permute.xlu0 %205 }
  0x8e   : > { %v216_v27 = vpop.permute.xlu1 %215 }
  0xf3   : > { %v331_v20 = vpop.f32.mrf.mxu0  ;;  %v339_v21 = vpop.f32.mrf.mxu1 }
  0xf4   : > { %v332_v22 = vadd.f32 %v331_v20, %v201_v18  ;;  %v340_v23 = vadd.f32 %v339_v21, %v211_v19 }
  0xf5   : > { %v333_v24 = vpop.f32.mrf.mxu0  ;;  %v341_v25 = vpop.f32.mrf.mxu1 }
  0xf6   : > { %v347_v28 = vsel %vm346_vm1, %v332_v22, 0.0  ;;  %v353_v32 = vsel %vm346_vm1, %v340_v23, 0.0 }
  0xf7   : > { %v334_v29 = vpop.f32.mrf.mxu0  ;;  %v342_v30 = vpop.f32.mrf.mxu1  ;;  %348 = vadd.xlane.f32.xlu0 %v347_v28 }
  0xf8   : > { %v335_v31 = vadd.f32 %v334_v29, %v206_v26  ;;  %v343_v35 = vadd.f32 %v342_v30, %v216_v27 }
  0xf9   : > { %v336_v33 = vpop.f32.mrf.mxu0  ;;  %v344_v34 = vpop.f32.mrf.mxu1 }
  0xfa   : > { %v350_v36 = vsel %vm346_vm1, %v335_v31, 0.0  ;;  %v356_v37 = vsel %vm346_vm1, %v343_v35, 0.0 }
  0xfb   : > { %351 = vadd.xlane.f32.xlu1 %v350_v36  ;;  %354 = vadd.xlane.f32.xlu0 %v353_v32 }
  0xff   : > { %357 = vadd.xlane.f32.xlu0 %v356_v37 }
 0x180   : > { %v349_v38 = vpop.xlane.xlu0 %348 }
 0x181   : > { %v360_v39 = vmul.f32 0.015625, %v349_v38 }
 0x183   : > { %v364_v40 = vsub.f32 %v332_v22, %v360_v39 }
 0x184   : > { %v352_v41 = vpop.xlane.xlu1 %351  ;;  %v355_v42 = vpop.xlane.xlu0 %354 }
 0x185   : > { %v361_v43 = vmul.f32 0.015625, %v352_v41  ;;  %v362_v44 = vmul.f32 0.015625, %v355_v42  ;;  %v368_v45 = vmul.f32 %v364_v40, %v364_v40 }
 0x187   : > { %v365_v46 = vsub.f32 %v335_v31, %v361_v43  ;;  %v366_v47 = vsub.f32 %v340_v23, %v362_v44  ;;  %v372_v48 = vsel %vm346_vm1, %v368_v45, 0.0 }
 0x188   : > { %373 = vadd.xlane.f32.xlu1 %v372_v48  ;;  %v358_v49 = vpop.xlane.xlu0 %357 }
 0x189   : > { %v363_v50 = vmul.f32 0.015625, %v358_v49  ;;  %v369_v51 = vmul.f32 %v365_v46, %v365_v46  ;;  %v370_v52 = vmul.f32 %v366_v47, %v366_v47 }
 0x18b   : > { %v367_v53 = vsub.f32 %v343_v35, %v363_v50  ;;  %v375_v54 = vsel %vm346_vm1, %v369_v51, 0.0  ;;  %v378_v55 = vsel %vm346_vm1, %v370_v52, 0.0 }
 0x18c   : > { %376 = vadd.xlane.f32.xlu0 %v375_v54  ;;  %379 = vadd.xlane.f32.xlu1 %v378_v55 }
 0x18d   : > { %v371_v56 = vmul.f32 %v367_v53, %v367_v53 }
 0x18f   : > { %v381_v57 = vsel %vm346_vm1, %v371_v56, 0.0 }
 0x190   : > { %382 = vadd.xlane.f32.xlu0 %v381_v57 }
 0x211   : > { %v374_v58 = vpop.xlane.xlu1 %373 }
 0x212   : > { %v384_v59 = vmul.f32 0.015625, %v374_v58 }
 0x214   : > { %v388_v60 = vadd.f32 1e-05, %v384_v59 }
 0x215   : > { %v380_v61 = vpop.xlane.xlu1 %379  ;;  %v377_v62 = vpop.xlane.xlu0 %376 }
 0x216   : > { %534 = vrsqrt.f32 %v388_v60  ;;  %v386_v63 = vmul.f32 0.015625, %v380_v61  ;;  %v385_v0 = vmul.f32 0.015625, %v377_v62 }
 0x218   : > { %v390_v1 = vadd.f32 1e-05, %v386_v63  ;;  %v389_v2 = vadd.f32 1e-05, %v385_v0 }
 0x219   : > { %v383_v3 = vpop.xlane.xlu0 %382 }
 0x21a   : > { %536 = vrsqrt.f32 %v390_v1  ;;  %v387_v4 = vmul.f32 0.015625, %v383_v3 }
 0x21b   : > { %538 = vrsqrt.f32 %v389_v2 }
 0x21c   : > { %v391_v5 = vadd.f32 1e-05, %v387_v4 }
 0x21e   : > { %540 = vrsqrt.f32 %v391_v5 }
 0x223   : > { %v535_v6 = vpop.eup %534 }
 0x224   : > { %v396_v7 = vmul.f32 %v535_v6, %v364_v40 }
 0x226   : > { %v400_v8 = vmax.f32 %v396_v7, 0.0 }
 0x227   : > { %v537_v9 = vpop.eup %536 }
 0x228   : > { %v539_v10 = vpop.eup %538  ;;  %404 = vst.msk [vmem:[%s170_s10] sm:$0xff] %vm346_vm1, %v400_v8  ;;  %v398_v11 = vmul.f32 %v537_v9, %v366_v47 }
 0x229   : > { %v397_v12 = vmul.f32 %v539_v10, %v365_v46 }
 0x22a   : > { %v402_v13 = vmax.f32 %v398_v11, 0.0 }
 0x22b   : > { %v541_v14 = vpop.eup %540  ;;  %v401_v15 = vmax.f32 %v397_v12, 0.0 }
 0x22c   : > { %406 = vst.msk [vmem:[%s170_s10 + $0x10] sm:$0xff] %vm346_vm1, %v402_v13  ;;  %v399_v16 = vmul.f32 %v541_v14, %v367_v53 }
 0x22d   : > { %405 = vst.msk [vmem:[%s170_s10 + $0x8] sm:$0xff] %vm346_vm1, %v401_v15 }
 0x22e   : > { %v403_v17 = vmax.f32 %v399_v16, 0.0 }
 0x230   : > { %407 = vst.msk [vmem:[%s170_s10 + $0x18] sm:$0xff] %vm346_vm1, %v403_v17 }
 0x231 PF: > { %s13_s12 = sadd.s32 1, %s548_s12  }
 0x232   : > { %p10_p4 = scmp.ge.s32.totalorder %s13_s12, 4  }
 0x234   :  { %12 = sbr.rel (!%p10_p4) target bundleno = 1 (0x1), region = 62 }

// kernel: styled_generator_forward.10
= control target key start
LH: loop header
LB: loop body
LE: loop exit
PB: predicated region body
PF: predicated region fallthrough
CT: control target
= control target key end

     0   :  { %v2690_v22 = vmov 1966171168   ;;  %v292_v24 = vlaneseq  ;;  %vm1768_vm0 = vcmask 261120   ;;  %s3350_s1 = inlined_call_operand.vmem [shape: bf16[2048,32], index: 1, kind: input, shape index: {}]   ;;  %s3351_s0 = inlined_call_operand.vmem [shape: bf16[2,2048], index: 0, kind: input, shape index: {}]   ;;  %s3352_s3 = inlined_call_operand.vmem [shape: bf16[32,2048], index: 3, kind: input, shape index: {}]   ;;  %s3353_s2 = inlined_call_operand.vmem [shape: f32[1,32], index: 2, kind: input, shape index: {}]   ;;  %s3354_s4 = inlined_call_operand.vmem [shape: f32[1,2048], index: 4, kind: input, shape index: {}]   ;;  %s3355_s5 = inlined_call_operand.vmem [shape: f32[2,2048], index: 5, kind: output, shape index: {}]  }
   0x1   :  { %v2560_v0 = vld [vmem:[%s3350_s1 + $0x78] sm:$0xff]   ;;  %v2564_v4 = vld [vmem:[%s3350_s1 + $0x70] sm:$0xff]   ;;  %v2568_v8 = vld [vmem:[%s3350_s1 + $0x68] sm:$0xff]   ;;  %v290_v23 = vunpack.c.l.s4 %v2690_v22 }
   0x2   :  { %v2561_v1 = vld [vmem:[%s3350_s1 + $0xf8] sm:$0xff]   ;;  %2381 = vmatprep.subr.bf16.mxu0 %v2560_v0  ;;  %v2565_v5 = vld [vmem:[%s3350_s1 + $0xf0] sm:$0xff]   ;;  %v2569_v9 = vld [vmem:[%s3350_s1 + $0xe8] sm:$0xff]   ;;  %v2801_v30 = vshrl.u32 %v292_v24, 7 }
   0x3   :  { %v2562_v2 = vld [vmem:[%s3350_s1 + $0x38] sm:$0xff]   ;;  %2403 = vmatprep.subr.bf16.mxu1 %v2561_v1  ;;  %v2566_v6 = vld [vmem:[%s3350_s1 + $0x30] sm:$0xff]   ;;  %v2570_v10 = vld [vmem:[%s3350_s1 + $0x28] sm:$0xff]   ;;  %v291_v29 = vunpack.c.0.s8 %v290_v23 }
   0x4   :  { %v2563_v3 = vld [vmem:[%s3350_s1 + $0xb8] sm:$0xff]   ;;  %2382 = vmatpush3.bf16.msra.mxu0 %v2562_v2  ;;  %v2567_v7 = vld [vmem:[%s3350_s1 + $0xb0] sm:$0xff]   ;;  %v2571_v11 = vld [vmem:[%s3350_s1 + $0xa8] sm:$0xff]  }
   0x5   :  { %2404 = vmatpush3.bf16.msra.mxu1 %v2563_v3  ;;  %2383 = vmatprep.subr.bf16.mxu0 %v2564_v4  ;;  %v2572_v12 = vld [vmem:[%s3350_s1 + $0x60] sm:$0xff]   ;;  %v2576_v16 = vld [vmem:[%s3350_s1 + $0x58] sm:$0xff]   ;;  %v2580_v20 = vld [vmem:[%s3350_s1 + $0x50] sm:$0xff]   ;;  %v2816_v35 = vsub.s32 %v291_v29, %v2801_v30 }
   0x6   :  { %2405 = vmatprep.subr.bf16.mxu1 %v2565_v5  ;;  %v2573_v13 = vld [vmem:[%s3350_s1 + $0xe0] sm:$0xff]   ;;  %v2577_v17 = vld [vmem:[%s3350_s1 + $0xd8] sm:$0xff]   ;;  %v2581_v21 = vld [vmem:[%s3350_s1 + $0xd0] sm:$0xff]  }
   0x7   :  { %v2574_v14 = vld [vmem:[%s3350_s1 + $0x20] sm:$0xff]   ;;  %v2578_v18 = vld [vmem:[%s3350_s1 + $0x18] sm:$0xff]   ;;  %v2582_v25 = vld [vmem:[%s3350_s1 + $0x10] sm:$0xff]  }
   0x8   :  { %2384 = vmatpush3.bf16.msra.mxu0 %v2566_v6  ;;  %v2575_v15 = vld [vmem:[%s3350_s1 + $0xa0] sm:$0xff]   ;;  %v2579_v19 = vld [vmem:[%s3350_s1 + $0x98] sm:$0xff]   ;;  %v2583_v26 = vld [vmem:[%s3350_s1 + $0x90] sm:$0xff]  }
   0x9   :  { %2406 = vmatpush3.bf16.msra.mxu1 %v2567_v7  ;;  %2385 = vmatprep.subr.bf16.mxu0 %v2568_v8  ;;  %v2584_v27 = vld [vmem:[%s3350_s1 + $0x48] sm:$0xff]   ;;  %v2588_v33 = vld [vmem:[%s3350_s1 + $0x40] sm:$0xff]   ;;  %v2594_v41 = vld [vmem:[%s3350_s1 + $0x178] sm:$0xff]  }
   0xa   :  { %2407 = vmatprep.subr.bf16.mxu1 %v2569_v9  ;;  %v2585_v28 = vld [vmem:[%s3350_s1 + $0xc8] sm:$0xff]   ;;  %v2589_v34 = vld [vmem:[%s3350_s1 + $0xc0] sm:$0xff]   ;;  %v2595_v42 = vld [vmem:[%s3350_s1 + $0x1f8] sm:$0xff]  }
   0xb   :  { %v2586_v31 = vld [vmem:[%s3350_s1 + $0x8] sm:$0xff]   ;;  %v2590_v36 = vld [vmem:[%s3350_s1] sm:$0xff]   ;;  %v2596_v47 = vld [vmem:[%s3350_s1 + $0x138] sm:$0xff]  }
   0xc   :  { %2386 = vmatpush3.bf16.msra.mxu0 %v2570_v10  ;;  %v2587_v32 = vld [vmem:[%s3350_s1 + $0x88] sm:$0xff]   ;;  %v2591_v37 = vld [vmem:[%s3350_s1 + $0x80] sm:$0xff]   ;;  %v2598_v50 = vld [vmem:[%s3350_s1 + $0x170] sm:$0xff]  }
   0xd   :  { %2408 = vmatpush3.bf16.msra.mxu1 %v2571_v11  ;;  %2387 = vmatprep.subr.bf16.mxu0 %v2572_v12  ;;  %v21_v38 = vld [vmem:[%s3351_s0] sm:$0xff]  ;;  %v2597_v52 = vld [vmem:[%s3350_s1 + $0x1b8] sm:$0xff]   ;;  %v2599_v54 = vld [vmem:[%s3350_s1 + $0x1f0] sm:$0xff]  }
   0xe   :  { %2409 = vmatprep.subr.bf16.mxu1 %v2573_v13  ;;  %v288_v39 = vcombine.high %v21_v38, %v21_v38  ;;  %v295_v40 = vrot.slane %v21_v38, %v2816_v35  ;;  %v2600_v55 = vld [vmem:[%s3350_s1 + $0x130] sm:$0xff]   ;;  %v2602_v57 = vld [vmem:[%s3350_s1 + $0x168] sm:$0xff]   ;;  %v2606_v61 = vld [vmem:[%s3350_s1 + $0x160] sm:$0xff]  }
   0xf   :  { %v2601_v58 = vld [vmem:[%s3350_s1 + $0x1b0] sm:$0xff]   ;;  %v2603_v59 = vld [vmem:[%s3350_s1 + $0x1e8] sm:$0xff]   ;;  %v2607_v63 = vld [vmem:[%s3350_s1 + $0x1e0] sm:$0xff]  }
  0x10   :  { %2388 = vmatpush3.bf16.msra.mxu0 %v2574_v14  ;;  %v303_v43 = vcombine.high %v295_v40, %v295_v40  ;;  %v311_v44 = vrot.slane %v295_v40, %v2816_v35  ;;  %v2836_v45 = vrot.slane %v288_v39, %v2816_v35  ;;  %v2604_v60 = vld [vmem:[%s3350_s1 + $0x128] sm:$0xff]   ;;  %v2608_v0 = vld [vmem:[%s3350_s1 + $0x120] sm:$0xff]   ;;  %v2610_v1 = vld [vmem:[%s3350_s1 + $0x158] sm:$0xff]  }
  0x11   :  { %2410 = vmatpush3.bf16.msra.mxu1 %v2575_v15  ;;  %2389 = vmatprep.subr.bf16.mxu0 %v2576_v16  ;;  %v2605_v62 = vld [vmem:[%s3350_s1 + $0x1a8] sm:$0xff]   ;;  %v2609_v2 = vld [vmem:[%s3350_s1 + $0x1a0] sm:$0xff]   ;;  %v2611_v3 = vld [vmem:[%s3350_s1 + $0x1d8] sm:$0xff]  }
  0x12   :  { %2411 = vmatprep.subr.bf16.mxu1 %v2577_v17  ;;  %v325_v46 = vrot.slane %v303_v43, %v2816_v35  ;;  %v304_v48 = vcombine.high %v2836_v45, %v2836_v45  ;;  %v333_v49 = vcombine.high %v311_v44, %v311_v44  ;;  %v2612_v4 = vld [vmem:[%s3350_s1 + $0x118] sm:$0xff]   ;;  %v2896_v5 = vld [vmem:[%s3351_s0 + $0x8] sm:$0xff]  ;;  %v2614_v6 = vld [vmem:[%s3350_s1 + $0x150] sm:$0xff]  }
  0x13   :  { %v2613_v7 = vld [vmem:[%s3350_s1 + $0x198] sm:$0xff]   ;;  %v2615_v8 = vld [vmem:[%s3350_s1 + $0x1d0] sm:$0xff]   ;;  %v2618_v10 = vld [vmem:[%s3350_s1 + $0x148] sm:$0xff]   ;;  %v2918_v12 = vrot.slane %v2896_v5, %v2816_v35 }
  0x14   :  { %2390 = vmatpush3.bf16.msra.mxu0 %v2578_v18  ;;  %1202 = vmatprep.mubr.bf16.mxu0 %v325_v46  ;;  %v335_v51 = vcombine.high %v325_v46, %v325_v46  ;;  %v332_v53 = vrot.slane %v304_v48, %v2816_v35  ;;  %v2616_v9 = vld [vmem:[%s3350_s1 + $0x110] sm:$0xff]   ;;  %v2619_v13 = vld [vmem:[%s3350_s1 + $0x1c8] sm:$0xff]   ;;  %v2622_v15 = vld [vmem:[%s3350_s1 + $0x140] sm:$0xff]  }
  0x15   :  { %2412 = vmatpush3.bf16.msra.mxu1 %v2579_v19  ;;  %2391 = vmatprep.subr.bf16.mxu0 %v2580_v20  ;;  %v2617_v11 = vld [vmem:[%s3350_s1 + $0x190] sm:$0xff]   ;;  %v2620_v14 = vld [vmem:[%s3350_s1 + $0x108] sm:$0xff]   ;;  %v352_v17 = vcombine.high %v2918_v12, %v2918_v12  ;;  %v2623_v18 = vld [vmem:[%s3350_s1 + $0x1c0] sm:$0xff]   ;;  %v318_v20 = vrot.slane %v2836_v45, %v2816_v35 }
  0x16   :  { %2413 = vmatprep.subr.bf16.mxu1 %v2581_v21  ;;  %1242 = vmatprep.mubr.bf16.mxu1 %v335_v51  ;;  %v336_v56 = vcombine.high %v332_v53, %v332_v53  ;;  %v2621_v16 = vld [vmem:[%s3350_s1 + $0x188] sm:$0xff]   ;;  %v2624_v19 = vld [vmem:[%s3350_s1 + $0x100] sm:$0xff]   ;;  %v2626_v21 = vld [vmem:[%s3350_s1 + $0x278] sm:$0xff]  }
  0x17   :  { %v2625_v22 = vld [vmem:[%s3350_s1 + $0x180] sm:$0xff]   ;;  %v374_v23 = vrot.slane %v352_v17, %v2816_v35  ;;  %v2627_v24 = vld [vmem:[%s3350_s1 + $0x2f8] sm:$0xff]   ;;  %v2637_v39 = vld [vmem:[%s3350_s1 + $0x2a8] sm:$0xff]  }
  0x18   :  { %2392 = vmatpush3.bf16.msra.mxu0 %v2582_v25  ;;  %v2628_v25 = vld [vmem:[%s3350_s1 + $0x238] sm:$0xff]   ;;  %v2638_v38 = vld [vmem:[%s3350_s1 + $0x260] sm:$0xff]   ;;  %v2646_v46 = vld [vmem:[%s3350_s1 + $0x250] sm:$0xff]  }
  0x19   :  { %2414 = vmatpush3.bf16.msra.mxu1 %v2583_v26  ;;  %2393 = vmatprep.subr.bf16.mxu0 %v2584_v27  ;;  %v334_v26 = vcombine.high %v318_v20, %v318_v20  ;;  %v2630_v27 = vld [vmem:[%s3350_s1 + $0x270] sm:$0xff]   ;;  %v384_v29 = vcombine.high %v374_v23, %v374_v23  ;;  %v2639_v40 = vld [vmem:[%s3350_s1 + $0x2e0] sm:$0xff]   ;;  %v2644_v45 = vld [vmem:[%s3350_s1 + $0x218] sm:$0xff]  }
  0x1a   :  { %2415 = vmatprep.subr.bf16.mxu1 %v2585_v28  ;;  %v2629_v28 = vld [vmem:[%s3350_s1 + $0x2b8] sm:$0xff]   ;;  %v2641_v43 = vld [vmem:[%s3350_s1 + $0x2a0] sm:$0xff]   ;;  %v2650_v51 = vld [vmem:[%s3350_s1 + $0x248] sm:$0xff]  }
  0x1b   :  { %v2645_v48 = vld [vmem:[%s3350_s1 + $0x298] sm:$0xff]  }
  0x1c   :  { %2394 = vmatpush3.bf16.msra.mxu0 %v2586_v31  ;;  %v2631_v31 = vld [vmem:[%s3350_s1 + $0x2f0] sm:$0xff]   ;;  %v2674_v17 = vld [vmem:[%s3350_s1 + $0x358] sm:$0xff]  }
  0x1d   :  { %2416 = vmatpush3.bf16.msra.mxu1 %v2587_v32  ;;  %2395 = vmatprep.subr.bf16.mxu0 %v2588_v33  ;;  %v2632_v32 = vld [vmem:[%s3350_s1 + $0x230] sm:$0xff]   ;;  %v2634_v33 = vld [vmem:[%s3350_s1 + $0x268] sm:$0xff]  }
  0x1e   :  { %2417 = vmatprep.subr.bf16.mxu1 %v2589_v34  ;;  %v2633_v34 = vld [vmem:[%s3350_s1 + $0x2b0] sm:$0xff]  }
  0x20   :  { %2396 = vmatpush3.bf16.msra.mxu0 %v2590_v36  ;;  %v2635_v36 = vld [vmem:[%s3350_s1 + $0x2e8] sm:$0xff]  }
  0x21   :  { %2418 = vmatpush3.bf16.msra.mxu1 %v2591_v37  ;;  %2425 = vmatprep.subr.bf16.mxu0 %v2594_v41  ;;  %v2636_v37 = vld [vmem:[%s3350_s1 + $0x228] sm:$0xff]   ;;  %v2640_v41 = vld [vmem:[%s3350_s1 + $0x220] sm:$0xff]  }
  0x22   :  { %2447 = vmatprep.subr.bf16.mxu1 %v2595_v42  ;;  %v2642_v42 = vld [vmem:[%s3350_s1 + $0x258] sm:$0xff]  }
  0x23   :  { %1203 = vmatmul.mubr.bf16.vlgmr.msra.gmra.mxu0 %v311_v44  ;;  %v2643_v44 = vld [vmem:[%s3350_s1 + $0x2d8] sm:$0xff]  }
  0x24   :  { %2426 = vmatpush3.bf16.msra.mxu0 %v2596_v47  ;;  %1243 = vmatmul.mubr.bf16.vlgmr.msra.gmra.mxu1 %v333_v49  ;;  %v337_v47 = vcombine.high %v2896_v5, %v2896_v5  ;;  %v2647_v49 = vld [vmem:[%s3350_s1 + $0x2d0] sm:$0xff]   ;;  %v2661_v5 = vld [vmem:[%s3350_s1 + $0x3b8] sm:$0xff]  }
  0x25   :  { %2427 = vmatprep.subr.bf16.mxu0 %v2598_v50  ;;  %2448 = vmatpush3.bf16.msra.mxu1 %v2597_v52  ;;  %v2648_v50 = vld [vmem:[%s3350_s1 + $0x210] sm:$0xff]  }
  0x26   :  { %1282 = vmatprep.mubr.bf16.mxu0 %v332_v53  ;;  %2449 = vmatprep.subr.bf16.mxu1 %v2599_v54  ;;  %v2649_v52 = vld [vmem:[%s3350_s1 + $0x290] sm:$0xff]   ;;  %v3024_v53 = vrot.slane %v337_v47, %v2816_v35  ;;  %v2651_v54 = vld [vmem:[%s3350_s1 + $0x2c8] sm:$0xff]  }
  0x27   :  { %1322 = vmatprep.mubr.bf16.mxu1 %v336_v56  ;;  %v2654_v56 = vld [vmem:[%s3350_s1 + $0x240] sm:$0xff]   ;;  %v1493_v47 = vld [vmem:[%s3352_s3 + $0x8] sm:$0xff] }
  0x28   :  { %2428 = vmatpush3.bf16.msra.mxu0 %v2600_v55  ;;  %v2652_v55 = vld [vmem:[%s3350_s1 + $0x208] sm:$0xff]  }
  0x29   :  { %2429 = vmatprep.subr.bf16.mxu0 %v2602_v57  ;;  %2450 = vmatpush3.bf16.msra.mxu1 %v2601_v58  ;;  %v2653_v57 = vld [vmem:[%s3350_s1 + $0x288] sm:$0xff]   ;;  %v353_v58 = vcombine.high %v3024_v53, %v3024_v53 }
  0x2a   :  { %2451 = vmatprep.subr.bf16.mxu1 %v2603_v59  ;;  %v2655_v59 = vld [vmem:[%s3350_s1 + $0x2c0] sm:$0xff]  }
  0x2c   :  { %2430 = vmatpush3.bf16.msra.mxu0 %v2604_v60  ;;  %v2656_v60 = vld [vmem:[%s3350_s1 + $0x200] sm:$0xff]  }
  0x2d   :  { %2431 = vmatprep.subr.bf16.mxu0 %v2606_v61  ;;  %2452 = vmatpush3.bf16.msra.mxu1 %v2605_v62  ;;  %v360_v61 = vrot.slane %v2918_v12, %v2816_v35  ;;  %v2658_v62 = vld [vmem:[%s3350_s1 + $0x378] sm:$0xff]   ;;  %v2668_v12 = vld [vmem:[%s3350_s1 + $0x328] sm:$0xff]  }
  0x2e   :  { %2453 = vmatprep.subr.bf16.mxu1 %v2607_v63  ;;  %v2657_v63 = vld [vmem:[%s3350_s1 + $0x280] sm:$0xff]  }
  0x30   :  { %2432 = vmatpush3.bf16.msra.mxu0 %v2608_v0  ;;  %v381_v0 = vrot.slane %v353_v58, %v2816_v35  ;;  %v3196_v58 = vld [vmem:[%s3352_s3 + $0xd8] sm:$0xff] }
  0x31   :  { %2433 = vmatprep.subr.bf16.mxu0 %v2610_v1  ;;  %2454 = vmatpush3.bf16.msra.mxu1 %v2609_v2  ;;  %v2659_v1 = vld [vmem:[%s3350_s1 + $0x3f8] sm:$0xff]  }
  0x32   :  { %2455 = vmatprep.subr.bf16.mxu1 %v2611_v3  ;;  %v2660_v2 = vld [vmem:[%s3350_s1 + $0x338] sm:$0xff]   ;;  %v382_v3 = vcombine.high %v360_v61, %v360_v61 }
  0x34   :  { %2434 = vmatpush3.bf16.msra.mxu0 %v2612_v4  ;;  %v2662_v4 = vld [vmem:[%s3350_s1 + $0x370] sm:$0xff]  }
  0x35   :  { %2435 = vmatprep.subr.bf16.mxu0 %v2614_v6  ;;  %2456 = vmatpush3.bf16.msra.mxu1 %v2613_v7  ;;  %v385_v6 = vcombine.high %v381_v0, %v381_v0  ;;  %v2663_v7 = vld [vmem:[%s3350_s1 + $0x3f0] sm:$0xff]  }
  0x36   :  { %2457 = vmatprep.subr.bf16.mxu1 %v2615_v8  ;;  %v2664_v8 = vld [vmem:[%s3350_s1 + $0x330] sm:$0xff]  }
  0x38   :  { %2436 = vmatpush3.bf16.msra.mxu0 %v2616_v9  ;;  %v2666_v9 = vld [vmem:[%s3350_s1 + $0x368] sm:$0xff]  }
  0x39   :  { %2437 = vmatprep.subr.bf16.mxu0 %v2618_v10  ;;  %2458 = vmatpush3.bf16.msra.mxu1 %v2617_v11  ;;  %v2665_v10 = vld [vmem:[%s3350_s1 + $0x3b0] sm:$0xff]   ;;  %v2667_v11 = vld [vmem:[%s3350_s1 + $0x3e8] sm:$0xff]  }
  0x3a   :  { %2459 = vmatprep.subr.bf16.mxu1 %v2619_v13  ;;  %v2670_v13 = vld [vmem:[%s3350_s1 + $0x360] sm:$0xff]  }
  0x3c   :  { %2438 = vmatpush3.bf16.msra.mxu0 %v2620_v14  ;;  %v2669_v14 = vld [vmem:[%s3350_s1 + $0x3a8] sm:$0xff]  }
  0x3d   :  { %2439 = vmatprep.subr.bf16.mxu0 %v2622_v15  ;;  %2460 = vmatpush3.bf16.msra.mxu1 %v2621_v16  ;;  %v2671_v15 = vld [vmem:[%s3350_s1 + $0x3e0] sm:$0xff]  }
  0x3e   :  { %2461 = vmatprep.subr.bf16.mxu1 %v2623_v18  ;;  %v2672_v16 = vld [vmem:[%s3350_s1 + $0x320] sm:$0xff]  }
  0x3f   :  { %v2673_v18 = vld [vmem:[%s3350_s1 + $0x3a0] sm:$0xff]  }
  0x40   :  { %2440 = vmatpush3.bf16.msra.mxu0 %v2624_v19  ;;  %v2675_v19 = vld [vmem:[%s3350_s1 + $0x3d8] sm:$0xff]  }
  0x41   :  { %2469 = vmatprep.subr.bf16.mxu0 %v2626_v21  ;;  %2462 = vmatpush3.bf16.msra.mxu1 %v2625_v22  ;;  %v2678_v21 = vld [vmem:[%s3350_s1 + $0x350] sm:$0xff]   ;;  %v2677_v22 = vld [vmem:[%s3350_s1 + $0x398] sm:$0xff]  }
  0x42   :  { %2491 = vmatprep.subr.bf16.mxu1 %v2627_v24  ;;  %v2680_v24 = vld [vmem:[%s3350_s1 + $0x310] sm:$0xff]  }
  0x43   :  { %1283 = vmatmul.mubr.bf16.vlgmr.msra.gmra.mxu0 %v318_v20  ;;  %v2676_v20 = vld [vmem:[%s3350_s1 + $0x318] sm:$0xff]  }
  0x44   :  { %2470 = vmatpush3.bf16.msra.mxu0 %v2628_v25  ;;  %1362 = vmatprep.mubr.bf16.mxu0 %v374_v23  ;;  %v2679_v23 = vld [vmem:[%s3350_s1 + $0x3d0] sm:$0xff]   ;;  %v2682_v25 = vld [vmem:[%s3350_s1 + $0x348] sm:$0xff]  }
  0x45   :  { %1323 = vmatmul.mubr.bf16.vlgmr.msra.gmra.mxu1 %v334_v26  ;;  %2471 = vmatprep.subr.bf16.mxu0 %v2630_v27  ;;  %v2681_v26 = vld [vmem:[%s3350_s1 + $0x390] sm:$0xff]   ;;  %v2683_v27 = vld [vmem:[%s3350_s1 + $0x3c8] sm:$0xff]  }
  0x46   :  { %2492 = vmatpush3.bf16.msra.mxu1 %v2629_v28  ;;  %1402 = vmatprep.mubr.bf16.mxu1 %v384_v29  ;;  %v2684_v28 = vld [vmem:[%s3350_s1 + $0x308] sm:$0xff]   ;;  %v2686_v29 = vld [vmem:[%s3350_s1 + $0x340] sm:$0xff]  }
  0x47   :  { %2493 = vmatprep.subr.bf16.mxu1 %v2631_v31  ;;  %v2685_v31 = vld [vmem:[%s3350_s1 + $0x388] sm:$0xff]  }
  0x48   :  { %2472 = vmatpush3.bf16.msra.mxu0 %v2632_v32  ;;  %v2687_v32 = vld [vmem:[%s3350_s1 + $0x3c0] sm:$0xff]  }
  0x49   :  { %2473 = vmatprep.subr.bf16.mxu0 %v2634_v33  ;;  %v2688_v33 = vld [vmem:[%s3350_s1 + $0x300] sm:$0xff]  }
  0x4a   :  { %2494 = vmatpush3.bf16.msra.mxu1 %v2633_v34  ;;  %v367_v34 = vrot.slane %v3024_v53, %v2816_v35  ;;  %v1509_v35 = vld [vmem:[%s3352_s3 + $0x88] sm:$0xff]  ;;  %v3177_v53 = vld [vmem:[%s3352_s3 + $0x90] sm:$0xff] }
  0x4b   :  { %2495 = vmatprep.subr.bf16.mxu1 %v2635_v36  ;;  %v2689_v36 = vld [vmem:[%s3350_s1 + $0x380] sm:$0xff]  }
  0x4c   :  { %2474 = vmatpush3.bf16.msra.mxu0 %v2636_v37  ;;  %v383_v37 = vcombine.high %v367_v34, %v367_v34 }
  0x4d   :  { %2475 = vmatprep.subr.bf16.mxu0 %v2638_v38  ;;  %v1508_v38 = vld [vmem:[%s3352_s3 + $0x80] sm:$0xff] }
  0x4e   :  { %2496 = vmatpush3.bf16.msra.mxu1 %v2637_v39  ;;  %v1516_v39 = vld [vmem:[%s3352_s3 + $0xc0] sm:$0xff] }
  0x4f   :  { %2497 = vmatprep.subr.bf16.mxu1 %v2639_v40  ;;  %v2358_v40 = vcombine.high %v1508_v38, %v1516_v39 }
  0x50   :  { %2476 = vmatpush3.bf16.msra.mxu0 %v2640_v41  ;;  %v1517_v41 = vld [vmem:[%s3352_s3 + $0xc8] sm:$0xff] }
  0x51   :  { %2477 = vmatprep.subr.bf16.mxu0 %v2642_v42  ;;  %v2357_v42 = vcombine.low %v1508_v38, %v1516_v39 }
  0x52   :  { %2498 = vmatpush3.bf16.msra.mxu1 %v2641_v43  ;;  %v2359_v43 = vcombine.low %v1509_v35, %v1517_v41 }
  0x53   :  { %2499 = vmatprep.subr.bf16.mxu1 %v2643_v44  ;;  %v2360_v44 = vcombine.high %v1509_v35, %v1517_v41 }
  0x54   :  { %2478 = vmatpush3.bf16.msra.mxu0 %v2644_v45  ;;  %v1492_v45 = vld [vmem:[%s3352_s3] sm:$0xff] }
  0x55   :  { %2479 = vmatprep.subr.bf16.mxu0 %v2646_v46  ;;  %v1500_v46 = vld [vmem:[%s3352_s3 + $0x40] sm:$0xff] }
  0x56   :  { %2500 = vmatpush3.bf16.msra.mxu1 %v2645_v48  ;;  %v2342_v48 = vcombine.high %v1492_v45, %v1500_v46 }
  0x57   :  { %2501 = vmatprep.subr.bf16.mxu1 %v2647_v49  ;;  %v1501_v49 = vld [vmem:[%s3352_s3 + $0x48] sm:$0xff] }
  0x58   :  { %2480 = vmatpush3.bf16.msra.mxu0 %v2648_v50  ;;  %v2341_v50 = vcombine.low %v1492_v45, %v1500_v46 }
  0x59   :  { %2481 = vmatprep.subr.bf16.mxu0 %v2650_v51  ;;  %v2343_v51 = vcombine.low %v1493_v47, %v1501_v49 }
  0x5a   :  { %2502 = vmatpush3.bf16.msra.mxu1 %v2649_v52  ;;  %v2344_v52 = vcombine.high %v1493_v47, %v1501_v49  ;;  %v1494_v47 = vld [vmem:[%s3352_s3 + $0x10] sm:$0xff] }
  0x5b   :  { %2503 = vmatprep.subr.bf16.mxu1 %v2651_v54  ;;  %v3182_v54 = vld [vmem:[%s3352_s3 + $0xd0] sm:$0xff] }
  0x5c   :  { %2482 = vmatpush3.bf16.msra.mxu0 %v2652_v55  ;;  %v3187_v55 = vld [vmem:[%s3352_s3 + $0x98] sm:$0xff]  ;;  %v1502_v49 = vld [vmem:[%s3352_s3 + $0x50] sm:$0xff] }
  0x5d   :  { %2483 = vmatprep.subr.bf16.mxu0 %v2654_v56  ;;  %v2361_v56 = vcombine.low %v3177_v53, %v3182_v54 }
  0x5e   :  { %2504 = vmatpush3.bf16.msra.mxu1 %v2653_v57  ;;  %v2362_v57 = vcombine.high %v3177_v53, %v3182_v54  ;;  %v1504_v53 = vld [vmem:[%s3352_s3 + $0x60] sm:$0xff]  ;;  %v1497_v54 = vld [vmem:[%s3352_s3 + $0x28] sm:$0xff] }
  0x5f   :  { %2505 = vmatprep.subr.bf16.mxu1 %v2655_v59  ;;  %v2691_v59 = vmov 0  }
  0x60   :  { %2484 = vmatpush3.bf16.msra.mxu0 %v2656_v60  ;;  %v2363_v60 = vcombine.low %v3187_v55, %v3196_v58 }
  0x61   :  { %2513 = vmatprep.subr.bf16.mxu0 %v2658_v62 }
  0x62   :  { %2506 = vmatpush3.bf16.msra.mxu1 %v2657_v63 }
  0x63   :  { %1363 = vmatmul.mubr.bf16.vlgmr.msra.gmra.mxu0 %v360_v61  ;;  %2535 = vmatprep.subr.bf16.mxu1 %v2659_v1  ;;  %v2364_v61 = vcombine.high %v3187_v55, %v3196_v58  ;;  %v1505_v55 = vld [vmem:[%s3352_s3 + $0x68] sm:$0xff] }
  0x64   :  { %2514 = vmatpush3.bf16.msra.mxu0 %v2660_v2  ;;  %1442 = vmatprep.mubr.bf16.mxu0 %v381_v0  ;;  %v2212_v0 = vld [vmem:[%s3353_s2] ss:$0 sm:$0xff] }
  0x65   :  { %1403 = vmatmul.mubr.bf16.vlgmr.msra.gmra.mxu1 %v382_v3  ;;  %2515 = vmatprep.subr.bf16.mxu0 %v2662_v4 }
  0x66   :  { %2536 = vmatpush3.bf16.msra.mxu1 %v2661_v5  ;;  %1482 = vmatprep.mubr.bf16.mxu1 %v385_v6 }
  0x67   :  { %2537 = vmatprep.subr.bf16.mxu1 %v2663_v7 }
  0x68   :  { %2516 = vmatpush3.bf16.msra.mxu0 %v2664_v8 }
  0x69   :  { %2517 = vmatprep.subr.bf16.mxu0 %v2666_v9 }
  0x6a   :  { %2538 = vmatpush3.bf16.msra.mxu1 %v2665_v10 }
  0x6b   :  { %2539 = vmatprep.subr.bf16.mxu1 %v2667_v11 }
  0x6c   :  { %2518 = vmatpush3.bf16.msra.mxu0 %v2668_v12 }
  0x6d   :  { %2519 = vmatprep.subr.bf16.mxu0 %v2670_v13 }
  0x6e   :  { %2540 = vmatpush3.bf16.msra.mxu1 %v2669_v14 }
  0x6f   :  { %2541 = vmatprep.subr.bf16.mxu1 %v2671_v15 }
  0x70   :  { %2520 = vmatpush3.bf16.msra.mxu0 %v2672_v16 }
  0x71   :  { %2521 = vmatprep.subr.bf16.mxu0 %v2674_v17 }
  0x72   :  { %2542 = vmatpush3.bf16.msra.mxu1 %v2673_v18 }
  0x73   :  { %2543 = vmatprep.subr.bf16.mxu1 %v2675_v19 }
  0x74   :  { %2522 = vmatpush3.bf16.msra.mxu0 %v2676_v20 }
  0x75   :  { %2523 = vmatprep.subr.bf16.mxu0 %v2678_v21 }
  0x76   :  { %2544 = vmatpush3.bf16.msra.mxu1 %v2677_v22 }
  0x77   :  { %2545 = vmatprep.subr.bf16.mxu1 %v2679_v23 }
  0x78   :  { %2524 = vmatpush3.bf16.msra.mxu0 %v2680_v24 }
  0x79   :  { %2525 = vmatprep.subr.bf16.mxu0 %v2682_v25 }
  0x7a   :  { %2546 = vmatpush3.bf16.msra.mxu1 %v2681_v26 }
  0x7b   :  { %2547 = vmatprep.subr.bf16.mxu1 %v2683_v27 }
  0x7c   :  { %2526 = vmatpush3.bf16.msra.mxu0 %v2684_v28 }
  0x7d   :  { %2527 = vmatprep.subr.bf16.mxu0 %v2686_v29 }
  0x7e   :  { %2548 = vmatpush3.bf16.msra.mxu1 %v2685_v31 }
  0x7f   :  { %2549 = vmatprep.subr.bf16.mxu1 %v2687_v32 }
  0x80   :  { %2528 = vmatpush3.bf16.msra.mxu0 %v2688_v33 }
  0x81   :  { %1784 = vmatprep.subr.bf16.mxu0 %v2358_v40 }
  0x82   :  { %2550 = vmatpush3.bf16.msra.mxu1 %v2689_v36 }
  0x83   :  { %1443 = vmatmul.mubr.bf16.vlgmr.msra.gmra.mxu0 %v367_v34  ;;  %1825 = vmatprep.subr.bf16.mxu1 %v2360_v44 }
  0x84   :  { %1785 = vmatpush1.bf16.msra.mxu0 %v2357_v42  ;;  %1804 = vmatprep.mubr.bf16.mxu0 %v2691_v59 }
  0x85   :  { %1483 = vmatmul.mubr.bf16.vlgmr.msra.gmra.mxu1 %v383_v37  ;;  %1786 = vmatprep.subr.bf16.mxu0 %v2342_v48 }
  0x86   :  { %1826 = vmatpush1.bf16.msra.mxu1 %v2359_v43  ;;  %1845 = vmatprep.mubr.bf16.mxu1 %v2691_v59 }
  0x87   :  { %1827 = vmatprep.subr.bf16.mxu1 %v2344_v52 }
  0x88   :  { %1787 = vmatpush1.bf16.msra.mxu0 %v2341_v50  ;;  %v1495_v50 = vld [vmem:[%s3352_s3 + $0x18] sm:$0xff] }
  0x89   :  { %1866 = vmatprep.subr.bf16.mxu0 %v2362_v57 }
  0x8a   :  { %1828 = vmatpush1.bf16.msra.mxu1 %v2343_v51  ;;  %v1503_v51 = vld [vmem:[%s3352_s3 + $0x58] sm:$0xff] }
  0x8b   :  { %1907 = vmatprep.subr.bf16.mxu1 %v2364_v61  ;;  %v2346_v61 = vcombine.high %v1494_v47, %v1502_v49 }
  0xe3   :  { %v2397_v62 = vpop.f32.mrf.mxu0 }
  0xe4   :  { %v2419_v63 = vpop.f32.mrf.mxu1 }
  0xe5   :  { %v2398_v1 = vpop.f32.mrf.mxu0 }
  0xe6   :  { %v2399_v2 = vadd.f32 %v2398_v1, %v2397_v62  ;;  %v2420_v3 = vpop.f32.mrf.mxu1  ;;  %v2348_v62 = vcombine.high %v1495_v50, %v1503_v51  ;;  %v1513_v1 = vld [vmem:[%s3352_s3 + $0xa8] sm:$0xff] }
  0xe7   :  { %v2400_v4 = vpop.f32.mrf.mxu0  ;;  %v2421_v6 = vadd.f32 %v2420_v3, %v2419_v63  ;;  %v1512_v63 = vld [vmem:[%s3352_s3 + $0xa0] sm:$0xff]  ;;  %v2345_v3 = vcombine.low %v1494_v47, %v1502_v49  ;;  %v1550_v49 = vsub.s32 5, %v2801_v30 }
  0xe8   :  { %v1205_v5 = vadd.f32 %v2399_v2, %v2212_v0  ;;  %v2422_v7 = vpop.f32.mrf.mxu1  ;;  %v1520_v0 = vld [vmem:[%s3352_s3 + $0xe0] sm:$0xff]  ;;  %v1521_v2 = vld [vmem:[%s3352_s3 + $0xe8] sm:$0xff]  ;;  %v2347_v4 = vcombine.low %v1495_v50, %v1503_v51 }
  0xe9   :  { %v2401_v8 = vpop.f32.mrf.mxu0  ;;  %v1496_v7 = vld [vmem:[%s3352_s3 + $0x20] sm:$0xff]  ;;  %v2367_v58 = vcombine.low %v1513_v1, %v1521_v2 }
  0xea   :  { %v1245_v9 = vadd.f32 %v2421_v6, %v1205_v5  ;;  %v2423_v10 = vpop.f32.mrf.mxu1  ;;  %v2366_v5 = vcombine.high %v1512_v63, %v1520_v0  ;;  %v2368_v6 = vcombine.high %v1513_v1, %v1521_v2  ;;  %v2352_v8 = vcombine.high %v1497_v54, %v1505_v55 }
  0xeb   :  { %v1522_v10 = vld [vmem:[%s3352_s3 + $0xf0] sm:$0xff] }
 0x103   :  { %v2441_v11 = vpop.f32.mrf.mxu0 }
 0x105   :  { %v2463_v12 = vpop.f32.mrf.mxu1  ;;  %v2442_v13 = vpop.f32.mrf.mxu0 }
 0x106   :  { %v2443_v27 = vadd.f32 %v2442_v13, %v2441_v11  ;;  %v1515_v11 = vld [vmem:[%s3352_s3 + $0xb8] sm:$0xff]  ;;  %v2349_v13 = vcombine.low %v1496_v7, %v1504_v53 }
 0x107   :  { %v2464_v14 = vpop.f32.mrf.mxu1  ;;  %v2444_v15 = vpop.f32.mrf.mxu0 }
 0x108   :  { %v1285_v28 = vadd.f32 %v2443_v27, %v1245_v9  ;;  %v2465_v29 = vadd.f32 %v2464_v14, %v2463_v12  ;;  %v1514_v9 = vld [vmem:[%s3352_s3 + $0xb0] sm:$0xff]  ;;  %v1523_v12 = vld [vmem:[%s3352_s3 + $0xf8] sm:$0xff]  ;;  %v2351_v14 = vcombine.low %v1497_v54, %v1505_v55  ;;  %v1530_v27 = vsub.s32 0, %v2801_v30 }
 0x109   :  { %v2466_v16 = vpop.f32.mrf.mxu1  ;;  %v2445_v17 = vpop.f32.mrf.mxu0  ;;  %v2370_v15 = vcombine.high %v1514_v9, %v1522_v10 }
 0x10a   :  { %v1325_v32 = vadd.f32 %v2465_v29, %v1285_v28  ;;  %v2372_v16 = vcombine.high %v1515_v11, %v1523_v12  ;;  %v1498_v17 = vld [vmem:[%s3352_s3 + $0x30] sm:$0xff]  ;;  %v1538_v28 = vsub.s32 2, %v2801_v30  ;;  %v1524_v29 = vld [vmem:[%s3354_s4] sm:$0xff] }
 0x10b   :  { %v2467_v18 = vpop.f32.mrf.mxu1 }
 0x10c   :  { %v1506_v18 = vld [vmem:[%s3352_s3 + $0x70] sm:$0xff] }
 0x123   :  { %v2485_v19 = vpop.f32.mrf.mxu0 }
 0x125   :  { %v2507_v20 = vpop.f32.mrf.mxu1  ;;  %v2486_v21 = vpop.f32.mrf.mxu0 }
 0x126   :  { %v2487_v31 = vadd.f32 %v2486_v21, %v2485_v19  ;;  %v1499_v19 = vld [vmem:[%s3352_s3 + $0x38] sm:$0xff]  ;;  %v2369_v21 = vcombine.low %v1514_v9, %v1522_v10 }
 0x127   :  { %v2508_v22 = vpop.f32.mrf.mxu1  ;;  %v2488_v23 = vpop.f32.mrf.mxu0 }
 0x128   :  { %v1365_v33 = vadd.f32 %v2487_v31, %v1325_v32  ;;  %v2509_v34 = vadd.f32 %v2508_v22, %v2507_v20  ;;  %v1507_v20 = vld [vmem:[%s3352_s3 + $0x78] sm:$0xff]  ;;  %v2371_v22 = vcombine.low %v1515_v11, %v1523_v12  ;;  %v2354_v23 = vcombine.high %v1498_v17, %v1506_v18  ;;  %v1525_v11 = vld [vmem:[%s3354_s4 + $0x8] sm:$0xff] }
 0x129   :  { %v2510_v24 = vpop.f32.mrf.mxu1  ;;  %v2489_v25 = vpop.f32.mrf.mxu0  ;;  %v1534_v31 = vsub.s32 1, %v2801_v30  ;;  %v2692_v32 = vmov 1983009808  }
 0x12a   :  { %v1405_v39 = vadd.f32 %v2509_v34, %v1365_v33  ;;  %v2356_v24 = vcombine.high %v1499_v19, %v1507_v20  ;;  %v2353_v25 = vcombine.low %v1498_v17, %v1506_v18  ;;  %v2135_v33 = vunpack.c.l.s4 %v2692_v32 }
 0x12b   :  { %v2511_v26 = vpop.f32.mrf.mxu1  ;;  %v1531_v34 = vrot.slane %v1524_v29, %v1530_v27 }
 0x12c   :  { %v2355_v26 = vcombine.low %v1499_v19, %v1507_v20  ;;  %v1563_v19 = vrot.slane %v1525_v11, %v1530_v27  ;;  %v1571_v20 = vrot.slane %v1525_v11, %v1538_v28 }
 0x143   :  { %v2529_v36 = vpop.f32.mrf.mxu0 }
 0x145   :  { %v2551_v37 = vpop.f32.mrf.mxu1  ;;  %v2530_v38 = vpop.f32.mrf.mxu0 }
 0x146   :  { %v2531_v35 = vadd.f32 %v2530_v38, %v2529_v36  ;;  %v1539_v36 = vrot.slane %v1524_v29, %v1538_v28 }
 0x147   :  { %v2552_v40 = vpop.f32.mrf.mxu1  ;;  %v2532_v41 = vpop.f32.mrf.mxu0 }
 0x148   :  { %v1445_v42 = vadd.f32 %v2531_v35, %v1405_v39  ;;  %v2553_v43 = vadd.f32 %v2552_v40, %v2551_v37  ;;  %v1535_v37 = vrot.slane %v1524_v29, %v1534_v31  ;;  %v2136_v40 = vunpack.c.0.s8 %v2135_v33 }
 0x149   :  { %v2554_v44 = vpop.f32.mrf.mxu1  ;;  %v2533_v45 = vpop.f32.mrf.mxu0  ;;  %v1546_v41 = vsub.s32 4, %v2801_v30 }
 0x14a   :  { %v1485_v46 = vadd.f32 %v2553_v43, %v1445_v42  ;;  %v3308_v50 = vsub.s32 %v2136_v40, %v2801_v30 }
 0x14b   :  { %v2555_v48 = vpop.f32.mrf.mxu1 }
 0x14c   :  { %v1490_v52 = vmax.f32 %v1485_v46, 0.0  ;;  %v1554_v46 = vsub.s32 6, %v2801_v30 }
 0x14e   :  { %v3219_v57 = vpack.c.bf16 %v1490_v52, %v1490_v52 }
 0x150   :  { %2373 = vmatmul.mubr.msk.bf16.vlgmr.msra.gmra.mxu0 %vm1768_vm0, %v3219_v57  ;;  %2374 = vmatmul.mubr.msk.bf16.vlgmr.msra.gmra.mxu1 %vm1768_vm0, %v3219_v57 }
 0x151   :  { %1867 = vmatpush1.bf16.msra.mxu0 %v2361_v56  ;;  %1908 = vmatpush1.bf16.msra.mxu1 %v2363_v60  ;;  %v2365_v56 = vcombine.low %v1512_v63, %v1520_v0  ;;  %v2350_v60 = vcombine.high %v1496_v7, %v1504_v53  ;;  %v1551_v7 = vrot.slane %v1524_v29, %v1550_v49 }
 0x152   :  { %1868 = vmatprep.subr.bf16.mxu0 %v2346_v61  ;;  %1909 = vmatprep.subr.bf16.mxu1 %v2348_v62  ;;  %v1558_v61 = vsub.s32 7, %v2801_v30 }
 0x153   :  { %1886 = vmatprep.mubr.bf16.mxu0 %v2691_v59  ;;  %1927 = vmatprep.mubr.bf16.mxu1 %v2691_v59 }
 0x154   :  { %v1559_v55 = vrot.slane %v1524_v29, %v1558_v61 }
 0x155   :  { %1869 = vmatpush1.bf16.msra.mxu0 %v2345_v3  ;;  %1910 = vmatpush1.bf16.msra.mxu1 %v2347_v4  ;;  %v1555_v4 = vrot.slane %v1524_v29, %v1554_v46 }
 0x156   :  { %1948 = vmatprep.subr.bf16.mxu0 %v2366_v5  ;;  %1989 = vmatprep.subr.bf16.mxu1 %v2368_v6 }
 0x158   :  { %2375 = vmatmul.mubr.msk.bf16.vlgmr.msra.gmra.mxu0 %vm1768_vm0, %v3219_v57  ;;  %2376 = vmatmul.mubr.msk.bf16.vlgmr.msra.gmra.mxu1 %vm1768_vm0, %v3219_v57 }
 0x159   :  { %1949 = vmatpush1.bf16.msra.mxu0 %v2365_v56  ;;  %1990 = vmatpush1.bf16.msra.mxu1 %v2367_v58 }
 0x15a   :  { %1950 = vmatprep.subr.bf16.mxu0 %v2350_v60  ;;  %1991 = vmatprep.subr.bf16.mxu1 %v2352_v8 }
 0x15b   :  { %1968 = vmatprep.mubr.bf16.mxu0 %v2691_v59  ;;  %2009 = vmatprep.mubr.bf16.mxu1 %v2691_v59 }
 0x15d   :  { %1951 = vmatpush1.bf16.msra.mxu0 %v2349_v13  ;;  %1992 = vmatpush1.bf16.msra.mxu1 %v2351_v14 }
 0x15e   :  { %2030 = vmatprep.subr.bf16.mxu0 %v2370_v15  ;;  %2071 = vmatprep.subr.bf16.mxu1 %v2372_v16 }
 0x160   :  { %2377 = vmatmul.mubr.msk.bf16.vlgmr.msra.gmra.mxu0 %vm1768_vm0, %v3219_v57  ;;  %2378 = vmatmul.mubr.msk.bf16.vlgmr.msra.gmra.mxu1 %vm1768_vm0, %v3219_v57 }
 0x161   :  { %2031 = vmatpush1.bf16.msra.mxu0 %v2369_v21  ;;  %2072 = vmatpush1.bf16.msra.mxu1 %v2371_v22 }
 0x162   :  { %2032 = vmatprep.subr.bf16.mxu0 %v2354_v23  ;;  %2073 = vmatprep.subr.bf16.mxu1 %v2356_v24 }
 0x163   :  { %2050 = vmatprep.mubr.bf16.mxu0 %v2691_v59  ;;  %2091 = vmatprep.mubr.bf16.mxu1 %v2691_v59  ;;  %v1542_v59 = vsub.s32 3, %v2801_v30 }
 0x165   :  { %2033 = vmatpush1.bf16.msra.mxu0 %v2353_v25  ;;  %2074 = vmatpush1.bf16.msra.mxu1 %v2355_v26  ;;  %v1543_v38 = vrot.slane %v1524_v29, %v1542_v59  ;;  %v1567_v26 = vrot.slane %v1525_v11, %v1534_v31  ;;  %v1579_v31 = vrot.slane %v1525_v11, %v1546_v41 }
 0x168   :  { %2379 = vmatmul.mubr.msk.bf16.vlgmr.msra.gmra.mxu0 %vm1768_vm0, %v3219_v57  ;;  %2380 = vmatmul.mubr.msk.bf16.vlgmr.msra.gmra.mxu1 %vm1768_vm0, %v3219_v57  ;;  %v1547_v57 = vrot.slane %v1524_v29, %v1546_v41  ;;  %v1575_v29 = vrot.slane %v1525_v11, %v1542_v59 }
 0x210   :  { %v1806_v39 = vpop.f32.mrf.mxu0  ;;  %v1847_v35 = vpop.f32.mrf.mxu1 }
 0x211   :  { %v1807_v42 = vadd.f32 %v1806_v39, %v1531_v34  ;;  %v1848_v43 = vadd.f32 %v1847_v35, %v1539_v36 }
 0x212   :  { %v1808_v44 = vpop.f32.mrf.mxu0  ;;  %v1849_v45 = vpop.f32.mrf.mxu1 }
 0x213   :  { %v1809_v47 = vadd.f32 %v1808_v44, %v1535_v37  ;;  %v1850_v48 = vadd.f32 %v1849_v45, %v1543_v38  ;;  %v2100_v62 = vmax.f32 %v1807_v42, 0.0  ;;  %v2102_v63 = vmax.f32 %v1848_v43, 0.0 }
 0x214   :  { %v1810_v51 = vpop.f32.mrf.mxu0  ;;  %v1851_v52 = vpop.f32.mrf.mxu1 }
 0x215   :  { %v2101_v0 = vmax.f32 %v1809_v47, 0.0  ;;  %v2103_v1 = vmax.f32 %v1850_v48, 0.0 }
 0x216   :  { %v1811_v2 = vpop.f32.mrf.mxu0  ;;  %v1852_v3 = vpop.f32.mrf.mxu1 }
 0x217   :  { %v2132_v5 = vcombine.low %v2100_v62, %v2101_v0  ;;  %v2133_v6 = vcombine.low %v2102_v63, %v2103_v1  ;;  %v1583_v0 = vrot.slane %v1525_v11, %v1550_v49  ;;  %v1591_v2 = vrot.slane %v1525_v11, %v1558_v61 }
 0x218   :  { %v1888_v53 = vpop.f32.mrf.mxu0  ;;  %v1929_v54 = vpop.f32.mrf.mxu1 }
 0x219   :  { %v2140_v56 = vrot.slane %v2132_v5, %v3308_v50  ;;  %v2147_v58 = vrot.slane %v2133_v6, %v3308_v50  ;;  %v1889_v60 = vadd.f32 %v1888_v53, %v1547_v57  ;;  %v1930_v8 = vadd.f32 %v1929_v54, %v1555_v4 }
 0x21a   :  { %v1890_v9 = vpop.f32.mrf.mxu0  ;;  %v1931_v10 = vpop.f32.mrf.mxu1  ;;  %v1587_v57 = vrot.slane %v1525_v11, %v1554_v46 }
 0x21b   :  { %v2148_v12 = vcombine.low %v2140_v56, %v2147_v58  ;;  %v1891_v13 = vadd.f32 %v1890_v9, %v1551_v7  ;;  %v1932_v14 = vadd.f32 %v1931_v10, %v1559_v55  ;;  %v2104_v17 = vmax.f32 %v1889_v60, 0.0 }
 0x21c   :  { %v1892_v15 = vpop.f32.mrf.mxu0  ;;  %v1933_v16 = vpop.f32.mrf.mxu1  ;;  %v2106_v21 = vmax.f32 %v1930_v8, 0.0 }
 0x21d   :  { %2204 = vst [vmem:[%s3355_s5] sm:$0xff] %v2148_v12  ;;  %v2105_v18 = vmax.f32 %v1891_v13, 0.0  ;;  %v2107_v22 = vmax.f32 %v1932_v14, 0.0 }
 0x21e   :  { %v1893_v23 = vpop.f32.mrf.mxu0  ;;  %v1934_v24 = vpop.f32.mrf.mxu1 }
 0x21f   :  { %v2149_v25 = vcombine.low %v2104_v17, %v2105_v18  ;;  %v2150_v32 = vcombine.low %v2106_v21, %v2107_v22 }
 0x220   :  { %v1970_v33 = vpop.f32.mrf.mxu0  ;;  %v2011_v34 = vpop.f32.mrf.mxu1 }
 0x221   :  { %v2157_v36 = vrot.slane %v2149_v25, %v3308_v50  ;;  %v1971_v37 = vadd.f32 %v1970_v33, %v1563_v19  ;;  %v2012_v38 = vadd.f32 %v2011_v34, %v1571_v20  ;;  %v2164_v39 = vrot.slane %v2150_v32, %v3308_v50 }
 0x222   :  { %v1972_v35 = vpop.f32.mrf.mxu0  ;;  %v2013_v40 = vpop.f32.mrf.mxu1 }
 0x223   :  { %v1973_v27 = vadd.f32 %v1972_v35, %v1567_v26  ;;  %v2014_v28 = vadd.f32 %v2013_v40, %v1575_v29  ;;  %v2165_v42 = vcombine.low %v2157_v36, %v2164_v39  ;;  %v2108_v59 = vmax.f32 %v1971_v37, 0.0 }
 0x224   :  { %v1974_v43 = vpop.f32.mrf.mxu0  ;;  %v2015_v44 = vpop.f32.mrf.mxu1  ;;  %v2110_v45 = vmax.f32 %v2012_v38, 0.0 }
 0x225   :  { %v2109_v47 = vmax.f32 %v1973_v27, 0.0  ;;  %v2111_v48 = vmax.f32 %v2014_v28, 0.0  ;;  %2205 = vst [vmem:[%s3355_s5 + $0x8] sm:$0xff] %v2165_v42 }
 0x226   :  { %v1975_v51 = vpop.f32.mrf.mxu0  ;;  %v2016_v52 = vpop.f32.mrf.mxu1 }
 0x227   :  { %v2166_v62 = vcombine.low %v2108_v59, %v2109_v47  ;;  %v2167_v63 = vcombine.low %v2110_v45, %v2111_v48 }
 0x228   :  { %v2052_v1 = vpop.f32.mrf.mxu0  ;;  %v2093_v41 = vpop.f32.mrf.mxu1 }
 0x229   :  { %v2174_v3 = vrot.slane %v2166_v62, %v3308_v50  ;;  %v2181_v4 = vrot.slane %v2167_v63, %v3308_v50  ;;  %v2053_v5 = vadd.f32 %v2052_v1, %v1579_v31  ;;  %v2094_v6 = vadd.f32 %v2093_v41, %v1587_v57 }
 0x22a   :  { %v2054_v7 = vpop.f32.mrf.mxu0  ;;  %v2095_v53 = vpop.f32.mrf.mxu1 }
 0x22b   :  { %v2182_v54 = vcombine.low %v2174_v3, %v2181_v4  ;;  %v2055_v46 = vadd.f32 %v2054_v7, %v1583_v0  ;;  %v2096_v55 = vadd.f32 %v2095_v53, %v1591_v2  ;;  %v2112_v49 = vmax.f32 %v2053_v5, 0.0 }
 0x22c   :  { %v2056_v56 = vpop.f32.mrf.mxu0  ;;  %v2097_v58 = vpop.f32.mrf.mxu1  ;;  %v2114_v61 = vmax.f32 %v2094_v6, 0.0 }
 0x22d   :  { %2206 = vst [vmem:[%s3355_s5 + $0x10] sm:$0xff] %v2182_v54  ;;  %v2113_v30 = vmax.f32 %v2055_v46, 0.0  ;;  %v2115_v60 = vmax.f32 %v2096_v55, 0.0 }
 0x22e   :  { %v2057_v8 = vpop.f32.mrf.mxu0  ;;  %v2098_v9 = vpop.f32.mrf.mxu1 }
 0x22f   :  { %v2183_v10 = vcombine.low %v2112_v49, %v2113_v30  ;;  %v2184_v11 = vcombine.low %v2114_v61, %v2115_v60 }
 0x231   :  { %v2191_v12 = vrot.slane %v2183_v10, %v3308_v50  ;;  %v2198_v13 = vrot.slane %v2184_v11, %v3308_v50 }
 0x233   :  { %v2199_v14 = vcombine.low %v2191_v12, %v2198_v13 }
 0x235   :  { %2207 = vst [vmem:[%s3355_s5 + $0x18] sm:$0xff] %v2199_v14 }

// kernel: styled_generator_forward.11
= control target key start
LH: loop header
LB: loop body
LE: loop exit
PB: predicated region body
PF: predicated region fallthrough
CT: control target
= control target key end

     0   :  { %s999_s12 = smov 0   ;;  %s1104_s0 = inlined_call_operand.vmem [shape: bf16[16,512], index: 0, kind: input, shape index: {}]   ;;  %s1105_s1 = inlined_call_operand.vmem [shape: bf16[2,512,256], index: 1, kind: input, shape index: {}]   ;;  %s1106_s2 = inlined_call_operand.vmem [shape: f32[16,1], index: 2, kind: input, shape index: {}]   ;;  %s1107_s3 = inlined_call_operand.vmem [shape: f32[2,16,256], index: 3, kind: output, shape index: {}]  }
   0x1 LB: > { %s773_s13 = sadd.s32 4294967295, %s976_s12   ;;  %p777_p0 = scmp.ge.s32.totalorder %s976_s12, 1  ;;  %s976_s12 = sphi %s999_s12, %s13_s12  }
   0x2   : > { %p137_p1 = scmp.lt.s32.totalorder %s976_s12, 3 }
   0x4   : > { %p138_p2 = pnand %p777_p0, %p137_p1 }
   0x5   : > { %p161_p3 = scmp.lt.s32.totalorder (!%p138_p2), %s773_s13, 1 }
   0x6   : > { %141 = sbr.rel (%p138_p2) target bundleno = 591 (0x24f), region = 32 }
   0xb   : > { %v962_v0 = vld [vmem:[%s1104_s0 + $0x4] ss:$16 sps:$4 sm:$0xff]   ;;  %v978_v1 = vmov 0   ;;  %s1109_s13 = smov (!%p161_p3, %s773_s13), 1  ;;  %v965_v2 = vld [vmem:[%s1104_s0 + $0xc] ss:$16 sps:$4 sm:$0xff]  }
   0xc   : > { %863 = vset.pattern.permute.xlu0 %v978_v1  ;;  %v239_v3 = vld [vmem:[%s1106_s2] sm:$0xff]  ;;  %623 = vmatprep.mubr.bf16.mxu0 %v962_v0  ;;  %s852_s20 = sshll.u32 %s1109_s13, 9  ;;  %v240_v4 = vld [vmem:[%s1106_s2 + $0x8] sm:$0xff]  ;;  %s853_s30 = sshll.u32 %s1109_s13, 5 }
   0xd   : > { %243 = vperm.xlu0 %863, %v239_v3   ;;  %666 = vmatprep.mubr.bf16.mxu1 %v965_v2  ;;  %s1025_s25 = scalar_lea.vmem %s1105_s1, %s852_s20  ;;  %s170_s6 = scalar_lea.vmem %s1107_s3, %s853_s30 }
   0xe   : > { %v864_v5 = vld [vmem:[%s1025_s25 + $0x74] ss:$8 sps:$4 sm:$0xff]   ;;  %v868_v7 = vld [vmem:[%s1025_s25 + $0x70] ss:$8 sps:$4 sm:$0xff]   ;;  %v870_v9 = vld [vmem:[%s1025_s25 + $0x64] ss:$8 sps:$4 sm:$0xff]  }
   0xf   : > { %v866_v6 = vld [vmem:[%s1025_s25 + $0x174] ss:$8 sps:$4 sm:$0xff]   ;;  %591 = vmatprep.subr.bf16.mxu0 %v864_v5  ;;  %v869_v8 = vld [vmem:[%s1025_s25 + $0x170] ss:$8 sps:$4 sm:$0xff]   ;;  %v872_v10 = vld [vmem:[%s1025_s25 + $0x164] ss:$8 sps:$4 sm:$0xff]  }
  0x10   : > { %634 = vmatprep.subr.bf16.mxu1 %v866_v6  ;;  %592 = vmatpush1.bf16.msra.mxu0 %v868_v7  ;;  %v874_v11 = vld [vmem:[%s1025_s25 + $0x60] ss:$8 sps:$4 sm:$0xff]   ;;  %v876_v13 = vld [vmem:[%s1025_s25 + $0x54] ss:$8 sps:$4 sm:$0xff]   ;;  %v880_v15 = vld [vmem:[%s1025_s25 + $0x50] ss:$8 sps:$4 sm:$0xff]  }
  0x11   : > { %248 = vperm.xlu0 %863, %v240_v4   ;;  %635 = vmatpush1.bf16.msra.mxu1 %v869_v8  ;;  %v875_v12 = vld [vmem:[%s1025_s25 + $0x160] ss:$8 sps:$4 sm:$0xff]   ;;  %v878_v14 = vld [vmem:[%s1025_s25 + $0x154] ss:$8 sps:$4 sm:$0xff]   ;;  %v881_v16 = vld [vmem:[%s1025_s25 + $0x150] ss:$8 sps:$4 sm:$0xff]  }
  0x12   : > { %593 = vmatprep.subr.bf16.mxu0 %v870_v9  ;;  %636 = vmatprep.subr.bf16.mxu1 %v872_v10  ;;  %v882_v17 = vld [vmem:[%s1025_s25 + $0x44] ss:$8 sps:$4 sm:$0xff]   ;;  %v886_v19 = vld [vmem:[%s1025_s25 + $0x40] ss:$8 sps:$4 sm:$0xff]   ;;  %v888_v21 = vld [vmem:[%s1025_s25 + $0x34] ss:$8 sps:$4 sm:$0xff]  }
  0x13   : > { %v884_v18 = vld [vmem:[%s1025_s25 + $0x144] ss:$8 sps:$4 sm:$0xff]   ;;  %v887_v20 = vld [vmem:[%s1025_s25 + $0x140] ss:$8 sps:$4 sm:$0xff]   ;;  %v890_v22 = vld [vmem:[%s1025_s25 + $0x134] ss:$8 sps:$4 sm:$0xff]  }
  0x14   : > { %594 = vmatpush1.bf16.msra.mxu0 %v874_v11  ;;  %v892_v23 = vld [vmem:[%s1025_s25 + $0x30] ss:$8 sps:$4 sm:$0xff]   ;;  %v894_v25 = vld [vmem:[%s1025_s25 + $0x24] ss:$8 sps:$4 sm:$0xff]   ;;  %v898_v27 = vld [vmem:[%s1025_s25 + $0x20] ss:$8 sps:$4 sm:$0xff]  }
  0x15   : > { %637 = vmatpush1.bf16.msra.mxu1 %v875_v12  ;;  %595 = vmatprep.subr.bf16.mxu0 %v876_v13  ;;  %v893_v24 = vld [vmem:[%s1025_s25 + $0x130] ss:$8 sps:$4 sm:$0xff]   ;;  %v896_v26 = vld [vmem:[%s1025_s25 + $0x124] ss:$8 sps:$4 sm:$0xff]   ;;  %v899_v28 = vld [vmem:[%s1025_s25 + $0x120] ss:$8 sps:$4 sm:$0xff]  }
  0x16   : > { %638 = vmatprep.subr.bf16.mxu1 %v878_v14  ;;  %v900_v29 = vld [vmem:[%s1025_s25 + $0x14] ss:$8 sps:$4 sm:$0xff]   ;;  %v904_v31 = vld [vmem:[%s1025_s25 + $0x10] ss:$8 sps:$4 sm:$0xff]   ;;  %v906_v33 = vld [vmem:[%s1025_s25 + $0x4] ss:$8 sps:$4 sm:$0xff]  }
  0x17   : > { %v902_v30 = vld [vmem:[%s1025_s25 + $0x114] ss:$8 sps:$4 sm:$0xff]   ;;  %v905_v32 = vld [vmem:[%s1025_s25 + $0x110] ss:$8 sps:$4 sm:$0xff]   ;;  %v908_v34 = vld [vmem:[%s1025_s25 + $0x104] ss:$8 sps:$4 sm:$0xff]  }
  0x18   : > { %596 = vmatpush1.bf16.msra.mxu0 %v880_v15  ;;  %v910_v35 = vld [vmem:[%s1025_s25] ss:$8 sps:$4 sm:$0xff]   ;;  %v912_v37 = vld [vmem:[%s1025_s25 + $0xf4] ss:$8 sps:$4 sm:$0xff]   ;;  %v916_v39 = vld [vmem:[%s1025_s25 + $0xf0] ss:$8 sps:$4 sm:$0xff]  }
  0x19   : > { %639 = vmatpush1.bf16.msra.mxu1 %v881_v16  ;;  %597 = vmatprep.subr.bf16.mxu0 %v882_v17  ;;  %v911_v36 = vld [vmem:[%s1025_s25 + $0x100] ss:$8 sps:$4 sm:$0xff]   ;;  %v914_v38 = vld [vmem:[%s1025_s25 + $0x1f4] ss:$8 sps:$4 sm:$0xff]   ;;  %v917_v40 = vld [vmem:[%s1025_s25 + $0x1f0] ss:$8 sps:$4 sm:$0xff]  }
  0x1a   : > { %640 = vmatprep.subr.bf16.mxu1 %v884_v18  ;;  %v918_v41 = vld [vmem:[%s1025_s25 + $0xe4] ss:$8 sps:$4 sm:$0xff]   ;;  %v922_v43 = vld [vmem:[%s1025_s25 + $0xe0] ss:$8 sps:$4 sm:$0xff]   ;;  %v924_v45 = vld [vmem:[%s1025_s25 + $0xd4] ss:$8 sps:$4 sm:$0xff]  }
  0x1b   : > { %v920_v42 = vld [vmem:[%s1025_s25 + $0x1e4] ss:$8 sps:$4 sm:$0xff]   ;;  %v923_v44 = vld [vmem:[%s1025_s25 + $0x1e0] ss:$8 sps:$4 sm:$0xff]   ;;  %v926_v46 = vld [vmem:[%s1025_s25 + $0x1d4] ss:$8 sps:$4 sm:$0xff]  }
  0x1c   : > { %598 = vmatpush1.bf16.msra.mxu0 %v886_v19  ;;  %v928_v47 = vld [vmem:[%s1025_s25 + $0xd0] ss:$8 sps:$4 sm:$0xff]   ;;  %v930_v49 = vld [vmem:[%s1025_s25 + $0xc4] ss:$8 sps:$4 sm:$0xff]   ;;  %v934_v51 = vld [vmem:[%s1025_s25 + $0xc0] ss:$8 sps:$4 sm:$0xff]  }
  0x1d   : > { %641 = vmatpush1.bf16.msra.mxu1 %v887_v20  ;;  %599 = vmatprep.subr.bf16.mxu0 %v888_v21  ;;  %v929_v48 = vld [vmem:[%s1025_s25 + $0x1d0] ss:$8 sps:$4 sm:$0xff]   ;;  %v932_v50 = vld [vmem:[%s1025_s25 + $0x1c4] ss:$8 sps:$4 sm:$0xff]   ;;  %v935_v52 = vld [vmem:[%s1025_s25 + $0x1c0] ss:$8 sps:$4 sm:$0xff]  }
  0x1e   : > { %642 = vmatprep.subr.bf16.mxu1 %v890_v22  ;;  %v936_v53 = vld [vmem:[%s1025_s25 + $0xb4] ss:$8 sps:$4 sm:$0xff]   ;;  %v940_v55 = vld [vmem:[%s1025_s25 + $0xb0] ss:$8 sps:$4 sm:$0xff]   ;;  %v942_v57 = vld [vmem:[%s1025_s25 + $0xa4] ss:$8 sps:$4 sm:$0xff]  }
  0x1f   : > { %v938_v54 = vld [vmem:[%s1025_s25 + $0x1b4] ss:$8 sps:$4 sm:$0xff]   ;;  %v941_v56 = vld [vmem:[%s1025_s25 + $0x1b0] ss:$8 sps:$4 sm:$0xff]   ;;  %v944_v58 = vld [vmem:[%s1025_s25 + $0x1a4] ss:$8 sps:$4 sm:$0xff]  }
  0x20   : > { %600 = vmatpush1.bf16.msra.mxu0 %v892_v23  ;;  %v946_v59 = vld [vmem:[%s1025_s25 + $0xa0] ss:$8 sps:$4 sm:$0xff]   ;;  %v948_v61 = vld [vmem:[%s1025_s25 + $0x94] ss:$8 sps:$4 sm:$0xff]   ;;  %v952_v63 = vld [vmem:[%s1025_s25 + $0x90] ss:$8 sps:$4 sm:$0xff]  }
  0x21   : > { %643 = vmatpush1.bf16.msra.mxu1 %v893_v24  ;;  %601 = vmatprep.subr.bf16.mxu0 %v894_v25  ;;  %v947_v60 = vld [vmem:[%s1025_s25 + $0x1a0] ss:$8 sps:$4 sm:$0xff]   ;;  %v950_v62 = vld [vmem:[%s1025_s25 + $0x194] ss:$8 sps:$4 sm:$0xff]   ;;  %v953_v0 = vld [vmem:[%s1025_s25 + $0x190] ss:$8 sps:$4 sm:$0xff]  }
  0x22   : > { %644 = vmatprep.subr.bf16.mxu1 %v896_v26  ;;  %v954_v1 = vld [vmem:[%s1025_s25 + $0x84] ss:$8 sps:$4 sm:$0xff]   ;;  %v958_v3 = vld [vmem:[%s1025_s25 + $0x80] ss:$8 sps:$4 sm:$0xff]  }
  0x23   : > { %v956_v2 = vld [vmem:[%s1025_s25 + $0x184] ss:$8 sps:$4 sm:$0xff]   ;;  %v959_v4 = vld [vmem:[%s1025_s25 + $0x180] ss:$8 sps:$4 sm:$0xff]  }
  0x24   : > { %602 = vmatpush1.bf16.msra.mxu0 %v898_v27  ;;  %v960_v5 = vld [vmem:[%s1104_s0] ss:$16 sps:$4 sm:$0xff]   ;;  %v963_v6 = vld [vmem:[%s1104_s0 + $0x8] ss:$16 sps:$4 sm:$0xff]  }
  0x25   : > { %645 = vmatpush1.bf16.msra.mxu1 %v899_v28  ;;  %603 = vmatprep.subr.bf16.mxu0 %v900_v29 }
  0x26   : > { %646 = vmatprep.subr.bf16.mxu1 %v902_v30 }
  0x28   : > { %604 = vmatpush1.bf16.msra.mxu0 %v904_v31 }
  0x29   : > { %647 = vmatpush1.bf16.msra.mxu1 %v905_v32  ;;  %605 = vmatprep.subr.bf16.mxu0 %v906_v33 }
  0x2a   : > { %648 = vmatprep.subr.bf16.mxu1 %v908_v34 }
  0x2c   : > { %606 = vmatpush1.bf16.msra.mxu0 %v910_v35 }
  0x2d   : > { %649 = vmatpush1.bf16.msra.mxu1 %v911_v36  ;;  %607 = vmatprep.subr.bf16.mxu0 %v912_v37 }
  0x2e   : > { %650 = vmatprep.subr.bf16.mxu1 %v914_v38 }
  0x30   : > { %608 = vmatpush2.bf16.msra.mxu0 %v916_v39 }
  0x31   : > { %651 = vmatpush2.bf16.msra.mxu1 %v917_v40  ;;  %609 = vmatprep.subr.bf16.mxu0 %v918_v41 }
  0x32   : > { %652 = vmatprep.subr.bf16.mxu1 %v920_v42 }
  0x34   : > { %610 = vmatpush2.bf16.msra.mxu0 %v922_v43 }
  0x35   : > { %653 = vmatpush2.bf16.msra.mxu1 %v923_v44  ;;  %611 = vmatprep.subr.bf16.mxu0 %v924_v45 }
  0x36   : > { %654 = vmatprep.subr.bf16.mxu1 %v926_v46 }
  0x38   : > { %612 = vmatpush2.bf16.msra.mxu0 %v928_v47 }
  0x39   : > { %655 = vmatpush2.bf16.msra.mxu1 %v929_v48  ;;  %613 = vmatprep.subr.bf16.mxu0 %v930_v49 }
  0x3a   : > { %656 = vmatprep.subr.bf16.mxu1 %v932_v50 }
  0x3c   : > { %614 = vmatpush2.bf16.msra.mxu0 %v934_v51 }
  0x3d   : > { %657 = vmatpush2.bf16.msra.mxu1 %v935_v52  ;;  %615 = vmatprep.subr.bf16.mxu0 %v936_v53 }
  0x3e   : > { %658 = vmatprep.subr.bf16.mxu1 %v938_v54 }
  0x40   : > { %616 = vmatpush2.bf16.msra.mxu0 %v940_v55 }
  0x41   : > { %659 = vmatpush2.bf16.msra.mxu1 %v941_v56  ;;  %617 = vmatprep.subr.bf16.mxu0 %v942_v57 }
  0x42   : > { %660 = vmatprep.subr.bf16.mxu1 %v944_v58 }
  0x44   : > { %618 = vmatpush2.bf16.msra.mxu0 %v946_v59 }
  0x45   : > { %661 = vmatpush2.bf16.msra.mxu1 %v947_v60  ;;  %619 = vmatprep.subr.bf16.mxu0 %v948_v61 }
  0x46   : > { %662 = vmatprep.subr.bf16.mxu1 %v950_v62 }
  0x48   : > { %620 = vmatpush2.bf16.msra.mxu0 %v952_v63 }
  0x49   : > { %663 = vmatpush2.bf16.msra.mxu1 %v953_v0  ;;  %621 = vmatprep.subr.bf16.mxu0 %v954_v1 }
  0x4a   : > { %664 = vmatprep.subr.bf16.mxu1 %v956_v2 }
  0x4c   : > { %622 = vmatpush2.bf16.msra.mxu0 %v958_v3 }
  0x4d   : > { %665 = vmatpush2.bf16.msra.mxu1 %v959_v4 }
  0x4f   : > { %624 = vmatmul.mubr.bf16.vlgmr.msra.gmra.mxu0 %v960_v5 }
  0x50   : > { %667 = vmatmul.mubr.bf16.vlgmr.msra.gmra.mxu1 %v963_v6 }
  0x88   : > { %v244_v7 = vpop.permute.xlu0 %243 }
  0x8c   : > { %v249_v13 = vpop.permute.xlu0 %248 }
 0x10f   : > { %v625_v8 = vpop.f32.mrf.mxu0 }
 0x110   : > { %v668_v9 = vpop.f32.mrf.mxu1  ;;  %v626_v10 = vadd.f32 %v625_v8, %v244_v7 }
 0x111   : > { %v627_v11 = vpop.f32.mrf.mxu0 }
 0x112   : > { %v670_v12 = vpop.f32.mrf.mxu1  ;;  %v628_v14 = vadd.f32 %v627_v11, %v244_v7  ;;  %v669_v17 = vadd.f32 %v668_v9, %v626_v10 }
 0x113   : > { %v629_v15 = vpop.f32.mrf.mxu0 }
 0x114   : > { %v672_v16 = vpop.f32.mrf.mxu1  ;;  %v671_v18 = vadd.f32 %v670_v12, %v628_v14  ;;  %v630_v19 = vadd.f32 %v629_v15, %v249_v13 }
 0x115   : > { %v631_v20 = vpop.f32.mrf.mxu0 }
 0x116   : > { %v632_v21 = vadd.f32 %v631_v20, %v249_v13  ;;  %v677_v22 = vadd.f32 %v671_v18, %v669_v17  ;;  %v674_v23 = vpop.f32.mrf.mxu1  ;;  %v673_v24 = vadd.f32 %v672_v16, %v630_v19 }
 0x118   : > { %v675_v25 = vadd.f32 %v674_v23, %v632_v21  ;;  %678 = vadd.xlane.f32.xlu1 %v677_v22 }
 0x11a   : > { %v680_v26 = vadd.f32 %v675_v25, %v673_v24 }
 0x11c   : > { %681 = vadd.xlane.f32.xlu1 %v680_v26 }
 0x1a1   : > { %v679_v27 = vpop.xlane.xlu1 %678 }
 0x1a2   : > { %v684_v28 = vmul.f32 0.00390625, %v679_v27 }
 0x1a4   : > { %v686_v29 = vsub.f32 %v669_v17, %v684_v28  ;;  %v687_v30 = vsub.f32 %v671_v18, %v684_v28 }
 0x1a5   : > { %v682_v31 = vpop.xlane.xlu1 %681 }
 0x1a6   : > { %v685_v32 = vmul.f32 0.00390625, %v682_v31  ;;  %v690_v33 = vmul.f32 %v686_v29, %v686_v29  ;;  %v691_v34 = vmul.f32 %v687_v30, %v687_v30 }
 0x1a8   : > { %v688_v35 = vsub.f32 %v673_v24, %v685_v32  ;;  %v689_v36 = vsub.f32 %v675_v25, %v685_v32  ;;  %v694_v37 = vadd.f32 %v691_v34, %v690_v33 }
 0x1aa   : > { %695 = vadd.xlane.f32.xlu0 %v694_v37  ;;  %v692_v38 = vmul.f32 %v688_v35, %v688_v35  ;;  %v693_v39 = vmul.f32 %v689_v36, %v689_v36 }
 0x1ac   : > { %v697_v40 = vadd.f32 %v693_v39, %v692_v38 }
 0x1ae   : > { %698 = vadd.xlane.f32.xlu1 %v697_v40 }
 0x233   : > { %v696_v41 = vpop.xlane.xlu0 %695 }
 0x234   : > { %v700_v42 = vmul.f32 0.00390625, %v696_v41 }
 0x236   : > { %v702_v43 = vadd.f32 1e-05, %v700_v42 }
 0x237   : > { %v699_v44 = vpop.xlane.xlu1 %698 }
 0x238   : > { %966 = vrsqrt.f32 %v702_v43  ;;  %v701_v45 = vmul.f32 0.00390625, %v699_v44 }
 0x23a   : > { %v703_v46 = vadd.f32 1e-05, %v701_v45 }
 0x23c   : > { %968 = vrsqrt.f32 %v703_v46 }
 0x245   : > { %v967_v47 = vpop.eup %966 }
 0x246   : > { %v706_v48 = vmul.f32 %v967_v47, %v686_v29  ;;  %v707_v49 = vmul.f32 %v967_v47, %v687_v30 }
 0x248   : > { %v710_v50 = vmax.f32 %v706_v48, 0.0  ;;  %v711_v51 = vmax.f32 %v707_v49, 0.0 }
 0x249   : > { %v969_v52 = vpop.eup %968 }
 0x24a   : > { %714 = vst [vmem:[%s170_s6] sm:$0xff] %v710_v50  ;;  %715 = vst [vmem:[%s170_s6 + $0x8] sm:$0xff] %v711_v51  ;;  %v708_v53 = vmul.f32 %v969_v52, %v688_v35  ;;  %v709_v54 = vmul.f32 %v969_v52, %v689_v36 }
 0x24c   : > { %v712_v55 = vmax.f32 %v708_v53, 0.0  ;;  %v713_v56 = vmax.f32 %v709_v54, 0.0 }
 0x24e   : > { %716 = vst [vmem:[%s170_s6 + $0x10] sm:$0xff] %v712_v55  ;;  %717 = vst [vmem:[%s170_s6 + $0x18] sm:$0xff] %v713_v56 }
 0x24f PF: > { %s13_s12 = sadd.s32 1, %s976_s12  }
 0x250   : > { %p10_p4 = scmp.ge.s32.totalorder %s13_s12, 4  }
 0x252   :  { %12 = sbr.rel (!%p10_p4) target bundleno = 1 (0x1), region = 62 }

// kernel: styled_generator_forward.12
= control target key start
LH: loop header
LB: loop body
LE: loop exit
PB: predicated region body
PF: predicated region fallthrough
CT: control target
= control target key end

     0   :  { %s1421_s12 = smov 0   ;;  %s1596_s0 = inlined_call_operand.vmem [shape: bf16[8,256], index: 0, kind: input, shape index: {}]   ;;  %s1597_s1 = inlined_call_operand.vmem [shape: bf16[2,256,1024], index: 1, kind: input, shape index: {}]   ;;  %s1598_s2 = inlined_call_operand.vmem [shape: f32[8,1], index: 2, kind: input, shape index: {}]   ;;  %s1599_s3 = inlined_call_operand.vmem [shape: f32[2,8,1024], index: 3, kind: output, shape index: {}]  }
   0x1 LB: > { %s1235_s13 = sadd.s32 4294967295, %s1398_s12   ;;  %p1239_p0 = scmp.ge.s32.totalorder %s1398_s12, 1  ;;  %s1398_s12 = sphi %s1421_s12, %s13_s12  }
   0x2   : > { %p137_p1 = scmp.lt.s32.totalorder %s1398_s12, 3 }
   0x4   : > { %p138_p2 = pnand %p1239_p0, %p137_p1 }
   0x5   : > { %p161_p3 = scmp.lt.s32.totalorder (!%p138_p2), %s1235_s13, 1 }
   0x6   : > { %141 = sbr.rel (%p138_p2) target bundleno = 671 (0x29f), region = 32 }
   0xb   : > { %v1432_v0 = vld [vmem:[%s1596_s0] sm:$0xff]  ;;  %s1601_s13 = smov (!%p161_p3, %s1235_s13), 1  ;;  %v1400_v28 = vmov 0  }
   0xc   : > { %v1436_v1 = vcombine.high %v1432_v0, %v1432_v0  ;;  %s1376_s16 = sshll.u32 %s1601_s13, 10  ;;  %1387 = vset.pattern.permute.xlu0 %v1400_v28  ;;  %s1377_s22 = sshll.u32 %s1601_s13, 6 }
   0xd   : > { %s1446_s19 = scalar_lea.vmem %s1597_s1, %s1376_s16  ;;  %s170_s25 = scalar_lea.vmem %s1599_s3, %s1377_s22 }
   0xe   : > { %985 = vmatprep.mubr.bf16.mxu0 %v1436_v1  ;;  %1026 = vmatprep.mubr.bf16.mxu1 %v1436_v1  ;;  %v228_v2 = vld [vmem:[%s1446_s19 + $0x1c0] sm:$0xff]  ;;  %v229_v4 = vld [vmem:[%s1446_s19 + $0x1c8] sm:$0xff] }
   0xf   : > { %v232_v3 = vld [vmem:[%s1446_s19 + $0x1e0] sm:$0xff]  ;;  %v233_v6 = vld [vmem:[%s1446_s19 + $0x1e8] sm:$0xff] }
  0x10   : > { %v1303_v5 = vcombine.high %v228_v2, %v232_v3  ;;  %v1302_v7 = vcombine.low %v228_v2, %v232_v3  ;;  %v220_v8 = vld [vmem:[%s1446_s19 + $0x180] sm:$0xff]  ;;  %v1305_v10 = vcombine.high %v229_v4, %v233_v6  ;;  %v1304_v11 = vcombine.low %v229_v4, %v233_v6  ;;  %v221_v13 = vld [vmem:[%s1446_s19 + $0x188] sm:$0xff] }
  0x11   : > { %v224_v9 = vld [vmem:[%s1446_s19 + $0x1a0] sm:$0xff]  ;;  %v225_v14 = vld [vmem:[%s1446_s19 + $0x1a8] sm:$0xff] }
  0x12   : > { %v1295_v12 = vcombine.high %v220_v8, %v224_v9  ;;  %v212_v15 = vld [vmem:[%s1446_s19 + $0x140] sm:$0xff]  ;;  %953 = vmatprep.subr.bf16.mxu0 %v1303_v5  ;;  %v1297_v16 = vcombine.high %v221_v13, %v225_v14  ;;  %v213_v18 = vld [vmem:[%s1446_s19 + $0x148] sm:$0xff]  ;;  %994 = vmatprep.subr.bf16.mxu1 %v1305_v10  ;;  %v1294_v20 = vcombine.low %v220_v8, %v224_v9 }
  0x13   : > { %v216_v17 = vld [vmem:[%s1446_s19 + $0x160] sm:$0xff]  ;;  %v217_v19 = vld [vmem:[%s1446_s19 + $0x168] sm:$0xff]  ;;  %954 = vmatpush1.bf16.msra.mxu0 %v1302_v7  ;;  %995 = vmatpush1.bf16.msra.mxu1 %v1304_v11  ;;  %v1296_v21 = vcombine.low %v221_v13, %v225_v14 }
  0x14   : > { %955 = vmatprep.subr.bf16.mxu0 %v1295_v12  ;;  %v1287_v22 = vcombine.high %v212_v15, %v216_v17  ;;  %996 = vmatprep.subr.bf16.mxu1 %v1297_v16  ;;  %v1289_v23 = vcombine.high %v213_v18, %v217_v19  ;;  %v204_v24 = vld [vmem:[%s1446_s19 + $0x100] sm:$0xff]  ;;  %v205_v26 = vld [vmem:[%s1446_s19 + $0x108] sm:$0xff]  ;;  %v1286_v29 = vcombine.low %v212_v15, %v216_v17 }
  0x15   : > { %v208_v25 = vld [vmem:[%s1446_s19 + $0x120] sm:$0xff]  ;;  %v209_v27 = vld [vmem:[%s1446_s19 + $0x128] sm:$0xff]  ;;  %v1288_v30 = vcombine.low %v213_v18, %v217_v19 }
  0x16   : > { %v1279_v31 = vcombine.high %v204_v24, %v208_v25  ;;  %v1281_v32 = vcombine.high %v205_v26, %v209_v27  ;;  %v196_v33 = vld [vmem:[%s1446_s19 + $0xc0] sm:$0xff]  ;;  %v197_v35 = vld [vmem:[%s1446_s19 + $0xc8] sm:$0xff]  ;;  %v1278_v37 = vcombine.low %v204_v24, %v208_v25  ;;  %v1280_v38 = vcombine.low %v205_v26, %v209_v27 }
  0x17   : > { %956 = vmatpush1.bf16.msra.mxu0 %v1294_v20  ;;  %997 = vmatpush1.bf16.msra.mxu1 %v1296_v21  ;;  %v200_v34 = vld [vmem:[%s1446_s19 + $0xe0] sm:$0xff]  ;;  %v201_v36 = vld [vmem:[%s1446_s19 + $0xe8] sm:$0xff] }
  0x18   : > { %957 = vmatprep.subr.bf16.mxu0 %v1287_v22  ;;  %998 = vmatprep.subr.bf16.mxu1 %v1289_v23  ;;  %v1271_v39 = vcombine.high %v196_v33, %v200_v34  ;;  %v1273_v40 = vcombine.high %v197_v35, %v201_v36  ;;  %v188_v41 = vld [vmem:[%s1446_s19 + $0x80] sm:$0xff]  ;;  %v189_v43 = vld [vmem:[%s1446_s19 + $0x88] sm:$0xff]  ;;  %v1270_v45 = vcombine.low %v196_v33, %v200_v34 }
  0x19   : > { %v192_v42 = vld [vmem:[%s1446_s19 + $0xa0] sm:$0xff]  ;;  %v193_v44 = vld [vmem:[%s1446_s19 + $0xa8] sm:$0xff]  ;;  %v1272_v46 = vcombine.low %v197_v35, %v201_v36 }
  0x1a   : > { %v1263_v47 = vcombine.high %v188_v41, %v192_v42  ;;  %v1265_v48 = vcombine.high %v189_v43, %v193_v44  ;;  %v180_v49 = vld [vmem:[%s1446_s19 + $0x40] sm:$0xff]  ;;  %v181_v51 = vld [vmem:[%s1446_s19 + $0x48] sm:$0xff]  ;;  %v1262_v53 = vcombine.low %v188_v41, %v192_v42  ;;  %v1264_v54 = vcombine.low %v189_v43, %v193_v44 }
  0x1b   : > { %958 = vmatpush1.bf16.msra.mxu0 %v1286_v29  ;;  %999 = vmatpush1.bf16.msra.mxu1 %v1288_v30  ;;  %v184_v50 = vld [vmem:[%s1446_s19 + $0x60] sm:$0xff]  ;;  %v185_v52 = vld [vmem:[%s1446_s19 + $0x68] sm:$0xff] }
  0x1c   : > { %959 = vmatprep.subr.bf16.mxu0 %v1279_v31  ;;  %1000 = vmatprep.subr.bf16.mxu1 %v1281_v32  ;;  %v1255_v55 = vcombine.high %v180_v49, %v184_v50  ;;  %v1257_v56 = vcombine.high %v181_v51, %v185_v52  ;;  %v172_v57 = vld [vmem:[%s1446_s19] sm:$0xff]  ;;  %v173_v59 = vld [vmem:[%s1446_s19 + $0x8] sm:$0xff]  ;;  %v1254_v61 = vcombine.low %v180_v49, %v184_v50 }
  0x1d   : > { %v176_v58 = vld [vmem:[%s1446_s19 + $0x20] sm:$0xff]  ;;  %v177_v60 = vld [vmem:[%s1446_s19 + $0x28] sm:$0xff]  ;;  %v1256_v62 = vcombine.low %v181_v51, %v185_v52 }
  0x1e   : > { %v1247_v63 = vcombine.high %v172_v57, %v176_v58  ;;  %v1249_v2 = vcombine.high %v173_v59, %v177_v60  ;;  %v292_v3 = vld [vmem:[%s1446_s19 + $0x3c0] sm:$0xff]  ;;  %v293_v5 = vld [vmem:[%s1446_s19 + $0x3c8] sm:$0xff]  ;;  %v1246_v7 = vcombine.low %v172_v57, %v176_v58  ;;  %v1248_v8 = vcombine.low %v173_v59, %v177_v60 }
  0x1f   : > { %960 = vmatpush1.bf16.msra.mxu0 %v1278_v37  ;;  %1001 = vmatpush1.bf16.msra.mxu1 %v1280_v38  ;;  %v296_v4 = vld [vmem:[%s1446_s19 + $0x3e0] sm:$0xff]  ;;  %v297_v6 = vld [vmem:[%s1446_s19 + $0x3e8] sm:$0xff] }
  0x20   : > { %961 = vmatprep.subr.bf16.mxu0 %v1271_v39  ;;  %1002 = vmatprep.subr.bf16.mxu1 %v1273_v40  ;;  %v1367_v9 = vcombine.high %v292_v3, %v296_v4  ;;  %v1369_v10 = vcombine.high %v293_v5, %v297_v6  ;;  %v284_v11 = vld [vmem:[%s1446_s19 + $0x380] sm:$0xff]  ;;  %v285_v13 = vld [vmem:[%s1446_s19 + $0x388] sm:$0xff]  ;;  %v1366_v15 = vcombine.low %v292_v3, %v296_v4 }
  0x21   : > { %v288_v12 = vld [vmem:[%s1446_s19 + $0x3a0] sm:$0xff]  ;;  %v289_v14 = vld [vmem:[%s1446_s19 + $0x3a8] sm:$0xff]  ;;  %v1368_v16 = vcombine.low %v293_v5, %v297_v6  ;;  %v230_v6 = vld [vmem:[%s1446_s19 + $0x1d0] sm:$0xff] }
  0x22   : > { %v1359_v17 = vcombine.high %v284_v11, %v288_v12  ;;  %v1361_v18 = vcombine.high %v285_v13, %v289_v14  ;;  %v276_v19 = vld [vmem:[%s1446_s19 + $0x340] sm:$0xff]  ;;  %v277_v21 = vld [vmem:[%s1446_s19 + $0x348] sm:$0xff]  ;;  %v1358_v23 = vcombine.low %v284_v11, %v288_v12  ;;  %v1360_v24 = vcombine.low %v285_v13, %v289_v14  ;;  %v222_v14 = vld [vmem:[%s1446_s19 + $0x190] sm:$0xff] }
  0x23   : > { %962 = vmatpush1.bf16.msra.mxu0 %v1270_v45  ;;  %1003 = vmatpush1.bf16.msra.mxu1 %v1272_v46  ;;  %v280_v20 = vld [vmem:[%s1446_s19 + $0x360] sm:$0xff]  ;;  %v281_v22 = vld [vmem:[%s1446_s19 + $0x368] sm:$0xff] }
  0x24   : > { %963 = vmatprep.subr.bf16.mxu0 %v1263_v47  ;;  %1004 = vmatprep.subr.bf16.mxu1 %v1265_v48  ;;  %v1351_v25 = vcombine.high %v276_v19, %v280_v20  ;;  %v1353_v26 = vcombine.high %v277_v21, %v281_v22  ;;  %v268_v27 = vld [vmem:[%s1446_s19 + $0x300] sm:$0xff]  ;;  %v269_v29 = vld [vmem:[%s1446_s19 + $0x308] sm:$0xff]  ;;  %v1350_v31 = vcombine.low %v276_v19, %v280_v20 }
  0x25   : > { %v272_v28 = vld [vmem:[%s1446_s19 + $0x320] sm:$0xff]  ;;  %v273_v30 = vld [vmem:[%s1446_s19 + $0x328] sm:$0xff]  ;;  %v1352_v32 = vcombine.low %v277_v21, %v281_v22 }
  0x26   : > { %v1343_v33 = vcombine.high %v268_v27, %v272_v28  ;;  %v1345_v34 = vcombine.high %v269_v29, %v273_v30  ;;  %v260_v35 = vld [vmem:[%s1446_s19 + $0x2c0] sm:$0xff]  ;;  %v261_v38 = vld [vmem:[%s1446_s19 + $0x2c8] sm:$0xff]  ;;  %v1342_v40 = vcombine.low %v268_v27, %v272_v28  ;;  %v1344_v41 = vcombine.low %v269_v29, %v273_v30  ;;  %v206_v30 = vld [vmem:[%s1446_s19 + $0x110] sm:$0xff] }
  0x27   : > { %964 = vmatpush1.bf16.msra.mxu0 %v1262_v53  ;;  %1005 = vmatpush1.bf16.msra.mxu1 %v1264_v54  ;;  %v264_v36 = vld [vmem:[%s1446_s19 + $0x2e0] sm:$0xff]  ;;  %v265_v39 = vld [vmem:[%s1446_s19 + $0x2e8] sm:$0xff] }
  0x28   : > { %965 = vmatprep.subr.bf16.mxu0 %v1255_v55  ;;  %1006 = vmatprep.subr.bf16.mxu1 %v1257_v56  ;;  %v300_v37 = vld [vmem:[%s1598_s2] sm:$0xff]  ;;  %v1335_v42 = vcombine.high %v260_v35, %v264_v36  ;;  %v1337_v43 = vcombine.high %v261_v38, %v265_v39  ;;  %v253_v46 = vld [vmem:[%s1446_s19 + $0x288] sm:$0xff]  ;;  %v1334_v48 = vcombine.low %v260_v35, %v264_v36 }
  0x29   : > { %303 = vperm.xlu0 %1387, %v300_v37   ;;  %v252_v44 = vld [vmem:[%s1446_s19 + $0x280] sm:$0xff]  ;;  %v257_v47 = vld [vmem:[%s1446_s19 + $0x2a8] sm:$0xff]  ;;  %v1336_v49 = vcombine.low %v261_v38, %v265_v39  ;;  %v198_v38 = vld [vmem:[%s1446_s19 + $0xd0] sm:$0xff] }
  0x2a   : > { %v256_v45 = vld [vmem:[%s1446_s19 + $0x2a0] sm:$0xff]  ;;  %v1329_v51 = vcombine.high %v253_v46, %v257_v47  ;;  %v245_v54 = vld [vmem:[%s1446_s19 + $0x248] sm:$0xff]  ;;  %v1328_v57 = vcombine.low %v253_v46, %v257_v47  ;;  %v202_v39 = vld [vmem:[%s1446_s19 + $0xf0] sm:$0xff] }
  0x2b   : > { %966 = vmatpush1.bf16.msra.mxu0 %v1254_v61  ;;  %1007 = vmatpush1.bf16.msra.mxu1 %v1256_v62  ;;  %v1327_v50 = vcombine.high %v252_v44, %v256_v45  ;;  %v244_v52 = vld [vmem:[%s1446_s19 + $0x240] sm:$0xff]  ;;  %v249_v55 = vld [vmem:[%s1446_s19 + $0x268] sm:$0xff]  ;;  %v1326_v56 = vcombine.low %v252_v44, %v256_v45  ;;  %v190_v45 = vld [vmem:[%s1446_s19 + $0x90] sm:$0xff] }
  0x2c   : > { %967 = vmatprep.subr.bf16.mxu0 %v1247_v63  ;;  %1008 = vmatprep.subr.bf16.mxu1 %v1249_v2  ;;  %v248_v53 = vld [vmem:[%s1446_s19 + $0x260] sm:$0xff]  ;;  %v1321_v59 = vcombine.high %v245_v54, %v249_v55  ;;  %v237_v62 = vld [vmem:[%s1446_s19 + $0x208] sm:$0xff]  ;;  %v1320_v3 = vcombine.low %v245_v54, %v249_v55  ;;  %v194_v46 = vld [vmem:[%s1446_s19 + $0xb0] sm:$0xff] }
  0x2d   : > { %v1319_v58 = vcombine.high %v244_v52, %v248_v53  ;;  %v236_v60 = vld [vmem:[%s1446_s19 + $0x200] sm:$0xff]  ;;  %v241_v63 = vld [vmem:[%s1446_s19 + $0x228] sm:$0xff]  ;;  %v1318_v2 = vcombine.low %v244_v52, %v248_v53  ;;  %v191_v47 = vld [vmem:[%s1446_s19 + $0x98] sm:$0xff] }
  0x2e   : > { %v240_v61 = vld [vmem:[%s1446_s19 + $0x220] sm:$0xff]  ;;  %v1313_v5 = vcombine.high %v237_v62, %v241_v63  ;;  %v1312_v11 = vcombine.low %v237_v62, %v241_v63  ;;  %v182_v53 = vld [vmem:[%s1446_s19 + $0x50] sm:$0xff]  ;;  %v183_v55 = vld [vmem:[%s1446_s19 + $0x58] sm:$0xff] }
  0x2f   : > { %968 = vmatpush1.bf16.msra.mxu0 %v1246_v7  ;;  %1009 = vmatpush1.bf16.msra.mxu1 %v1248_v8  ;;  %v1311_v4 = vcombine.high %v236_v60, %v240_v61  ;;  %v234_v7 = vld [vmem:[%s1446_s19 + $0x1f0] sm:$0xff]  ;;  %v231_v8 = vld [vmem:[%s1446_s19 + $0x1d8] sm:$0xff] }
  0x30   : > { %969 = vmatprep.subr.bf16.mxu0 %v1367_v9  ;;  %1010 = vmatprep.subr.bf16.mxu1 %v1369_v10  ;;  %v235_v9 = vld [vmem:[%s1446_s19 + $0x1f8] sm:$0xff]  ;;  %v1310_v10 = vcombine.low %v236_v60, %v240_v61  ;;  %v1307_v12 = vcombine.high %v230_v6, %v234_v7  ;;  %v1306_v19 = vcombine.low %v230_v6, %v234_v7  ;;  %v186_v54 = vld [vmem:[%s1446_s19 + $0x70] sm:$0xff] }
  0x31   : > { %v1309_v13 = vcombine.high %v231_v8, %v235_v9  ;;  %v1308_v20 = vcombine.low %v231_v8, %v235_v9  ;;  %v174_v61 = vld [vmem:[%s1446_s19 + $0x10] sm:$0xff]  ;;  %v175_v63 = vld [vmem:[%s1446_s19 + $0x18] sm:$0xff] }
  0x32   : > { %v178_v62 = vld [vmem:[%s1446_s19 + $0x30] sm:$0xff]  ;;  %v295_v9 = vld [vmem:[%s1446_s19 + $0x3d8] sm:$0xff] }
  0x33   : > { %970 = vmatpush2.bf16.msra.mxu0 %v1366_v15  ;;  %1011 = vmatpush2.bf16.msra.mxu1 %v1368_v16  ;;  %v226_v15 = vld [vmem:[%s1446_s19 + $0x1b0] sm:$0xff]  ;;  %v1523_v16 = vcombine.low %v1432_v0, %v1432_v0  ;;  %v215_v0 = vld [vmem:[%s1446_s19 + $0x158] sm:$0xff] }
  0x34   : > { %971 = vmatprep.subr.bf16.mxu0 %v1359_v17  ;;  %1012 = vmatprep.subr.bf16.mxu1 %v1361_v18  ;;  %v223_v17 = vld [vmem:[%s1446_s19 + $0x198] sm:$0xff]  ;;  %v1299_v21 = vcombine.high %v222_v14, %v226_v15  ;;  %v294_v7 = vld [vmem:[%s1446_s19 + $0x3d0] sm:$0xff] }
  0x35   : > { %v227_v18 = vld [vmem:[%s1446_s19 + $0x1b8] sm:$0xff]  ;;  %v298_v8 = vld [vmem:[%s1446_s19 + $0x3f0] sm:$0xff] }
  0x36   : > { %v1301_v22 = vcombine.high %v223_v17, %v227_v18  ;;  %v1300_v27 = vcombine.low %v223_v17, %v227_v18  ;;  %v290_v17 = vld [vmem:[%s1446_s19 + $0x3b0] sm:$0xff]  ;;  %v287_v18 = vld [vmem:[%s1446_s19 + $0x398] sm:$0xff] }
  0x37   : > { %972 = vmatpush2.bf16.msra.mxu0 %v1358_v23  ;;  %1013 = vmatpush2.bf16.msra.mxu1 %v1360_v24  ;;  %v214_v23 = vld [vmem:[%s1446_s19 + $0x150] sm:$0xff] }
  0x38   : > { %973 = vmatprep.subr.bf16.mxu0 %v1351_v25  ;;  %1014 = vmatprep.subr.bf16.mxu1 %v1353_v26  ;;  %v218_v24 = vld [vmem:[%s1446_s19 + $0x170] sm:$0xff]  ;;  %v219_v25 = vld [vmem:[%s1446_s19 + $0x178] sm:$0xff]  ;;  %v1298_v26 = vcombine.low %v222_v14, %v226_v15 }
  0x39   : > { %v1291_v28 = vcombine.high %v214_v23, %v218_v24  ;;  %v1293_v29 = vcombine.high %v215_v0, %v219_v25  ;;  %v1292_v35 = vcombine.low %v215_v0, %v219_v25  ;;  %v286_v15 = vld [vmem:[%s1446_s19 + $0x390] sm:$0xff]  ;;  %v279_v25 = vld [vmem:[%s1446_s19 + $0x358] sm:$0xff] }
  0x3a   : > { %v282_v0 = vld [vmem:[%s1446_s19 + $0x370] sm:$0xff] }
  0x3b   : > { %974 = vmatpush2.bf16.msra.mxu0 %v1350_v31  ;;  %1015 = vmatpush2.bf16.msra.mxu1 %v1352_v32  ;;  %v210_v31 = vld [vmem:[%s1446_s19 + $0x130] sm:$0xff]  ;;  %v207_v32 = vld [vmem:[%s1446_s19 + $0x118] sm:$0xff] }
  0x3c   : > { %975 = vmatprep.subr.bf16.mxu0 %v1343_v33  ;;  %1016 = vmatprep.subr.bf16.mxu1 %v1345_v34  ;;  %v211_v33 = vld [vmem:[%s1446_s19 + $0x138] sm:$0xff]  ;;  %v1290_v34 = vcombine.low %v214_v23, %v218_v24  ;;  %v1283_v36 = vcombine.high %v206_v30, %v210_v31  ;;  %v278_v24 = vld [vmem:[%s1446_s19 + $0x350] sm:$0xff] }
  0x3d   : > { %v1285_v37 = vcombine.high %v207_v32, %v211_v33 }
  0x3f   : > { %976 = vmatpush2.bf16.msra.mxu0 %v1342_v40  ;;  %1017 = vmatpush2.bf16.msra.mxu1 %v1344_v41  ;;  %v199_v40 = vld [vmem:[%s1446_s19 + $0xd8] sm:$0xff] }
  0x40   : > { %977 = vmatprep.subr.bf16.mxu0 %v1335_v42  ;;  %1018 = vmatprep.subr.bf16.mxu1 %v1337_v43  ;;  %v203_v41 = vld [vmem:[%s1446_s19 + $0xf8] sm:$0xff]  ;;  %v1282_v42 = vcombine.low %v206_v30, %v210_v31  ;;  %v1275_v43 = vcombine.high %v198_v38, %v202_v39  ;;  %v270_v31 = vld [vmem:[%s1446_s19 + $0x310] sm:$0xff] }
  0x41   : > { %v1277_v44 = vcombine.high %v199_v40, %v203_v41 }
  0x43   : > { %978 = vmatpush2.bf16.msra.mxu0 %v1334_v48  ;;  %1019 = vmatpush2.bf16.msra.mxu1 %v1336_v49  ;;  %v195_v48 = vld [vmem:[%s1446_s19 + $0xb8] sm:$0xff]  ;;  %v1274_v49 = vcombine.low %v198_v38, %v202_v39  ;;  %v262_v39 = vld [vmem:[%s1446_s19 + $0x2d0] sm:$0xff] }
  0x44   : > { %979 = vmatprep.subr.bf16.mxu0 %v1327_v50  ;;  %1020 = vmatprep.subr.bf16.mxu1 %v1329_v51  ;;  %v1276_v50 = vcombine.low %v199_v40, %v203_v41  ;;  %v1267_v51 = vcombine.high %v190_v45, %v194_v46  ;;  %v1269_v52 = vcombine.high %v191_v47, %v195_v48  ;;  %v266_v40 = vld [vmem:[%s1446_s19 + $0x2f0] sm:$0xff]  ;;  %v263_v41 = vld [vmem:[%s1446_s19 + $0x2d8] sm:$0xff] }
  0x47   : > { %980 = vmatpush2.bf16.msra.mxu0 %v1326_v56  ;;  %1021 = vmatpush2.bf16.msra.mxu1 %v1328_v57  ;;  %v187_v56 = vld [vmem:[%s1446_s19 + $0x78] sm:$0xff]  ;;  %v1266_v57 = vcombine.low %v190_v45, %v194_v46  ;;  %v254_v46 = vld [vmem:[%s1446_s19 + $0x290] sm:$0xff] }
  0x48   : > { %981 = vmatprep.subr.bf16.mxu0 %v1319_v58  ;;  %1022 = vmatprep.subr.bf16.mxu1 %v1321_v59  ;;  %v1268_v58 = vcombine.low %v191_v47, %v195_v48  ;;  %v1259_v59 = vcombine.high %v182_v53, %v186_v54  ;;  %v1261_v60 = vcombine.high %v183_v55, %v187_v56  ;;  %v258_v47 = vld [vmem:[%s1446_s19 + $0x2b0] sm:$0xff]  ;;  %v255_v48 = vld [vmem:[%s1446_s19 + $0x298] sm:$0xff] }
  0x4b   : > { %982 = vmatpush2.bf16.msra.mxu0 %v1318_v2  ;;  %1023 = vmatpush2.bf16.msra.mxu1 %v1320_v3  ;;  %v179_v2 = vld [vmem:[%s1446_s19 + $0x38] sm:$0xff]  ;;  %v1258_v3 = vcombine.low %v182_v53, %v186_v54  ;;  %v246_v54 = vld [vmem:[%s1446_s19 + $0x250] sm:$0xff] }
  0x4c   : > { %983 = vmatprep.subr.bf16.mxu0 %v1311_v4  ;;  %1024 = vmatprep.subr.bf16.mxu1 %v1313_v5  ;;  %v1260_v4 = vcombine.low %v183_v55, %v187_v56  ;;  %v1251_v5 = vcombine.high %v174_v61, %v178_v62  ;;  %v1253_v6 = vcombine.high %v175_v63, %v179_v2  ;;  %v250_v55 = vld [vmem:[%s1446_s19 + $0x270] sm:$0xff]  ;;  %v247_v56 = vld [vmem:[%s1446_s19 + $0x258] sm:$0xff] }
  0x4f   : > { %984 = vmatpush2.bf16.msra.mxu0 %v1310_v10  ;;  %1025 = vmatpush2.bf16.msra.mxu1 %v1312_v11  ;;  %v299_v10 = vld [vmem:[%s1446_s19 + $0x3f8] sm:$0xff]  ;;  %v1250_v11 = vcombine.low %v174_v61, %v178_v62  ;;  %v238_v62 = vld [vmem:[%s1446_s19 + $0x210] sm:$0xff] }
  0x50   : > { %1035 = vmatprep.subr.bf16.mxu0 %v1307_v12  ;;  %1076 = vmatprep.subr.bf16.mxu1 %v1309_v13  ;;  %v1252_v12 = vcombine.low %v175_v63, %v179_v2  ;;  %v1371_v13 = vcombine.high %v294_v7, %v298_v8  ;;  %v1373_v14 = vcombine.high %v295_v9, %v299_v10  ;;  %v242_v63 = vld [vmem:[%s1446_s19 + $0x230] sm:$0xff]  ;;  %v239_v2 = vld [vmem:[%s1446_s19 + $0x218] sm:$0xff] }
  0x52   : > { %986 = vmatmul.mubr.bf16.vlgmr.msra.gmra.mxu0 %v1523_v16  ;;  %1027 = vmatmul.mubr.bf16.vlgmr.msra.gmra.mxu1 %v1523_v16 }
  0x53   : > { %1036 = vmatpush1.bf16.msra.mxu0 %v1306_v19  ;;  %1077 = vmatpush1.bf16.msra.mxu1 %v1308_v20  ;;  %v291_v19 = vld [vmem:[%s1446_s19 + $0x3b8] sm:$0xff]  ;;  %v1370_v20 = vcombine.low %v294_v7, %v298_v8  ;;  %v1314_v8 = vcombine.low %v238_v62, %v242_v63 }
  0x54   : > { %1037 = vmatprep.subr.bf16.mxu0 %v1299_v21  ;;  %1078 = vmatprep.subr.bf16.mxu1 %v1301_v22  ;;  %v1372_v21 = vcombine.low %v295_v9, %v299_v10  ;;  %v1363_v22 = vcombine.high %v286_v15, %v290_v17  ;;  %v1365_v23 = vcombine.high %v287_v18, %v291_v19 }
  0x55   : > { %1067 = vmatprep.mubr.bf16.mxu0 %v1436_v1  ;;  %1108 = vmatprep.mubr.bf16.mxu1 %v1436_v1  ;;  %v1284_v1 = vcombine.low %v207_v32, %v211_v33  ;;  %v274_v32 = vld [vmem:[%s1446_s19 + $0x330] sm:$0xff]  ;;  %v271_v33 = vld [vmem:[%s1446_s19 + $0x318] sm:$0xff] }
  0x57   : > { %1038 = vmatpush1.bf16.msra.mxu0 %v1298_v26  ;;  %1079 = vmatpush1.bf16.msra.mxu1 %v1300_v27  ;;  %v283_v26 = vld [vmem:[%s1446_s19 + $0x378] sm:$0xff]  ;;  %v1362_v27 = vcombine.low %v286_v15, %v290_v17 }
  0x58   : > { %1039 = vmatprep.subr.bf16.mxu0 %v1291_v28  ;;  %1080 = vmatprep.subr.bf16.mxu1 %v1293_v29  ;;  %v1364_v28 = vcombine.low %v287_v18, %v291_v19  ;;  %v1355_v29 = vcombine.high %v278_v24, %v282_v0  ;;  %v1357_v30 = vcombine.high %v279_v25, %v283_v26 }
  0x5b   : > { %1040 = vmatpush1.bf16.msra.mxu0 %v1290_v34  ;;  %1081 = vmatpush1.bf16.msra.mxu1 %v1292_v35  ;;  %v275_v34 = vld [vmem:[%s1446_s19 + $0x338] sm:$0xff]  ;;  %v1354_v35 = vcombine.low %v278_v24, %v282_v0 }
  0x5c   : > { %1041 = vmatprep.subr.bf16.mxu0 %v1283_v36  ;;  %1082 = vmatprep.subr.bf16.mxu1 %v1285_v37  ;;  %v1356_v36 = vcombine.low %v279_v25, %v283_v26  ;;  %v1347_v37 = vcombine.high %v270_v31, %v274_v32  ;;  %v1349_v38 = vcombine.high %v271_v33, %v275_v34 }
  0x5f   : > { %1042 = vmatpush1.bf16.msra.mxu0 %v1282_v42  ;;  %1083 = vmatpush1.bf16.msra.mxu1 %v1284_v1  ;;  %v267_v42 = vld [vmem:[%s1446_s19 + $0x2f8] sm:$0xff]  ;;  %v1346_v1 = vcombine.low %v270_v31, %v274_v32 }
  0x60   : > { %1043 = vmatprep.subr.bf16.mxu0 %v1275_v43  ;;  %1084 = vmatprep.subr.bf16.mxu1 %v1277_v44  ;;  %v1348_v43 = vcombine.low %v271_v33, %v275_v34  ;;  %v1339_v44 = vcombine.high %v262_v39, %v266_v40  ;;  %v1341_v45 = vcombine.high %v263_v41, %v267_v42 }
  0x63   : > { %1044 = vmatpush1.bf16.msra.mxu0 %v1274_v49  ;;  %1085 = vmatpush1.bf16.msra.mxu1 %v1276_v50  ;;  %v259_v49 = vld [vmem:[%s1446_s19 + $0x2b8] sm:$0xff]  ;;  %v1338_v50 = vcombine.low %v262_v39, %v266_v40 }
  0x64   : > { %1045 = vmatprep.subr.bf16.mxu0 %v1267_v51  ;;  %1086 = vmatprep.subr.bf16.mxu1 %v1269_v52  ;;  %v1340_v51 = vcombine.low %v263_v41, %v267_v42  ;;  %v1331_v52 = vcombine.high %v254_v46, %v258_v47  ;;  %v1333_v53 = vcombine.high %v255_v48, %v259_v49 }
  0x67   : > { %1046 = vmatpush1.bf16.msra.mxu0 %v1266_v57  ;;  %1087 = vmatpush1.bf16.msra.mxu1 %v1268_v58  ;;  %v251_v57 = vld [vmem:[%s1446_s19 + $0x278] sm:$0xff]  ;;  %v1330_v58 = vcombine.low %v254_v46, %v258_v47 }
  0x68   : > { %1047 = vmatprep.subr.bf16.mxu0 %v1259_v59  ;;  %1088 = vmatprep.subr.bf16.mxu1 %v1261_v60  ;;  %v1332_v59 = vcombine.low %v255_v48, %v259_v49  ;;  %v1323_v60 = vcombine.high %v246_v54, %v250_v55  ;;  %v1325_v61 = vcombine.high %v247_v56, %v251_v57 }
  0x6b   : > { %1048 = vmatpush1.bf16.msra.mxu0 %v1258_v3  ;;  %1089 = vmatpush1.bf16.msra.mxu1 %v1260_v4  ;;  %v243_v3 = vld [vmem:[%s1446_s19 + $0x238] sm:$0xff]  ;;  %v1322_v4 = vcombine.low %v246_v54, %v250_v55 }
  0x6c   : > { %1049 = vmatprep.subr.bf16.mxu0 %v1251_v5  ;;  %1090 = vmatprep.subr.bf16.mxu1 %v1253_v6  ;;  %v1324_v5 = vcombine.low %v247_v56, %v251_v57  ;;  %v1315_v6 = vcombine.high %v238_v62, %v242_v63  ;;  %v1317_v7 = vcombine.high %v239_v2, %v243_v3 }
  0x6d   : > { %v1316_v9 = vcombine.low %v239_v2, %v243_v3 }
  0x6f   : > { %1050 = vmatpush1.bf16.msra.mxu0 %v1250_v11  ;;  %1091 = vmatpush1.bf16.msra.mxu1 %v1252_v12 }
  0x70   : > { %1051 = vmatprep.subr.bf16.mxu0 %v1371_v13  ;;  %1092 = vmatprep.subr.bf16.mxu1 %v1373_v14 }
  0x73   : > { %1052 = vmatpush2.bf16.msra.mxu0 %v1370_v20  ;;  %1093 = vmatpush2.bf16.msra.mxu1 %v1372_v21 }
  0x74   : > { %1053 = vmatprep.subr.bf16.mxu0 %v1363_v22  ;;  %1094 = vmatprep.subr.bf16.mxu1 %v1365_v23 }
  0x77   : > { %1054 = vmatpush2.bf16.msra.mxu0 %v1362_v27  ;;  %1095 = vmatpush2.bf16.msra.mxu1 %v1364_v28 }
  0x78   : > { %1055 = vmatprep.subr.bf16.mxu0 %v1355_v29  ;;  %1096 = vmatprep.subr.bf16.mxu1 %v1357_v30 }
  0x7b   : > { %1056 = vmatpush2.bf16.msra.mxu0 %v1354_v35  ;;  %1097 = vmatpush2.bf16.msra.mxu1 %v1356_v36 }
  0x7c   : > { %1057 = vmatprep.subr.bf16.mxu0 %v1347_v37  ;;  %1098 = vmatprep.subr.bf16.mxu1 %v1349_v38 }
  0x7f   : > { %1058 = vmatpush2.bf16.msra.mxu0 %v1346_v1  ;;  %1099 = vmatpush2.bf16.msra.mxu1 %v1348_v43 }
  0x80   : > { %1059 = vmatprep.subr.bf16.mxu0 %v1339_v44  ;;  %1100 = vmatprep.subr.bf16.mxu1 %v1341_v45 }
  0x83   : > { %1060 = vmatpush2.bf16.msra.mxu0 %v1338_v50  ;;  %1101 = vmatpush2.bf16.msra.mxu1 %v1340_v51 }
  0x84   : > { %1061 = vmatprep.subr.bf16.mxu0 %v1331_v52  ;;  %1102 = vmatprep.subr.bf16.mxu1 %v1333_v53 }
  0x87   : > { %1062 = vmatpush2.bf16.msra.mxu0 %v1330_v58  ;;  %1103 = vmatpush2.bf16.msra.mxu1 %v1332_v59 }
  0x88   : > { %1063 = vmatprep.subr.bf16.mxu0 %v1323_v60  ;;  %1104 = vmatprep.subr.bf16.mxu1 %v1325_v61 }
  0x8b   : > { %1064 = vmatpush2.bf16.msra.mxu0 %v1322_v4  ;;  %1105 = vmatpush2.bf16.msra.mxu1 %v1324_v5 }
  0x8c   : > { %1065 = vmatprep.subr.bf16.mxu0 %v1315_v6  ;;  %1106 = vmatprep.subr.bf16.mxu1 %v1317_v7 }
  0x8f   : > { %1066 = vmatpush2.bf16.msra.mxu0 %v1314_v8  ;;  %1107 = vmatpush2.bf16.msra.mxu1 %v1316_v9 }
  0x92   : > { %1068 = vmatmul.mubr.bf16.vlgmr.msra.gmra.mxu0 %v1523_v16  ;;  %1109 = vmatmul.mubr.bf16.vlgmr.msra.gmra.mxu1 %v1523_v16 }
  0xa4   : > { %v304_v19 = vpop.permute.xlu0 %303 }
 0x112   : > { %v987_v10 = vpop.f32.mrf.mxu0  ;;  %v1028_v11 = vpop.f32.mrf.mxu1 }
 0x113   : > { %v988_v20 = vadd.f32 %v987_v10, %v304_v19  ;;  %v1029_v23 = vadd.f32 %v1028_v11, %v304_v19 }
 0x114   : > { %v989_v12 = vpop.f32.mrf.mxu0  ;;  %v1030_v13 = vpop.f32.mrf.mxu1 }
 0x115   : > { %v990_v21 = vadd.f32 %v989_v12, %v304_v19  ;;  %v1031_v24 = vadd.f32 %v1030_v13, %v304_v19 }
 0x116   : > { %v991_v14 = vpop.f32.mrf.mxu0  ;;  %v1032_v15 = vpop.f32.mrf.mxu1 }
 0x117   : > { %v1117_v22 = vadd.f32 %v990_v21, %v988_v20 }
 0x118   : > { %v992_v17 = vpop.f32.mrf.mxu0  ;;  %v1033_v18 = vpop.f32.mrf.mxu1 }
 0x119   : > { %v1118_v0 = vadd.f32 %v1117_v22, %v1029_v23 }
 0x11b   : > { %v1119_v26 = vadd.f32 %v1118_v0, %v1031_v24 }
 0x152   : > { %v1069_v25 = vpop.f32.mrf.mxu0  ;;  %v1110_v28 = vpop.f32.mrf.mxu1 }
 0x153   : > { %v1070_v27 = vadd.f32 %v1069_v25, %v304_v19  ;;  %v1111_v33 = vadd.f32 %v1110_v28, %v304_v19 }
 0x154   : > { %v1071_v16 = vpop.f32.mrf.mxu0  ;;  %v1112_v31 = vpop.f32.mrf.mxu1 }
 0x155   : > { %v1120_v29 = vadd.f32 %v1119_v26, %v1070_v27  ;;  %v1072_v30 = vadd.f32 %v1071_v16, %v304_v19  ;;  %v1113_v37 = vadd.f32 %v1112_v31, %v304_v19 }
 0x156   : > { %v1073_v32 = vpop.f32.mrf.mxu0  ;;  %v1114_v35 = vpop.f32.mrf.mxu1 }
 0x157   : > { %v1121_v34 = vadd.f32 %v1120_v29, %v1072_v30 }
 0x158   : > { %v1074_v36 = vpop.f32.mrf.mxu0  ;;  %v1115_v38 = vpop.f32.mrf.mxu1 }
 0x159   : > { %v1122_v39 = vadd.f32 %v1121_v34, %v1111_v33 }
 0x15b   : > { %v1123_v40 = vadd.f32 %v1122_v39, %v1113_v37 }
 0x15d   : > { %1124 = vadd.xlane.f32.xlu0 %v1123_v40 }
 0x1e6   : > { %v1125_v41 = vpop.xlane.xlu0 %1124 }
 0x1e7   : > { %v1127_v42 = vmul.f32 0.0009765625, %v1125_v41 }
 0x1e9   : > { %v1128_v1 = vsub.f32 %v988_v20, %v1127_v42  ;;  %v1129_v43 = vsub.f32 %v990_v21, %v1127_v42  ;;  %v1130_v44 = vsub.f32 %v1029_v23, %v1127_v42  ;;  %v1131_v45 = vsub.f32 %v1031_v24, %v1127_v42 }
 0x1ea   : > { %v1132_v48 = vsub.f32 %v1070_v27, %v1127_v42  ;;  %v1133_v51 = vsub.f32 %v1072_v30, %v1127_v42  ;;  %v1134_v54 = vsub.f32 %v1111_v33, %v1127_v42  ;;  %v1135_v57 = vsub.f32 %v1113_v37, %v1127_v42 }
 0x1eb   : > { %v1136_v46 = vmul.f32 %v1128_v1, %v1128_v1  ;;  %v1137_v47 = vmul.f32 %v1129_v43, %v1129_v43  ;;  %v1138_v49 = vmul.f32 %v1130_v44, %v1130_v44  ;;  %v1139_v52 = vmul.f32 %v1131_v45, %v1131_v45 }
 0x1ec   : > { %v1140_v55 = vmul.f32 %v1132_v48, %v1132_v48  ;;  %v1141_v58 = vmul.f32 %v1133_v51, %v1133_v51  ;;  %v1142_v60 = vmul.f32 %v1134_v54, %v1134_v54  ;;  %v1143_v62 = vmul.f32 %v1135_v57, %v1135_v57 }
 0x1ed   : > { %v1144_v50 = vadd.f32 %v1137_v47, %v1136_v46 }
 0x1ef   : > { %v1145_v53 = vadd.f32 %v1144_v50, %v1138_v49 }
 0x1f1   : > { %v1146_v56 = vadd.f32 %v1145_v53, %v1139_v52 }
 0x1f3   : > { %v1147_v59 = vadd.f32 %v1146_v56, %v1140_v55 }
 0x1f5   : > { %v1148_v61 = vadd.f32 %v1147_v59, %v1141_v58 }
 0x1f7   : > { %v1149_v63 = vadd.f32 %v1148_v61, %v1142_v60 }
 0x1f9   : > { %v1150_v2 = vadd.f32 %v1149_v63, %v1143_v62 }
 0x1fb   : > { %1151 = vadd.xlane.f32.xlu1 %v1150_v2 }
 0x284   : > { %v1152_v3 = vpop.xlane.xlu1 %1151 }
 0x285   : > { %v1153_v4 = vmul.f32 0.0009765625, %v1152_v3 }
 0x287   : > { %v1154_v5 = vadd.f32 1e-05, %v1153_v4 }
 0x289   : > { %1390 = vrsqrt.f32 %v1154_v5 }
 0x296   : > { %v1391_v6 = vpop.eup %1390 }
 0x297   : > { %v1156_v7 = vmul.f32 %v1391_v6, %v1128_v1  ;;  %v1157_v8 = vmul.f32 %v1391_v6, %v1129_v43  ;;  %v1158_v9 = vmul.f32 %v1391_v6, %v1130_v44  ;;  %v1159_v10 = vmul.f32 %v1391_v6, %v1131_v45 }
 0x298   : > { %v1160_v11 = vmul.f32 %v1391_v6, %v1132_v48  ;;  %v1161_v12 = vmul.f32 %v1391_v6, %v1133_v51  ;;  %v1162_v13 = vmul.f32 %v1391_v6, %v1134_v54  ;;  %v1163_v14 = vmul.f32 %v1391_v6, %v1135_v57 }
 0x299   : > { %v1164_v15 = vmax.f32 %v1156_v7, 0.0  ;;  %v1165_v17 = vmax.f32 %v1157_v8, 0.0  ;;  %v1166_v18 = vmax.f32 %v1158_v9, 0.0  ;;  %v1167_v19 = vmax.f32 %v1159_v10, 0.0 }
 0x29a   : > { %v1168_v20 = vmax.f32 %v1160_v11, 0.0  ;;  %v1169_v21 = vmax.f32 %v1161_v12, 0.0  ;;  %v1170_v22 = vmax.f32 %v1162_v13, 0.0  ;;  %v1171_v23 = vmax.f32 %v1163_v14, 0.0 }
 0x29b   : > { %1172 = vst [vmem:[%s170_s25] sm:$0xff] %v1164_v15  ;;  %1173 = vst [vmem:[%s170_s25 + $0x8] sm:$0xff] %v1165_v17 }
 0x29c   : > { %1174 = vst [vmem:[%s170_s25 + $0x10] sm:$0xff] %v1166_v18  ;;  %1175 = vst [vmem:[%s170_s25 + $0x18] sm:$0xff] %v1167_v19 }
 0x29d   : > { %1176 = vst [vmem:[%s170_s25 + $0x20] sm:$0xff] %v1168_v20  ;;  %1177 = vst [vmem:[%s170_s25 + $0x28] sm:$0xff] %v1169_v21 }
 0x29e   : > { %1178 = vst [vmem:[%s170_s25 + $0x30] sm:$0xff] %v1170_v22  ;;  %1179 = vst [vmem:[%s170_s25 + $0x38] sm:$0xff] %v1171_v23 }
 0x29f PF: > { %s13_s12 = sadd.s32 1, %s1398_s12  }
 0x2a0   : > { %p10_p4 = scmp.ge.s32.totalorder %s13_s12, 4  }
 0x2a2   :  { %12 = sbr.rel (!%p10_p4) target bundleno = 1 (0x1), region = 62 }

// kernel: styled_generator_forward.13
= control target key start
LH: loop header
LB: loop body
LE: loop exit
PB: predicated region body
PF: predicated region fallthrough
CT: control target
= control target key end

     0   :  { %s2911_s12 = smov 0   ;;  %s3288_s0 = inlined_call_operand.vmem [shape: bf16[3,128], index: 0, kind: input, shape index: {}]   ;;  %s3289_s1 = inlined_call_operand.vmem [shape: bf16[2,128,4096], index: 1, kind: input, shape index: {}]   ;;  %s3290_s2 = inlined_call_operand.vmem [shape: f32[3,1], index: 2, kind: input, shape index: {}]   ;;  %s3291_s3 = inlined_call_operand.vmem [shape: f32[2,3,4096], index: 3, kind: output, shape index: {}]  }
   0x1 LB: > { %s2538_s13 = sadd.s32 4294967295, %s2888_s12   ;;  %p2542_p0 = scmp.ge.s32.totalorder %s2888_s12, 1  ;;  %s2888_s12 = sphi %s2911_s12, %s13_s12  }
   0x2   : > { %p137_p1 = scmp.lt.s32.totalorder %s2888_s12, 3 }
   0x4   : > { %p138_p2 = pnand %p2542_p0, %p137_p1 }
   0x5   : > { %p161_p3 = scmp.lt.s32.totalorder (!%p138_p2), %s2538_s13, 1 }
   0x6   : > { %141 = sbr.rel (%p138_p2) target bundleno = 489 (0x1e9), region = 32 }
   0xb   : > { %v429_v0 = vld [vmem:[%s3290_s2] sm:$0x7]  ;;  %v2890_v1 = vmov 0   ;;  %s3293_s13 = smov (!%p161_p3, %s2538_s13), 1 }
   0xc   : > { %1747 = vmatprep.mubr.bf16.mxu0 %v2890_v1  ;;  %1788 = vmatprep.mubr.bf16.mxu1 %v2890_v1  ;;  %s2805_s16 = sshll.u32 %s3293_s13, 11  ;;  %s2806_s24 = sshll.u32 %s3293_s13, 7 }
   0xd   : > { %2816 = vset.pattern.permute.xlu0 %v2890_v1  ;;  %s2931_s19 = scalar_lea.vmem %s3289_s1, %s2805_s16  ;;  %s3233_s27 = scalar_lea.vmem %s3291_s3, %s2806_s24 }
   0xe   : > { %432 = vperm.xlu0 %2816, %v429_v0   ;;  %v397_v2 = vld [vmem:[%s2931_s19 + $0x700] sm:$0xff]  ;;  %v398_v4 = vld [vmem:[%s2931_s19 + $0x708] sm:$0xff]  ;;  %v399_v0 = vld [vmem:[%s2931_s19 + $0x710] sm:$0xff] }
   0xf   : > { %v413_v3 = vld [vmem:[%s2931_s19 + $0x780] sm:$0xff]  ;;  %v414_v6 = vld [vmem:[%s2931_s19 + $0x788] sm:$0xff] }
  0x10   : > { %v2772_v5 = vcombine.high %v397_v2, %v413_v3  ;;  %v2771_v7 = vcombine.low %v397_v2, %v413_v3  ;;  %v365_v8 = vld [vmem:[%s2931_s19 + $0x600] sm:$0xff]  ;;  %v2774_v10 = vcombine.high %v398_v4, %v414_v6  ;;  %v2773_v11 = vcombine.low %v398_v4, %v414_v6  ;;  %v366_v13 = vld [vmem:[%s2931_s19 + $0x608] sm:$0xff]  ;;  %v415_v2 = vld [vmem:[%s2931_s19 + $0x790] sm:$0xff] }
  0x11   : > { %v381_v9 = vld [vmem:[%s2931_s19 + $0x680] sm:$0xff]  ;;  %v382_v14 = vld [vmem:[%s2931_s19 + $0x688] sm:$0xff]  ;;  %v400_v3 = vld [vmem:[%s2931_s19 + $0x718] sm:$0xff] }
  0x12   : > { %v2740_v12 = vcombine.high %v365_v8, %v381_v9  ;;  %v333_v15 = vld [vmem:[%s2931_s19 + $0x500] sm:$0xff]  ;;  %1715 = vmatprep.subr.bf16.mxu0 %v2772_v5  ;;  %v2742_v16 = vcombine.high %v366_v13, %v382_v14  ;;  %v334_v18 = vld [vmem:[%s2931_s19 + $0x508] sm:$0xff]  ;;  %1756 = vmatprep.subr.bf16.mxu1 %v2774_v10  ;;  %v2739_v20 = vcombine.low %v365_v8, %v381_v9  ;;  %v416_v4 = vld [vmem:[%s2931_s19 + $0x798] sm:$0xff] }
  0x13   : > { %v349_v17 = vld [vmem:[%s2931_s19 + $0x580] sm:$0xff]  ;;  %v350_v19 = vld [vmem:[%s2931_s19 + $0x588] sm:$0xff]  ;;  %1716 = vmatpush1.bf16.msra.mxu0 %v2771_v7  ;;  %1757 = vmatpush1.bf16.msra.mxu1 %v2773_v11  ;;  %v2741_v21 = vcombine.low %v366_v13, %v382_v14  ;;  %v2776_v7 = vcombine.high %v399_v0, %v415_v2  ;;  %v2778_v8 = vcombine.high %v400_v3, %v416_v4  ;;  %v367_v9 = vld [vmem:[%s2931_s19 + $0x610] sm:$0xff] }
  0x14   : > { %1717 = vmatprep.subr.bf16.mxu0 %v2740_v12  ;;  %v2708_v22 = vcombine.high %v333_v15, %v349_v17  ;;  %1758 = vmatprep.subr.bf16.mxu1 %v2742_v16  ;;  %v2710_v23 = vcombine.high %v334_v18, %v350_v19  ;;  %v301_v24 = vld [vmem:[%s2931_s19 + $0x400] sm:$0xff]  ;;  %v302_v26 = vld [vmem:[%s2931_s19 + $0x408] sm:$0xff]  ;;  %v2707_v28 = vcombine.low %v333_v15, %v349_v17  ;;  %v383_v10 = vld [vmem:[%s2931_s19 + $0x690] sm:$0xff] }
  0x15   : > { %v317_v25 = vld [vmem:[%s2931_s19 + $0x480] sm:$0xff]  ;;  %v318_v27 = vld [vmem:[%s2931_s19 + $0x488] sm:$0xff]  ;;  %v2709_v29 = vcombine.low %v334_v18, %v350_v19  ;;  %v368_v11 = vld [vmem:[%s2931_s19 + $0x618] sm:$0xff]  ;;  %v2775_v14 = vcombine.low %v399_v0, %v415_v2  ;;  %v2777_v15 = vcombine.low %v400_v3, %v416_v4  ;;  %v2744_v16 = vcombine.high %v367_v9, %v383_v10 }
  0x16   : > { %v2676_v30 = vcombine.high %v301_v24, %v317_v25  ;;  %v2678_v31 = vcombine.high %v302_v26, %v318_v27  ;;  %v269_v32 = vld [vmem:[%s2931_s19 + $0x300] sm:$0xff]  ;;  %v270_v34 = vld [vmem:[%s2931_s19 + $0x308] sm:$0xff]  ;;  %v2675_v36 = vcombine.low %v301_v24, %v317_v25  ;;  %v2677_v37 = vcombine.low %v302_v26, %v318_v27  ;;  %v384_v12 = vld [vmem:[%s2931_s19 + $0x698] sm:$0xff] }
  0x17   : > { %1718 = vmatpush1.bf16.msra.mxu0 %v2739_v20  ;;  %1759 = vmatpush1.bf16.msra.mxu1 %v2741_v21  ;;  %v285_v33 = vld [vmem:[%s2931_s19 + $0x380] sm:$0xff]  ;;  %v286_v35 = vld [vmem:[%s2931_s19 + $0x388] sm:$0xff]  ;;  %v2746_v17 = vcombine.high %v368_v11, %v384_v12  ;;  %v335_v18 = vld [vmem:[%s2931_s19 + $0x510] sm:$0xff] }
  0x18   : > { %1719 = vmatprep.subr.bf16.mxu0 %v2708_v22  ;;  %1760 = vmatprep.subr.bf16.mxu1 %v2710_v23  ;;  %v2644_v38 = vcombine.high %v269_v32, %v285_v33  ;;  %v2646_v39 = vcombine.high %v270_v34, %v286_v35  ;;  %v237_v40 = vld [vmem:[%s2931_s19 + $0x200] sm:$0xff]  ;;  %v238_v42 = vld [vmem:[%s2931_s19 + $0x208] sm:$0xff]  ;;  %v2643_v44 = vcombine.low %v269_v32, %v285_v33  ;;  %v351_v19 = vld [vmem:[%s2931_s19 + $0x590] sm:$0xff] }
  0x19   : > { %v253_v41 = vld [vmem:[%s2931_s19 + $0x280] sm:$0xff]  ;;  %v254_v43 = vld [vmem:[%s2931_s19 + $0x288] sm:$0xff]  ;;  %v2645_v45 = vcombine.low %v270_v34, %v286_v35  ;;  %v336_v20 = vld [vmem:[%s2931_s19 + $0x518] sm:$0xff]  ;;  %v2743_v22 = vcombine.low %v367_v9, %v383_v10  ;;  %v2745_v23 = vcombine.low %v368_v11, %v384_v12  ;;  %v2712_v24 = vcombine.high %v335_v18, %v351_v19 }
  0x1a   : > { %v2612_v46 = vcombine.high %v237_v40, %v253_v41  ;;  %v2614_v47 = vcombine.high %v238_v42, %v254_v43  ;;  %v205_v48 = vld [vmem:[%s2931_s19 + $0x100] sm:$0xff]  ;;  %v206_v50 = vld [vmem:[%s2931_s19 + $0x108] sm:$0xff]  ;;  %v2611_v52 = vcombine.low %v237_v40, %v253_v41  ;;  %v2613_v53 = vcombine.low %v238_v42, %v254_v43  ;;  %v352_v21 = vld [vmem:[%s2931_s19 + $0x598] sm:$0xff] }
  0x1b   : > { %1720 = vmatpush1.bf16.msra.mxu0 %v2707_v28  ;;  %1761 = vmatpush1.bf16.msra.mxu1 %v2709_v29  ;;  %v221_v49 = vld [vmem:[%s2931_s19 + $0x180] sm:$0xff]  ;;  %v222_v51 = vld [vmem:[%s2931_s19 + $0x188] sm:$0xff]  ;;  %v2714_v25 = vcombine.high %v336_v20, %v352_v21  ;;  %v303_v26 = vld [vmem:[%s2931_s19 + $0x410] sm:$0xff] }
  0x1c   : > { %1721 = vmatprep.subr.bf16.mxu0 %v2676_v30  ;;  %1762 = vmatprep.subr.bf16.mxu1 %v2678_v31  ;;  %v2580_v54 = vcombine.high %v205_v48, %v221_v49  ;;  %v2582_v55 = vcombine.high %v206_v50, %v222_v51  ;;  %v173_v56 = vld [vmem:[%s2931_s19] sm:$0xff]  ;;  %v174_v58 = vld [vmem:[%s2931_s19 + $0x8] sm:$0xff]  ;;  %v2579_v60 = vcombine.low %v205_v48, %v221_v49  ;;  %v319_v27 = vld [vmem:[%s2931_s19 + $0x490] sm:$0xff] }
  0x1d   : > { %v189_v57 = vld [vmem:[%s2931_s19 + $0x80] sm:$0xff]  ;;  %v190_v59 = vld [vmem:[%s2931_s19 + $0x88] sm:$0xff]  ;;  %v2581_v61 = vcombine.low %v206_v50, %v222_v51  ;;  %v304_v28 = vld [vmem:[%s2931_s19 + $0x418] sm:$0xff]  ;;  %v2711_v30 = vcombine.low %v335_v18, %v351_v19  ;;  %v2713_v31 = vcombine.low %v336_v20, %v352_v21  ;;  %v2680_v32 = vcombine.high %v303_v26, %v319_v27 }
  0x1e   : > { %v2548_v62 = vcombine.high %v173_v56, %v189_v57  ;;  %v2550_v63 = vcombine.high %v174_v58, %v190_v59  ;;  %v2547_v5 = vcombine.low %v173_v56, %v189_v57  ;;  %v2549_v6 = vcombine.low %v174_v58, %v190_v59  ;;  %v2976_v13 = vld [vmem:[%s3288_s0] sm:$0x3]  ;;  %v320_v29 = vld [vmem:[%s2931_s19 + $0x498] sm:$0xff]  ;;  %v271_v34 = vld [vmem:[%s2931_s19 + $0x310] sm:$0xff] }
  0x1f   : > { %1722 = vmatpush1.bf16.msra.mxu0 %v2675_v36  ;;  %1763 = vmatpush1.bf16.msra.mxu1 %v2677_v37  ;;  %v2682_v33 = vcombine.high %v304_v28, %v320_v29  ;;  %v287_v35 = vld [vmem:[%s2931_s19 + $0x390] sm:$0xff]  ;;  %v272_v36 = vld [vmem:[%s2931_s19 + $0x318] sm:$0xff]  ;;  %v401_v3 = vld [vmem:[%s2931_s19 + $0x720] sm:$0xff] }
  0x20   : > { %1723 = vmatprep.subr.bf16.mxu0 %v2644_v38  ;;  %1764 = vmatprep.subr.bf16.mxu1 %v2646_v39  ;;  %v288_v37 = vld [vmem:[%s2931_s19 + $0x398] sm:$0xff]  ;;  %v2679_v38 = vcombine.low %v303_v26, %v319_v27  ;;  %v2681_v39 = vcombine.low %v304_v28, %v320_v29  ;;  %v2648_v40 = vcombine.high %v271_v34, %v287_v35  ;;  %v239_v42 = vld [vmem:[%s2931_s19 + $0x210] sm:$0xff]  ;;  %v417_v4 = vld [vmem:[%s2931_s19 + $0x7a0] sm:$0xff] }
  0x21   : > { %v2650_v41 = vcombine.high %v272_v36, %v288_v37  ;;  %v255_v43 = vld [vmem:[%s2931_s19 + $0x290] sm:$0xff]  ;;  %v2780_v9 = vcombine.high %v401_v3, %v417_v4  ;;  %v369_v11 = vld [vmem:[%s2931_s19 + $0x620] sm:$0xff] }
  0x22   : > { %v2616_v48 = vcombine.high %v239_v42, %v255_v43  ;;  %v207_v50 = vld [vmem:[%s2931_s19 + $0x110] sm:$0xff]  ;;  %v385_v12 = vld [vmem:[%s2931_s19 + $0x6a0] sm:$0xff] }
  0x23   : > { %1724 = vmatpush1.bf16.msra.mxu0 %v2643_v44  ;;  %1765 = vmatpush1.bf16.msra.mxu1 %v2645_v45  ;;  %v240_v44 = vld [vmem:[%s2931_s19 + $0x218] sm:$0xff]  ;;  %v223_v51 = vld [vmem:[%s2931_s19 + $0x190] sm:$0xff]  ;;  %v2748_v18 = vcombine.high %v369_v11, %v385_v12  ;;  %v337_v20 = vld [vmem:[%s2931_s19 + $0x520] sm:$0xff] }
  0x24   : > { %1725 = vmatprep.subr.bf16.mxu0 %v2612_v46  ;;  %1766 = vmatprep.subr.bf16.mxu1 %v2614_v47  ;;  %v256_v45 = vld [vmem:[%s2931_s19 + $0x298] sm:$0xff]  ;;  %v2647_v46 = vcombine.low %v271_v34, %v287_v35  ;;  %v2649_v47 = vcombine.low %v272_v36, %v288_v37  ;;  %v2584_v56 = vcombine.high %v207_v50, %v223_v51  ;;  %v175_v58 = vld [vmem:[%s2931_s19 + $0x10] sm:$0xff]  ;;  %v353_v21 = vld [vmem:[%s2931_s19 + $0x5a0] sm:$0xff] }
  0x25   : > { %v2618_v49 = vcombine.high %v240_v44, %v256_v45  ;;  %v191_v59 = vld [vmem:[%s2931_s19 + $0x90] sm:$0xff]  ;;  %v2716_v26 = vcombine.high %v337_v20, %v353_v21  ;;  %v305_v28 = vld [vmem:[%s2931_s19 + $0x420] sm:$0xff] }
  0x26   : > { %v2552_v0 = vcombine.high %v175_v58, %v191_v59  ;;  %v321_v29 = vld [vmem:[%s2931_s19 + $0x4a0] sm:$0xff] }
  0x27   : > { %1726 = vmatpush1.bf16.msra.mxu0 %v2611_v52  ;;  %1767 = vmatpush1.bf16.msra.mxu1 %v2613_v53  ;;  %v208_v52 = vld [vmem:[%s2931_s19 + $0x118] sm:$0xff]  ;;  %v2684_v34 = vcombine.high %v305_v28, %v321_v29  ;;  %v273_v36 = vld [vmem:[%s2931_s19 + $0x320] sm:$0xff] }
  0x28   : > { %1727 = vmatprep.subr.bf16.mxu0 %v2580_v54  ;;  %1768 = vmatprep.subr.bf16.mxu1 %v2582_v55  ;;  %v224_v53 = vld [vmem:[%s2931_s19 + $0x198] sm:$0xff]  ;;  %v2615_v54 = vcombine.low %v239_v42, %v255_v43  ;;  %v2617_v55 = vcombine.low %v240_v44, %v256_v45  ;;  %v289_v37 = vld [vmem:[%s2931_s19 + $0x3a0] sm:$0xff] }
  0x29   : > { %v2586_v57 = vcombine.high %v208_v52, %v224_v53  ;;  %v2652_v42 = vcombine.high %v273_v36, %v289_v37  ;;  %v241_v44 = vld [vmem:[%s2931_s19 + $0x220] sm:$0xff] }
  0x2a   : > { %v257_v45 = vld [vmem:[%s2931_s19 + $0x2a0] sm:$0xff] }
  0x2b   : > { %1728 = vmatpush1.bf16.msra.mxu0 %v2579_v60  ;;  %1769 = vmatpush1.bf16.msra.mxu1 %v2581_v61  ;;  %v176_v60 = vld [vmem:[%s2931_s19 + $0x18] sm:$0xff] }
  0x2c   : > { %1729 = vmatprep.subr.bf16.mxu0 %v2548_v62  ;;  %1770 = vmatprep.subr.bf16.mxu1 %v2550_v63  ;;  %v192_v61 = vld [vmem:[%s2931_s19 + $0x98] sm:$0xff]  ;;  %v2583_v62 = vcombine.low %v207_v50, %v223_v51  ;;  %v2585_v63 = vcombine.low %v208_v52, %v224_v53  ;;  %v2620_v50 = vcombine.high %v241_v44, %v257_v45  ;;  %v209_v52 = vld [vmem:[%s2931_s19 + $0x120] sm:$0xff] }
  0x2d   : > { %v2554_v2 = vcombine.high %v176_v60, %v192_v61  ;;  %v225_v53 = vld [vmem:[%s2931_s19 + $0x1a0] sm:$0xff] }
  0x2f   : > { %1730 = vmatpush1.bf16.msra.mxu0 %v2547_v5  ;;  %1771 = vmatpush1.bf16.msra.mxu1 %v2549_v6  ;;  %v402_v5 = vld [vmem:[%s2931_s19 + $0x728] sm:$0xff] }
  0x30   : > { %1797 = vmatprep.subr.bf16.mxu0 %v2776_v7  ;;  %1838 = vmatprep.subr.bf16.mxu1 %v2778_v8  ;;  %v418_v6 = vld [vmem:[%s2931_s19 + $0x7a8] sm:$0xff]  ;;  %v2551_v7 = vcombine.low %v175_v58, %v191_v59  ;;  %v2553_v8 = vcombine.low %v176_v60, %v192_v61  ;;  %v2588_v58 = vcombine.high %v209_v52, %v225_v53  ;;  %v177_v60 = vld [vmem:[%s2931_s19 + $0x20] sm:$0xff] }
  0x31   : > { %v2782_v10 = vcombine.high %v402_v5, %v418_v6  ;;  %v193_v61 = vld [vmem:[%s2931_s19 + $0xa0] sm:$0xff] }
  0x32   : > { %1748 = vmatmul.mubr.bf16.vlgmr.msra.gmra.mxu0 %v2976_v13  ;;  %1789 = vmatmul.mubr.bf16.vlgmr.msra.gmra.mxu1 %v2976_v13 }
  0x33   : > { %1798 = vmatpush1.bf16.msra.mxu0 %v2775_v14  ;;  %1839 = vmatpush1.bf16.msra.mxu1 %v2777_v15  ;;  %v370_v14 = vld [vmem:[%s2931_s19 + $0x628] sm:$0xff] }
  0x34   : > { %1799 = vmatprep.subr.bf16.mxu0 %v2744_v16  ;;  %1840 = vmatprep.subr.bf16.mxu1 %v2746_v17  ;;  %v386_v15 = vld [vmem:[%s2931_s19 + $0x6a8] sm:$0xff]  ;;  %v2779_v16 = vcombine.low %v401_v3, %v417_v4  ;;  %v2781_v17 = vcombine.low %v402_v5, %v418_v6  ;;  %v2556_v3 = vcombine.high %v177_v60, %v193_v61  ;;  %v403_v5 = vld [vmem:[%s2931_s19 + $0x730] sm:$0xff] }
  0x35   : > { %1829 = vmatprep.mubr.bf16.mxu0 %v2890_v1  ;;  %1870 = vmatprep.mubr.bf16.mxu1 %v2890_v1  ;;  %v2750_v19 = vcombine.high %v370_v14, %v386_v15  ;;  %v419_v6 = vld [vmem:[%s2931_s19 + $0x7b0] sm:$0xff] }
  0x37   : > { %1800 = vmatpush1.bf16.msra.mxu0 %v2743_v22  ;;  %1841 = vmatpush1.bf16.msra.mxu1 %v2745_v23  ;;  %v338_v22 = vld [vmem:[%s2931_s19 + $0x528] sm:$0xff] }
  0x38   : > { %1801 = vmatprep.subr.bf16.mxu0 %v2712_v24  ;;  %1842 = vmatprep.subr.bf16.mxu1 %v2714_v25  ;;  %v354_v23 = vld [vmem:[%s2931_s19 + $0x5a8] sm:$0xff]  ;;  %v2747_v24 = vcombine.low %v369_v11, %v385_v12  ;;  %v2749_v25 = vcombine.low %v370_v14, %v386_v15  ;;  %v2784_v11 = vcombine.high %v403_v5, %v419_v6  ;;  %v371_v14 = vld [vmem:[%s2931_s19 + $0x630] sm:$0xff] }
  0x39   : > { %v2718_v27 = vcombine.high %v338_v22, %v354_v23  ;;  %v387_v15 = vld [vmem:[%s2931_s19 + $0x6b0] sm:$0xff] }
  0x3b   : > { %1802 = vmatpush1.bf16.msra.mxu0 %v2711_v30  ;;  %1843 = vmatpush1.bf16.msra.mxu1 %v2713_v31  ;;  %v306_v30 = vld [vmem:[%s2931_s19 + $0x428] sm:$0xff] }
  0x3c   : > { %1803 = vmatprep.subr.bf16.mxu0 %v2680_v32  ;;  %1844 = vmatprep.subr.bf16.mxu1 %v2682_v33  ;;  %v322_v31 = vld [vmem:[%s2931_s19 + $0x4a8] sm:$0xff]  ;;  %v2715_v32 = vcombine.low %v337_v20, %v353_v21  ;;  %v2717_v33 = vcombine.low %v338_v22, %v354_v23  ;;  %v2752_v20 = vcombine.high %v371_v14, %v387_v15  ;;  %v339_v22 = vld [vmem:[%s2931_s19 + $0x530] sm:$0xff] }
  0x3d   : > { %v2686_v35 = vcombine.high %v306_v30, %v322_v31  ;;  %v355_v23 = vld [vmem:[%s2931_s19 + $0x5b0] sm:$0xff] }
  0x3f   : > { %1804 = vmatpush1.bf16.msra.mxu0 %v2679_v38  ;;  %1845 = vmatpush1.bf16.msra.mxu1 %v2681_v39  ;;  %v274_v38 = vld [vmem:[%s2931_s19 + $0x328] sm:$0xff] }
  0x40   : > { %1805 = vmatprep.subr.bf16.mxu0 %v2648_v40  ;;  %1846 = vmatprep.subr.bf16.mxu1 %v2650_v41  ;;  %v290_v39 = vld [vmem:[%s2931_s19 + $0x3a8] sm:$0xff]  ;;  %v2683_v40 = vcombine.low %v305_v28, %v321_v29  ;;  %v2685_v41 = vcombine.low %v306_v30, %v322_v31  ;;  %v2720_v28 = vcombine.high %v339_v22, %v355_v23  ;;  %v307_v30 = vld [vmem:[%s2931_s19 + $0x430] sm:$0xff] }
  0x41   : > { %v2654_v43 = vcombine.high %v274_v38, %v290_v39  ;;  %v323_v31 = vld [vmem:[%s2931_s19 + $0x4b0] sm:$0xff] }
  0x43   : > { %1806 = vmatpush1.bf16.msra.mxu0 %v2647_v46  ;;  %1847 = vmatpush1.bf16.msra.mxu1 %v2649_v47  ;;  %v242_v46 = vld [vmem:[%s2931_s19 + $0x228] sm:$0xff] }
  0x44   : > { %1807 = vmatprep.subr.bf16.mxu0 %v2616_v48  ;;  %1848 = vmatprep.subr.bf16.mxu1 %v2618_v49  ;;  %v258_v47 = vld [vmem:[%s2931_s19 + $0x2a8] sm:$0xff]  ;;  %v2651_v48 = vcombine.low %v273_v36, %v289_v37  ;;  %v2653_v49 = vcombine.low %v274_v38, %v290_v39  ;;  %v2688_v36 = vcombine.high %v307_v30, %v323_v31  ;;  %v275_v38 = vld [vmem:[%s2931_s19 + $0x330] sm:$0xff] }
  0x45   : > { %v2622_v51 = vcombine.high %v242_v46, %v258_v47  ;;  %v291_v39 = vld [vmem:[%s2931_s19 + $0x3b0] sm:$0xff] }
  0x47   : > { %1808 = vmatpush1.bf16.msra.mxu0 %v2615_v54  ;;  %1849 = vmatpush1.bf16.msra.mxu1 %v2617_v55  ;;  %v210_v54 = vld [vmem:[%s2931_s19 + $0x128] sm:$0xff] }
  0x48   : > { %1809 = vmatprep.subr.bf16.mxu0 %v2584_v56  ;;  %1850 = vmatprep.subr.bf16.mxu1 %v2586_v57  ;;  %v226_v55 = vld [vmem:[%s2931_s19 + $0x1a8] sm:$0xff]  ;;  %v2619_v56 = vcombine.low %v241_v44, %v257_v45  ;;  %v2621_v57 = vcombine.low %v242_v46, %v258_v47  ;;  %v2656_v44 = vcombine.high %v275_v38, %v291_v39  ;;  %v243_v46 = vld [vmem:[%s2931_s19 + $0x230] sm:$0xff] }
  0x49   : > { %v2590_v59 = vcombine.high %v210_v54, %v226_v55  ;;  %v259_v47 = vld [vmem:[%s2931_s19 + $0x2b0] sm:$0xff] }
  0x4b   : > { %1810 = vmatpush1.bf16.msra.mxu0 %v2583_v62  ;;  %1851 = vmatpush1.bf16.msra.mxu1 %v2585_v63  ;;  %v178_v62 = vld [vmem:[%s2931_s19 + $0x28] sm:$0xff] }
  0x4c   : > { %1811 = vmatprep.subr.bf16.mxu0 %v2552_v0  ;;  %1852 = vmatprep.subr.bf16.mxu1 %v2554_v2  ;;  %v194_v63 = vld [vmem:[%s2931_s19 + $0xa8] sm:$0xff]  ;;  %v2587_v0 = vcombine.low %v209_v52, %v225_v53  ;;  %v2589_v2 = vcombine.low %v210_v54, %v226_v55  ;;  %v2624_v52 = vcombine.high %v243_v46, %v259_v47  ;;  %v211_v54 = vld [vmem:[%s2931_s19 + $0x130] sm:$0xff] }
  0x4d   : > { %v2558_v4 = vcombine.high %v178_v62, %v194_v63  ;;  %v227_v55 = vld [vmem:[%s2931_s19 + $0x1b0] sm:$0xff] }
  0x4f   : > { %1812 = vmatpush1.bf16.msra.mxu0 %v2551_v7  ;;  %1853 = vmatpush1.bf16.msra.mxu1 %v2553_v8  ;;  %v404_v7 = vld [vmem:[%s2931_s19 + $0x738] sm:$0xff] }
  0x50   : > { %1879 = vmatprep.subr.bf16.mxu0 %v2780_v9  ;;  %1920 = vmatprep.subr.bf16.mxu1 %v2782_v10  ;;  %v420_v8 = vld [vmem:[%s2931_s19 + $0x7b8] sm:$0xff]  ;;  %v2555_v9 = vcombine.low %v177_v60, %v193_v61  ;;  %v2557_v10 = vcombine.low %v178_v62, %v194_v63  ;;  %v2592_v60 = vcombine.high %v211_v54, %v227_v55  ;;  %v179_v62 = vld [vmem:[%s2931_s19 + $0x30] sm:$0xff] }
  0x51   : > { %v2786_v12 = vcombine.high %v404_v7, %v420_v8  ;;  %v195_v63 = vld [vmem:[%s2931_s19 + $0xb0] sm:$0xff] }
  0x52   : > { %1830 = vmatmul.mubr.bf16.vlgmr.msra.gmra.mxu0 %v2976_v13  ;;  %1871 = vmatmul.mubr.bf16.vlgmr.msra.gmra.mxu1 %v2976_v13 }
  0x53   : > { %1880 = vmatpush1.bf16.msra.mxu0 %v2779_v16  ;;  %1921 = vmatpush1.bf16.msra.mxu1 %v2781_v17  ;;  %v372_v16 = vld [vmem:[%s2931_s19 + $0x638] sm:$0xff] }
  0x54   : > { %1881 = vmatprep.subr.bf16.mxu0 %v2748_v18  ;;  %1922 = vmatprep.subr.bf16.mxu1 %v2750_v19  ;;  %v388_v17 = vld [vmem:[%s2931_s19 + $0x6b8] sm:$0xff]  ;;  %v2783_v18 = vcombine.low %v403_v5, %v419_v6  ;;  %v2785_v19 = vcombine.low %v404_v7, %v420_v8  ;;  %v2560_v5 = vcombine.high %v179_v62, %v195_v63  ;;  %v405_v7 = vld [vmem:[%s2931_s19 + $0x740] sm:$0xff] }
  0x55   : > { %1911 = vmatprep.mubr.bf16.mxu0 %v2890_v1  ;;  %1952 = vmatprep.mubr.bf16.mxu1 %v2890_v1  ;;  %v2754_v21 = vcombine.high %v372_v16, %v388_v17  ;;  %v421_v8 = vld [vmem:[%s2931_s19 + $0x7c0] sm:$0xff] }
  0x57   : > { %1882 = vmatpush1.bf16.msra.mxu0 %v2747_v24  ;;  %1923 = vmatpush1.bf16.msra.mxu1 %v2749_v25  ;;  %v340_v24 = vld [vmem:[%s2931_s19 + $0x538] sm:$0xff] }
  0x58   : > { %1883 = vmatprep.subr.bf16.mxu0 %v2716_v26  ;;  %1924 = vmatprep.subr.bf16.mxu1 %v2718_v27  ;;  %v356_v25 = vld [vmem:[%s2931_s19 + $0x5b8] sm:$0xff]  ;;  %v2751_v26 = vcombine.low %v371_v14, %v387_v15  ;;  %v2753_v27 = vcombine.low %v372_v16, %v388_v17  ;;  %v2788_v14 = vcombine.high %v405_v7, %v421_v8  ;;  %v373_v16 = vld [vmem:[%s2931_s19 + $0x640] sm:$0xff] }
  0x59   : > { %v2722_v29 = vcombine.high %v340_v24, %v356_v25  ;;  %v389_v17 = vld [vmem:[%s2931_s19 + $0x6c0] sm:$0xff] }
  0x5b   : > { %1884 = vmatpush1.bf16.msra.mxu0 %v2715_v32  ;;  %1925 = vmatpush1.bf16.msra.mxu1 %v2717_v33  ;;  %v308_v32 = vld [vmem:[%s2931_s19 + $0x438] sm:$0xff] }
  0x5c   : > { %1885 = vmatprep.subr.bf16.mxu0 %v2684_v34  ;;  %1926 = vmatprep.subr.bf16.mxu1 %v2686_v35  ;;  %v324_v33 = vld [vmem:[%s2931_s19 + $0x4b8] sm:$0xff]  ;;  %v2719_v34 = vcombine.low %v339_v22, %v355_v23  ;;  %v2721_v35 = vcombine.low %v340_v24, %v356_v25  ;;  %v2756_v22 = vcombine.high %v373_v16, %v389_v17  ;;  %v341_v24 = vld [vmem:[%s2931_s19 + $0x540] sm:$0xff] }
  0x5d   : > { %v2690_v37 = vcombine.high %v308_v32, %v324_v33  ;;  %v357_v25 = vld [vmem:[%s2931_s19 + $0x5c0] sm:$0xff] }
  0x5f   : > { %1886 = vmatpush1.bf16.msra.mxu0 %v2683_v40  ;;  %1927 = vmatpush1.bf16.msra.mxu1 %v2685_v41  ;;  %v276_v40 = vld [vmem:[%s2931_s19 + $0x338] sm:$0xff] }
  0x60   : > { %1887 = vmatprep.subr.bf16.mxu0 %v2652_v42  ;;  %1928 = vmatprep.subr.bf16.mxu1 %v2654_v43  ;;  %v292_v41 = vld [vmem:[%s2931_s19 + $0x3b8] sm:$0xff]  ;;  %v2687_v42 = vcombine.low %v307_v30, %v323_v31  ;;  %v2689_v43 = vcombine.low %v308_v32, %v324_v33  ;;  %v2724_v30 = vcombine.high %v341_v24, %v357_v25  ;;  %v309_v32 = vld [vmem:[%s2931_s19 + $0x440] sm:$0xff] }
  0x61   : > { %v2658_v45 = vcombine.high %v276_v40, %v292_v41  ;;  %v325_v33 = vld [vmem:[%s2931_s19 + $0x4c0] sm:$0xff] }
  0x63   : > { %1888 = vmatpush1.bf16.msra.mxu0 %v2651_v48  ;;  %1929 = vmatpush1.bf16.msra.mxu1 %v2653_v49  ;;  %v244_v48 = vld [vmem:[%s2931_s19 + $0x238] sm:$0xff] }
  0x64   : > { %1889 = vmatprep.subr.bf16.mxu0 %v2620_v50  ;;  %1930 = vmatprep.subr.bf16.mxu1 %v2622_v51  ;;  %v260_v49 = vld [vmem:[%s2931_s19 + $0x2b8] sm:$0xff]  ;;  %v2655_v50 = vcombine.low %v275_v38, %v291_v39  ;;  %v2657_v51 = vcombine.low %v276_v40, %v292_v41  ;;  %v2692_v38 = vcombine.high %v309_v32, %v325_v33  ;;  %v277_v40 = vld [vmem:[%s2931_s19 + $0x340] sm:$0xff] }
  0x65   : > { %v2626_v53 = vcombine.high %v244_v48, %v260_v49  ;;  %v293_v41 = vld [vmem:[%s2931_s19 + $0x3c0] sm:$0xff] }
  0x67   : > { %1890 = vmatpush1.bf16.msra.mxu0 %v2619_v56  ;;  %1931 = vmatpush1.bf16.msra.mxu1 %v2621_v57  ;;  %v212_v56 = vld [vmem:[%s2931_s19 + $0x138] sm:$0xff] }
  0x68   : > { %1891 = vmatprep.subr.bf16.mxu0 %v2588_v58  ;;  %1932 = vmatprep.subr.bf16.mxu1 %v2590_v59  ;;  %v228_v57 = vld [vmem:[%s2931_s19 + $0x1b8] sm:$0xff]  ;;  %v2623_v58 = vcombine.low %v243_v46, %v259_v47  ;;  %v2625_v59 = vcombine.low %v244_v48, %v260_v49  ;;  %v2660_v46 = vcombine.high %v277_v40, %v293_v41  ;;  %v245_v48 = vld [vmem:[%s2931_s19 + $0x240] sm:$0xff] }
  0x69   : > { %v2594_v61 = vcombine.high %v212_v56, %v228_v57  ;;  %v261_v49 = vld [vmem:[%s2931_s19 + $0x2c0] sm:$0xff] }
  0x6b   : > { %1892 = vmatpush1.bf16.msra.mxu0 %v2587_v0  ;;  %1933 = vmatpush1.bf16.msra.mxu1 %v2589_v2  ;;  %v180_v0 = vld [vmem:[%s2931_s19 + $0x38] sm:$0xff] }
  0x6c   : > { %1893 = vmatprep.subr.bf16.mxu0 %v2556_v3  ;;  %1934 = vmatprep.subr.bf16.mxu1 %v2558_v4  ;;  %v196_v2 = vld [vmem:[%s2931_s19 + $0xb8] sm:$0xff]  ;;  %v2591_v3 = vcombine.low %v211_v54, %v227_v55  ;;  %v2593_v4 = vcombine.low %v212_v56, %v228_v57  ;;  %v2628_v54 = vcombine.high %v245_v48, %v261_v49  ;;  %v213_v56 = vld [vmem:[%s2931_s19 + $0x140] sm:$0xff] }
  0x6d   : > { %v2562_v6 = vcombine.high %v180_v0, %v196_v2  ;;  %v229_v57 = vld [vmem:[%s2931_s19 + $0x1c0] sm:$0xff] }
  0x6f   : > { %1894 = vmatpush1.bf16.msra.mxu0 %v2555_v9  ;;  %1935 = vmatpush1.bf16.msra.mxu1 %v2557_v10  ;;  %v406_v9 = vld [vmem:[%s2931_s19 + $0x748] sm:$0xff] }
  0x70   : > { %1961 = vmatprep.subr.bf16.mxu0 %v2784_v11  ;;  %2002 = vmatprep.subr.bf16.mxu1 %v2786_v12  ;;  %v422_v10 = vld [vmem:[%s2931_s19 + $0x7c8] sm:$0xff]  ;;  %v2559_v11 = vcombine.low %v179_v62, %v195_v63  ;;  %v2561_v12 = vcombine.low %v180_v0, %v196_v2  ;;  %v2596_v62 = vcombine.high %v213_v56, %v229_v57  ;;  %v181_v0 = vld [vmem:[%s2931_s19 + $0x40] sm:$0xff] }
  0x71   : > { %v2790_v15 = vcombine.high %v406_v9, %v422_v10  ;;  %v197_v2 = vld [vmem:[%s2931_s19 + $0xc0] sm:$0xff] }
  0x72   : > { %1912 = vmatmul.mubr.bf16.vlgmr.msra.gmra.mxu0 %v2976_v13  ;;  %1953 = vmatmul.mubr.bf16.vlgmr.msra.gmra.mxu1 %v2976_v13 }
  0x73   : > { %1962 = vmatpush1.bf16.msra.mxu0 %v2783_v18  ;;  %2003 = vmatpush1.bf16.msra.mxu1 %v2785_v19  ;;  %v374_v18 = vld [vmem:[%s2931_s19 + $0x648] sm:$0xff] }
  0x74   : > { %1963 = vmatprep.subr.bf16.mxu0 %v2752_v20  ;;  %2004 = vmatprep.subr.bf16.mxu1 %v2754_v21  ;;  %v390_v19 = vld [vmem:[%s2931_s19 + $0x6c8] sm:$0xff]  ;;  %v2787_v20 = vcombine.low %v405_v7, %v421_v8  ;;  %v2789_v21 = vcombine.low %v406_v9, %v422_v10  ;;  %v2564_v7 = vcombine.high %v181_v0, %v197_v2  ;;  %v407_v9 = vld [vmem:[%s2931_s19 + $0x750] sm:$0xff] }
  0x75   : > { %1993 = vmatprep.mubr.bf16.mxu0 %v2890_v1  ;;  %2034 = vmatprep.mubr.bf16.mxu1 %v2890_v1  ;;  %v2758_v23 = vcombine.high %v374_v18, %v390_v19  ;;  %v423_v10 = vld [vmem:[%s2931_s19 + $0x7d0] sm:$0xff] }
  0x77   : > { %1964 = vmatpush1.bf16.msra.mxu0 %v2751_v26  ;;  %2005 = vmatpush1.bf16.msra.mxu1 %v2753_v27  ;;  %v342_v26 = vld [vmem:[%s2931_s19 + $0x548] sm:$0xff] }
  0x78   : > { %1965 = vmatprep.subr.bf16.mxu0 %v2720_v28  ;;  %2006 = vmatprep.subr.bf16.mxu1 %v2722_v29  ;;  %v358_v27 = vld [vmem:[%s2931_s19 + $0x5c8] sm:$0xff]  ;;  %v2755_v28 = vcombine.low %v373_v16, %v389_v17  ;;  %v2757_v29 = vcombine.low %v374_v18, %v390_v19  ;;  %v2792_v16 = vcombine.high %v407_v9, %v423_v10  ;;  %v375_v18 = vld [vmem:[%s2931_s19 + $0x650] sm:$0xff] }
  0x79   : > { %v2726_v31 = vcombine.high %v342_v26, %v358_v27  ;;  %v391_v19 = vld [vmem:[%s2931_s19 + $0x6d0] sm:$0xff] }
  0x7b   : > { %1966 = vmatpush1.bf16.msra.mxu0 %v2719_v34  ;;  %2007 = vmatpush1.bf16.msra.mxu1 %v2721_v35  ;;  %v310_v34 = vld [vmem:[%s2931_s19 + $0x448] sm:$0xff] }
  0x7c   : > { %1967 = vmatprep.subr.bf16.mxu0 %v2688_v36  ;;  %2008 = vmatprep.subr.bf16.mxu1 %v2690_v37  ;;  %v326_v35 = vld [vmem:[%s2931_s19 + $0x4c8] sm:$0xff]  ;;  %v2723_v36 = vcombine.low %v341_v24, %v357_v25  ;;  %v2725_v37 = vcombine.low %v342_v26, %v358_v27  ;;  %v2760_v24 = vcombine.high %v375_v18, %v391_v19  ;;  %v343_v26 = vld [vmem:[%s2931_s19 + $0x550] sm:$0xff] }
  0x7d   : > { %v2694_v39 = vcombine.high %v310_v34, %v326_v35  ;;  %v359_v27 = vld [vmem:[%s2931_s19 + $0x5d0] sm:$0xff] }
  0x7f   : > { %1968 = vmatpush1.bf16.msra.mxu0 %v2687_v42  ;;  %2009 = vmatpush1.bf16.msra.mxu1 %v2689_v43  ;;  %v278_v42 = vld [vmem:[%s2931_s19 + $0x348] sm:$0xff] }
  0x80   : > { %1969 = vmatprep.subr.bf16.mxu0 %v2656_v44  ;;  %2010 = vmatprep.subr.bf16.mxu1 %v2658_v45  ;;  %v294_v43 = vld [vmem:[%s2931_s19 + $0x3c8] sm:$0xff]  ;;  %v2691_v44 = vcombine.low %v309_v32, %v325_v33  ;;  %v2693_v45 = vcombine.low %v310_v34, %v326_v35  ;;  %v2728_v32 = vcombine.high %v343_v26, %v359_v27  ;;  %v311_v34 = vld [vmem:[%s2931_s19 + $0x450] sm:$0xff] }
  0x81   : > { %v2662_v47 = vcombine.high %v278_v42, %v294_v43  ;;  %v327_v35 = vld [vmem:[%s2931_s19 + $0x4d0] sm:$0xff] }
  0x83   : > { %1970 = vmatpush1.bf16.msra.mxu0 %v2655_v50  ;;  %2011 = vmatpush1.bf16.msra.mxu1 %v2657_v51  ;;  %v246_v50 = vld [vmem:[%s2931_s19 + $0x248] sm:$0xff] }
  0x84   : > { %1971 = vmatprep.subr.bf16.mxu0 %v2624_v52  ;;  %2012 = vmatprep.subr.bf16.mxu1 %v2626_v53  ;;  %v262_v51 = vld [vmem:[%s2931_s19 + $0x2c8] sm:$0xff]  ;;  %v2659_v52 = vcombine.low %v277_v40, %v293_v41  ;;  %v2661_v53 = vcombine.low %v278_v42, %v294_v43  ;;  %v2696_v40 = vcombine.high %v311_v34, %v327_v35  ;;  %v279_v42 = vld [vmem:[%s2931_s19 + $0x350] sm:$0xff] }
  0x85   : > { %v2630_v55 = vcombine.high %v246_v50, %v262_v51  ;;  %v295_v43 = vld [vmem:[%s2931_s19 + $0x3d0] sm:$0xff] }
  0x87   : > { %1972 = vmatpush1.bf16.msra.mxu0 %v2623_v58  ;;  %2013 = vmatpush1.bf16.msra.mxu1 %v2625_v59  ;;  %v214_v58 = vld [vmem:[%s2931_s19 + $0x148] sm:$0xff] }
  0x88   : > { %1973 = vmatprep.subr.bf16.mxu0 %v2592_v60  ;;  %2014 = vmatprep.subr.bf16.mxu1 %v2594_v61  ;;  %v230_v59 = vld [vmem:[%s2931_s19 + $0x1c8] sm:$0xff]  ;;  %v2627_v60 = vcombine.low %v245_v48, %v261_v49  ;;  %v2629_v61 = vcombine.low %v246_v50, %v262_v51  ;;  %v2664_v48 = vcombine.high %v279_v42, %v295_v43  ;;  %v247_v50 = vld [vmem:[%s2931_s19 + $0x250] sm:$0xff] }
  0x89   : > { %v2598_v63 = vcombine.high %v214_v58, %v230_v59  ;;  %v263_v51 = vld [vmem:[%s2931_s19 + $0x2d0] sm:$0xff] }
  0x8b   : > { %1974 = vmatpush1.bf16.msra.mxu0 %v2591_v3  ;;  %2015 = vmatpush1.bf16.msra.mxu1 %v2593_v4  ;;  %v182_v3 = vld [vmem:[%s2931_s19 + $0x48] sm:$0xff] }
  0x8c   : > { %1975 = vmatprep.subr.bf16.mxu0 %v2560_v5  ;;  %2016 = vmatprep.subr.bf16.mxu1 %v2562_v6  ;;  %v198_v4 = vld [vmem:[%s2931_s19 + $0xc8] sm:$0xff]  ;;  %v2595_v5 = vcombine.low %v213_v56, %v229_v57  ;;  %v2597_v6 = vcombine.low %v214_v58, %v230_v59  ;;  %v2632_v56 = vcombine.high %v247_v50, %v263_v51  ;;  %v215_v58 = vld [vmem:[%s2931_s19 + $0x150] sm:$0xff] }
  0x8d   : > { %v2566_v8 = vcombine.high %v182_v3, %v198_v4  ;;  %v231_v59 = vld [vmem:[%s2931_s19 + $0x1d0] sm:$0xff] }
  0x8f   : > { %1976 = vmatpush1.bf16.msra.mxu0 %v2559_v11  ;;  %2017 = vmatpush1.bf16.msra.mxu1 %v2561_v12  ;;  %v408_v11 = vld [vmem:[%s2931_s19 + $0x758] sm:$0xff] }
  0x90   : > { %2043 = vmatprep.subr.bf16.mxu0 %v2788_v14  ;;  %2084 = vmatprep.subr.bf16.mxu1 %v2790_v15  ;;  %v424_v12 = vld [vmem:[%s2931_s19 + $0x7d8] sm:$0xff]  ;;  %v2563_v14 = vcombine.low %v181_v0, %v197_v2  ;;  %v2565_v15 = vcombine.low %v182_v3, %v198_v4  ;;  %v2600_v0 = vcombine.high %v215_v58, %v231_v59  ;;  %v183_v3 = vld [vmem:[%s2931_s19 + $0x50] sm:$0xff] }
  0x91   : > { %v2794_v17 = vcombine.high %v408_v11, %v424_v12  ;;  %v199_v4 = vld [vmem:[%s2931_s19 + $0xd0] sm:$0xff] }
  0x92   : > { %1994 = vmatmul.mubr.bf16.vlgmr.msra.gmra.mxu0 %v2976_v13  ;;  %2035 = vmatmul.mubr.bf16.vlgmr.msra.gmra.mxu1 %v2976_v13 }
  0x93   : > { %2044 = vmatpush1.bf16.msra.mxu0 %v2787_v20  ;;  %2085 = vmatpush1.bf16.msra.mxu1 %v2789_v21  ;;  %v376_v20 = vld [vmem:[%s2931_s19 + $0x658] sm:$0xff] }
  0x94   : > { %2045 = vmatprep.subr.bf16.mxu0 %v2756_v22  ;;  %2086 = vmatprep.subr.bf16.mxu1 %v2758_v23  ;;  %v392_v21 = vld [vmem:[%s2931_s19 + $0x6d8] sm:$0xff]  ;;  %v2791_v22 = vcombine.low %v407_v9, %v423_v10  ;;  %v2793_v23 = vcombine.low %v408_v11, %v424_v12  ;;  %v2568_v9 = vcombine.high %v183_v3, %v199_v4  ;;  %v409_v11 = vld [vmem:[%s2931_s19 + $0x760] sm:$0xff] }
  0x95   : > { %2075 = vmatprep.mubr.bf16.mxu0 %v2890_v1  ;;  %2116 = vmatprep.mubr.bf16.mxu1 %v2890_v1  ;;  %v2762_v25 = vcombine.high %v376_v20, %v392_v21  ;;  %v425_v12 = vld [vmem:[%s2931_s19 + $0x7e0] sm:$0xff] }
  0x97   : > { %2046 = vmatpush1.bf16.msra.mxu0 %v2755_v28  ;;  %2087 = vmatpush1.bf16.msra.mxu1 %v2757_v29  ;;  %v344_v28 = vld [vmem:[%s2931_s19 + $0x558] sm:$0xff] }
  0x98   : > { %2047 = vmatprep.subr.bf16.mxu0 %v2724_v30  ;;  %2088 = vmatprep.subr.bf16.mxu1 %v2726_v31  ;;  %v360_v29 = vld [vmem:[%s2931_s19 + $0x5d8] sm:$0xff]  ;;  %v2759_v30 = vcombine.low %v375_v18, %v391_v19  ;;  %v2761_v31 = vcombine.low %v376_v20, %v392_v21  ;;  %v2796_v18 = vcombine.high %v409_v11, %v425_v12  ;;  %v377_v20 = vld [vmem:[%s2931_s19 + $0x660] sm:$0xff] }
  0x99   : > { %v2730_v33 = vcombine.high %v344_v28, %v360_v29  ;;  %v393_v21 = vld [vmem:[%s2931_s19 + $0x6e0] sm:$0xff] }
  0x9b   : > { %2048 = vmatpush1.bf16.msra.mxu0 %v2723_v36  ;;  %2089 = vmatpush1.bf16.msra.mxu1 %v2725_v37  ;;  %v312_v36 = vld [vmem:[%s2931_s19 + $0x458] sm:$0xff] }
  0x9c   : > { %2049 = vmatprep.subr.bf16.mxu0 %v2692_v38  ;;  %2090 = vmatprep.subr.bf16.mxu1 %v2694_v39  ;;  %v328_v37 = vld [vmem:[%s2931_s19 + $0x4d8] sm:$0xff]  ;;  %v2727_v38 = vcombine.low %v343_v26, %v359_v27  ;;  %v2729_v39 = vcombine.low %v344_v28, %v360_v29  ;;  %v2764_v26 = vcombine.high %v377_v20, %v393_v21  ;;  %v345_v28 = vld [vmem:[%s2931_s19 + $0x560] sm:$0xff] }
  0x9d   : > { %v2698_v41 = vcombine.high %v312_v36, %v328_v37  ;;  %v361_v29 = vld [vmem:[%s2931_s19 + $0x5e0] sm:$0xff] }
  0x9f   : > { %2050 = vmatpush1.bf16.msra.mxu0 %v2691_v44  ;;  %2091 = vmatpush1.bf16.msra.mxu1 %v2693_v45  ;;  %v280_v44 = vld [vmem:[%s2931_s19 + $0x358] sm:$0xff] }
  0xa0   : > { %2051 = vmatprep.subr.bf16.mxu0 %v2660_v46  ;;  %2092 = vmatprep.subr.bf16.mxu1 %v2662_v47  ;;  %v296_v45 = vld [vmem:[%s2931_s19 + $0x3d8] sm:$0xff]  ;;  %v2695_v46 = vcombine.low %v311_v34, %v327_v35  ;;  %v2697_v47 = vcombine.low %v312_v36, %v328_v37  ;;  %v2732_v35 = vcombine.high %v345_v28, %v361_v29  ;;  %v313_v36 = vld [vmem:[%s2931_s19 + $0x460] sm:$0xff] }
  0xa1   : > { %v2666_v49 = vcombine.high %v280_v44, %v296_v45  ;;  %v329_v37 = vld [vmem:[%s2931_s19 + $0x4e0] sm:$0xff] }
  0xa3   : > { %2052 = vmatpush1.bf16.msra.mxu0 %v2659_v52  ;;  %2093 = vmatpush1.bf16.msra.mxu1 %v2661_v53  ;;  %v248_v52 = vld [vmem:[%s2931_s19 + $0x258] sm:$0xff] }
  0xa4   : > { %2053 = vmatprep.subr.bf16.mxu0 %v2628_v54  ;;  %2094 = vmatprep.subr.bf16.mxu1 %v2630_v55  ;;  %v264_v53 = vld [vmem:[%s2931_s19 + $0x2d8] sm:$0xff]  ;;  %v2663_v54 = vcombine.low %v279_v42, %v295_v43  ;;  %v2665_v55 = vcombine.low %v280_v44, %v296_v45  ;;  %v2700_v42 = vcombine.high %v313_v36, %v329_v37  ;;  %v281_v44 = vld [vmem:[%s2931_s19 + $0x360] sm:$0xff] }
  0xa5   : > { %v2634_v57 = vcombine.high %v248_v52, %v264_v53  ;;  %v297_v45 = vld [vmem:[%s2931_s19 + $0x3e0] sm:$0xff] }
  0xa7   : > { %2054 = vmatpush1.bf16.msra.mxu0 %v2627_v60  ;;  %2095 = vmatpush1.bf16.msra.mxu1 %v2629_v61  ;;  %v216_v60 = vld [vmem:[%s2931_s19 + $0x158] sm:$0xff] }
  0xa8   : > { %2055 = vmatprep.subr.bf16.mxu0 %v2596_v62  ;;  %2096 = vmatprep.subr.bf16.mxu1 %v2598_v63  ;;  %v232_v61 = vld [vmem:[%s2931_s19 + $0x1d8] sm:$0xff]  ;;  %v2631_v62 = vcombine.low %v247_v50, %v263_v51  ;;  %v2633_v63 = vcombine.low %v248_v52, %v264_v53  ;;  %v2668_v50 = vcombine.high %v281_v44, %v297_v45  ;;  %v249_v52 = vld [vmem:[%s2931_s19 + $0x260] sm:$0xff] }
  0xa9   : > { %v2602_v2 = vcombine.high %v216_v60, %v232_v61  ;;  %v265_v53 = vld [vmem:[%s2931_s19 + $0x2e0] sm:$0xff] }
  0xab   : > { %2056 = vmatpush1.bf16.msra.mxu0 %v2595_v5  ;;  %2097 = vmatpush1.bf16.msra.mxu1 %v2597_v6  ;;  %v184_v5 = vld [vmem:[%s2931_s19 + $0x58] sm:$0xff] }
  0xac   : > { %2057 = vmatprep.subr.bf16.mxu0 %v2564_v7  ;;  %2098 = vmatprep.subr.bf16.mxu1 %v2566_v8  ;;  %v200_v6 = vld [vmem:[%s2931_s19 + $0xd8] sm:$0xff]  ;;  %v2599_v7 = vcombine.low %v215_v58, %v231_v59  ;;  %v2601_v8 = vcombine.low %v216_v60, %v232_v61  ;;  %v2636_v58 = vcombine.high %v249_v52, %v265_v53  ;;  %v217_v60 = vld [vmem:[%s2931_s19 + $0x160] sm:$0xff] }
  0xad   : > { %v2570_v10 = vcombine.high %v184_v5, %v200_v6  ;;  %v233_v61 = vld [vmem:[%s2931_s19 + $0x1e0] sm:$0xff] }
  0xaf   : > { %2058 = vmatpush1.bf16.msra.mxu0 %v2563_v14  ;;  %2099 = vmatpush1.bf16.msra.mxu1 %v2565_v15  ;;  %v410_v14 = vld [vmem:[%s2931_s19 + $0x768] sm:$0xff] }
  0xb0   : > { %2125 = vmatprep.subr.bf16.mxu0 %v2792_v16  ;;  %2166 = vmatprep.subr.bf16.mxu1 %v2794_v17  ;;  %v426_v15 = vld [vmem:[%s2931_s19 + $0x7e8] sm:$0xff]  ;;  %v2567_v16 = vcombine.low %v183_v3, %v199_v4  ;;  %v2569_v17 = vcombine.low %v184_v5, %v200_v6  ;;  %v2604_v3 = vcombine.high %v217_v60, %v233_v61  ;;  %v185_v5 = vld [vmem:[%s2931_s19 + $0x60] sm:$0xff] }
  0xb1   : > { %v2798_v19 = vcombine.high %v410_v14, %v426_v15  ;;  %v201_v6 = vld [vmem:[%s2931_s19 + $0xe0] sm:$0xff] }
  0xb2   : > { %2076 = vmatmul.mubr.bf16.vlgmr.msra.gmra.mxu0 %v2976_v13  ;;  %2117 = vmatmul.mubr.bf16.vlgmr.msra.gmra.mxu1 %v2976_v13 }
  0xb3   : > { %2126 = vmatpush1.bf16.msra.mxu0 %v2791_v22  ;;  %2167 = vmatpush1.bf16.msra.mxu1 %v2793_v23  ;;  %v378_v22 = vld [vmem:[%s2931_s19 + $0x668] sm:$0xff] }
  0xb4   : > { %2127 = vmatprep.subr.bf16.mxu0 %v2760_v24  ;;  %2168 = vmatprep.subr.bf16.mxu1 %v2762_v25  ;;  %v394_v23 = vld [vmem:[%s2931_s19 + $0x6e8] sm:$0xff]  ;;  %v2795_v24 = vcombine.low %v409_v11, %v425_v12  ;;  %v2797_v25 = vcombine.low %v410_v14, %v426_v15  ;;  %v2572_v11 = vcombine.high %v185_v5, %v201_v6  ;;  %v411_v14 = vld [vmem:[%s2931_s19 + $0x770] sm:$0xff] }
  0xb5   : > { %2157 = vmatprep.mubr.bf16.mxu0 %v2890_v1  ;;  %2198 = vmatprep.mubr.bf16.mxu1 %v2890_v1  ;;  %v2766_v27 = vcombine.high %v378_v22, %v394_v23  ;;  %v2765_v34 = vcombine.low %v378_v22, %v394_v23  ;;  %v427_v15 = vld [vmem:[%s2931_s19 + $0x7f0] sm:$0xff] }
  0xb6   : > { %v379_v22 = vld [vmem:[%s2931_s19 + $0x670] sm:$0xff] }
  0xb7   : > { %2128 = vmatpush1.bf16.msra.mxu0 %v2759_v30  ;;  %2169 = vmatpush1.bf16.msra.mxu1 %v2761_v31  ;;  %v346_v30 = vld [vmem:[%s2931_s19 + $0x568] sm:$0xff]  ;;  %v395_v23 = vld [vmem:[%s2931_s19 + $0x6f0] sm:$0xff] }
  0xb8   : > { %2129 = vmatprep.subr.bf16.mxu0 %v2728_v32  ;;  %2170 = vmatprep.subr.bf16.mxu1 %v2730_v33  ;;  %v362_v31 = vld [vmem:[%s2931_s19 + $0x5e8] sm:$0xff]  ;;  %v3166_v32 = vld [vmem:[%s3288_s0] sm:$0x3]  ;;  %v2763_v33 = vcombine.low %v377_v20, %v393_v21  ;;  %v2800_v20 = vcombine.high %v411_v14, %v427_v15 }
  0xbb   : > { %2130 = vmatpush1.bf16.msra.mxu0 %v2727_v38  ;;  %2171 = vmatpush1.bf16.msra.mxu1 %v2729_v39  ;;  %v314_v38 = vld [vmem:[%s2931_s19 + $0x468] sm:$0xff] }
  0xbc   : > { %2131 = vmatprep.subr.bf16.mxu0 %v2696_v40  ;;  %2172 = vmatprep.subr.bf16.mxu1 %v2698_v41  ;;  %v330_v39 = vld [vmem:[%s2931_s19 + $0x4e8] sm:$0xff]  ;;  %v2731_v40 = vcombine.low %v345_v28, %v361_v29  ;;  %v2733_v41 = vcombine.low %v346_v30, %v362_v31  ;;  %v3199_v28 = vpop.permute.xlu0 %432  ;;  %v2768_v29 = vcombine.high %v379_v22, %v395_v23 }
  0xbd   : > { %v2702_v43 = vcombine.high %v314_v38, %v330_v39 }
  0xbf   : > { %2132 = vmatpush1.bf16.msra.mxu0 %v2695_v46  ;;  %2173 = vmatpush1.bf16.msra.mxu1 %v2697_v47  ;;  %v282_v46 = vld [vmem:[%s2931_s19 + $0x368] sm:$0xff] }
  0xc0   : > { %2133 = vmatprep.subr.bf16.mxu0 %v2664_v48  ;;  %2174 = vmatprep.subr.bf16.mxu1 %v2666_v49  ;;  %v298_v47 = vld [vmem:[%s2931_s19 + $0x3e8] sm:$0xff]  ;;  %v2699_v48 = vcombine.low %v313_v36, %v329_v37  ;;  %v2701_v49 = vcombine.low %v314_v38, %v330_v39  ;;  %v2767_v38 = vcombine.low %v379_v22, %v395_v23 }
  0xc1   : > { %v2670_v51 = vcombine.high %v282_v46, %v298_v47 }
  0xc3   : > { %2134 = vmatpush1.bf16.msra.mxu0 %v2663_v54  ;;  %2175 = vmatpush1.bf16.msra.mxu1 %v2665_v55  ;;  %v250_v54 = vld [vmem:[%s2931_s19 + $0x268] sm:$0xff] }
  0xc4   : > { %2135 = vmatprep.subr.bf16.mxu0 %v2632_v56  ;;  %2176 = vmatprep.subr.bf16.mxu1 %v2634_v57  ;;  %v266_v55 = vld [vmem:[%s2931_s19 + $0x2e8] sm:$0xff]  ;;  %v2667_v56 = vcombine.low %v281_v44, %v297_v45  ;;  %v2669_v57 = vcombine.low %v282_v46, %v298_v47  ;;  %v315_v46 = vld [vmem:[%s2931_s19 + $0x470] sm:$0xff] }
  0xc5   : > { %v2638_v59 = vcombine.high %v250_v54, %v266_v55  ;;  %v331_v47 = vld [vmem:[%s2931_s19 + $0x4f0] sm:$0xff] }
  0xc7   : > { %2136 = vmatpush1.bf16.msra.mxu0 %v2631_v62  ;;  %2177 = vmatpush1.bf16.msra.mxu1 %v2633_v63  ;;  %v218_v62 = vld [vmem:[%s2931_s19 + $0x168] sm:$0xff] }
  0xc8   : > { %2137 = vmatprep.subr.bf16.mxu0 %v2600_v0  ;;  %2178 = vmatprep.subr.bf16.mxu1 %v2602_v2  ;;  %v234_v63 = vld [vmem:[%s2931_s19 + $0x1e8] sm:$0xff]  ;;  %v2635_v0 = vcombine.low %v249_v52, %v265_v53  ;;  %v2637_v2 = vcombine.low %v250_v54, %v266_v55 }
  0xc9   : > { %v2606_v4 = vcombine.high %v218_v62, %v234_v63 }
  0xcb   : > { %2138 = vmatpush1.bf16.msra.mxu0 %v2599_v7  ;;  %2179 = vmatpush1.bf16.msra.mxu1 %v2601_v8  ;;  %v186_v7 = vld [vmem:[%s2931_s19 + $0x68] sm:$0xff] }
  0xcc   : > { %2139 = vmatprep.subr.bf16.mxu0 %v2568_v9  ;;  %2180 = vmatprep.subr.bf16.mxu1 %v2570_v10  ;;  %v202_v8 = vld [vmem:[%s2931_s19 + $0xe8] sm:$0xff]  ;;  %v2603_v9 = vcombine.low %v217_v60, %v233_v61  ;;  %v2605_v10 = vcombine.low %v218_v62, %v234_v63  ;;  %v284_v60 = vld [vmem:[%s2931_s19 + $0x378] sm:$0xff]  ;;  %v2703_v62 = vcombine.low %v315_v46, %v331_v47 }
  0xcd   : > { %v2574_v12 = vcombine.high %v186_v7, %v202_v8  ;;  %v300_v61 = vld [vmem:[%s2931_s19 + $0x3f8] sm:$0xff] }
  0xcf   : > { %2140 = vmatpush1.bf16.msra.mxu0 %v2567_v16  ;;  %2181 = vmatpush1.bf16.msra.mxu1 %v2569_v17  ;;  %v412_v16 = vld [vmem:[%s2931_s19 + $0x778] sm:$0xff] }
  0xd0   : > { %2207 = vmatprep.subr.bf16.mxu0 %v2796_v18  ;;  %2248 = vmatprep.subr.bf16.mxu1 %v2798_v19  ;;  %v428_v17 = vld [vmem:[%s2931_s19 + $0x7f8] sm:$0xff]  ;;  %v2571_v18 = vcombine.low %v185_v5, %v201_v6  ;;  %v2573_v19 = vcombine.low %v186_v7, %v202_v8  ;;  %v2673_v8 = vcombine.low %v284_v60, %v300_v61 }
  0xd1   : > { %v2802_v21 = vcombine.high %v412_v16, %v428_v17  ;;  %v252_v5 = vld [vmem:[%s2931_s19 + $0x278] sm:$0xff] }
  0xd2   : > { %2158 = vmatmul.mubr.bf16.vlgmr.msra.gmra.mxu0 %v2976_v13  ;;  %2199 = vmatmul.mubr.bf16.vlgmr.msra.gmra.mxu1 %v3166_v32  ;;  %v2734_v13 = vcombine.high %v346_v30, %v362_v31  ;;  %v347_v31 = vld [vmem:[%s2931_s19 + $0x570] sm:$0xff]  ;;  %v268_v6 = vld [vmem:[%s2931_s19 + $0x2f8] sm:$0xff] }
  0xd3   : > { %2208 = vmatpush1.bf16.msra.mxu0 %v2795_v24  ;;  %2249 = vmatpush1.bf16.msra.mxu1 %v2797_v25  ;;  %v380_v24 = vld [vmem:[%s2931_s19 + $0x678] sm:$0xff] }
  0xd4   : > { %2209 = vmatprep.subr.bf16.mxu0 %v2764_v26  ;;  %2250 = vmatprep.subr.bf16.mxu1 %v2766_v27  ;;  %v396_v25 = vld [vmem:[%s2931_s19 + $0x6f8] sm:$0xff]  ;;  %v2799_v26 = vcombine.low %v411_v14, %v427_v15  ;;  %v2801_v27 = vcombine.low %v412_v16, %v428_v17 }
  0xd5   : > { %2239 = vmatprep.mubr.bf16.mxu0 %v2890_v1  ;;  %2280 = vmatprep.mubr.bf16.mxu1 %v2890_v1  ;;  %v2770_v30 = vcombine.high %v380_v24, %v396_v25  ;;  %v220_v15 = vld [vmem:[%s2931_s19 + $0x178] sm:$0xff] }
  0xd6   : > { %v236_v16 = vld [vmem:[%s2931_s19 + $0x1f8] sm:$0xff] }
  0xd7   : > { %2210 = vmatpush1.bf16.msra.mxu0 %v2763_v33  ;;  %2251 = vmatpush1.bf16.msra.mxu1 %v2765_v34  ;;  %v363_v33 = vld [vmem:[%s2931_s19 + $0x5f0] sm:$0xff] }
  0xd8   : > { %2211 = vmatprep.subr.bf16.mxu0 %v2732_v35  ;;  %2252 = vmatprep.subr.bf16.mxu1 %v2734_v13  ;;  %v348_v35 = vld [vmem:[%s2931_s19 + $0x578] sm:$0xff]  ;;  %v2735_v53 = vcombine.low %v347_v31, %v363_v33 }
  0xd9   : > { %v364_v13 = vld [vmem:[%s2931_s19 + $0x5f8] sm:$0xff] }
  0xda   : > { %v2738_v45 = vcombine.high %v348_v35, %v364_v13  ;;  %v2737_v55 = vcombine.low %v348_v35, %v364_v13 }
  0xdb   : > { %2212 = vmatpush1.bf16.msra.mxu0 %v2731_v40  ;;  %2253 = vmatpush1.bf16.msra.mxu1 %v2733_v41  ;;  %v2769_v41 = vcombine.low %v380_v24, %v396_v25  ;;  %v2610_v24 = vcombine.high %v220_v15, %v236_v16  ;;  %v187_v25 = vld [vmem:[%s2931_s19 + $0x70] sm:$0xff] }
  0xdc   : > { %2213 = vmatprep.subr.bf16.mxu0 %v2700_v42  ;;  %2254 = vmatprep.subr.bf16.mxu1 %v2702_v43  ;;  %v2736_v42 = vcombine.high %v347_v31, %v363_v33  ;;  %v2609_v33 = vcombine.low %v220_v15, %v236_v16 }
  0xdf   : > { %2214 = vmatpush1.bf16.msra.mxu0 %v2699_v48  ;;  %2255 = vmatpush1.bf16.msra.mxu1 %v2701_v49 }
  0xe0   : > { %2215 = vmatprep.subr.bf16.mxu0 %v2668_v50  ;;  %2256 = vmatprep.subr.bf16.mxu1 %v2670_v51  ;;  %v316_v50 = vld [vmem:[%s2931_s19 + $0x478] sm:$0xff] }
  0xe1   : > { %v332_v51 = vld [vmem:[%s2931_s19 + $0x4f8] sm:$0xff] }
  0xe2   : > { %v2705_v63 = vcombine.low %v316_v50, %v332_v51 }
  0xe3   : > { %2216 = vmatpush1.bf16.msra.mxu0 %v2667_v56  ;;  %2257 = vmatpush1.bf16.msra.mxu1 %v2669_v57  ;;  %v2704_v56 = vcombine.high %v315_v46, %v331_v47 }
  0xe4   : > { %2217 = vmatprep.subr.bf16.mxu0 %v2636_v58  ;;  %2258 = vmatprep.subr.bf16.mxu1 %v2638_v59  ;;  %v2706_v58 = vcombine.high %v316_v50, %v332_v51  ;;  %v299_v59 = vld [vmem:[%s2931_s19 + $0x3f0] sm:$0xff] }
  0xe7   : > { %2218 = vmatpush1.bf16.msra.mxu0 %v2635_v0  ;;  %2259 = vmatpush1.bf16.msra.mxu1 %v2637_v2  ;;  %v2674_v2 = vcombine.high %v284_v60, %v300_v61 }
  0xe8   : > { %2219 = vmatprep.subr.bf16.mxu0 %v2604_v3  ;;  %2260 = vmatprep.subr.bf16.mxu1 %v2606_v4  ;;  %v251_v3 = vld [vmem:[%s2931_s19 + $0x270] sm:$0xff] }
  0xe9   : > { %v267_v4 = vld [vmem:[%s2931_s19 + $0x2f0] sm:$0xff] }
  0xeb   : > { %2220 = vmatpush1.bf16.msra.mxu0 %v2603_v9  ;;  %2261 = vmatpush1.bf16.msra.mxu1 %v2605_v10  ;;  %v2640_v9 = vcombine.high %v251_v3, %v267_v4  ;;  %v2642_v10 = vcombine.high %v252_v5, %v268_v6 }
  0xec   : > { %2221 = vmatprep.subr.bf16.mxu0 %v2572_v11  ;;  %2262 = vmatprep.subr.bf16.mxu1 %v2574_v12  ;;  %v219_v11 = vld [vmem:[%s2931_s19 + $0x170] sm:$0xff] }
  0xed   : > { %v235_v12 = vld [vmem:[%s2931_s19 + $0x1f0] sm:$0xff] }
  0xee   : > { %v2607_v31 = vcombine.low %v219_v11, %v235_v12 }
  0xef   : > { %2222 = vmatpush1.bf16.msra.mxu0 %v2571_v18  ;;  %2263 = vmatpush1.bf16.msra.mxu1 %v2573_v19  ;;  %v2639_v18 = vcombine.low %v251_v3, %v267_v4 }
  0xf0   : > { %2289 = vmatprep.subr.bf16.mxu0 %v2800_v20  ;;  %2330 = vmatprep.subr.bf16.mxu1 %v2802_v21  ;;  %v2641_v20 = vcombine.low %v252_v5, %v268_v6  ;;  %v2608_v21 = vcombine.high %v219_v11, %v235_v12 }
  0xf2   : > { %v1749_v34 = vpop.f32.mrf.mxu0  ;;  %2240 = vmatmul.mubr.bf16.vlgmr.msra.gmra.mxu0 %v3166_v32  ;;  %v1790_v36 = vpop.f32.mrf.mxu1  ;;  %2281 = vmatmul.mubr.bf16.vlgmr.msra.gmra.mxu1 %v3166_v32 }
  0xf3   : > { %2290 = vmatpush1.bf16.msra.mxu0 %v2799_v26  ;;  %v1750_v37 = vadd.f32 %v1749_v34, %v3199_v28  ;;  %2331 = vmatpush1.bf16.msra.mxu1 %v2801_v27  ;;  %v1791_v40 = vadd.f32 %v1790_v36, %v3199_v28  ;;  %v203_v26 = vld [vmem:[%s2931_s19 + $0xf0] sm:$0xff] }
  0xf4   : > { %v1751_v39 = vpop.f32.mrf.mxu0  ;;  %2291 = vmatprep.subr.bf16.mxu0 %v2768_v29  ;;  %v1792_v44 = vpop.f32.mrf.mxu1  ;;  %2332 = vmatprep.subr.bf16.mxu1 %v2770_v30  ;;  %v188_v29 = vld [vmem:[%s2931_s19 + $0x78] sm:$0xff]  ;;  %v2576_v34 = vcombine.high %v187_v25, %v203_v26  ;;  %v2575_v13 = vcombine.low %v187_v25, %v203_v26 }
  0xf5   : > { %v1752_v43 = vadd.f32 %v1751_v39, %v3199_v28  ;;  %2817 = vtanh.f32 %v1750_v37  ;;  %2321 = vmatprep.mubr.bf16.mxu0 %v2890_v1  ;;  %v1793_v48 = vadd.f32 %v1792_v44, %v3199_v28  ;;  %2362 = vmatprep.mubr.bf16.mxu1 %v2890_v1  ;;  %v283_v1 = vld [vmem:[%s2931_s19 + $0x370] sm:$0xff]  ;;  %v204_v30 = vld [vmem:[%s2931_s19 + $0xf8] sm:$0xff] }
  0xf6   : > { %2819 = vtanh.f32 %v1791_v40  ;;  %v1753_v49 = vpop.f32.mrf.mxu0  ;;  %v1794_v52 = vpop.f32.mrf.mxu1  ;;  %v2672_v0 = vcombine.high %v283_v1, %v299_v59  ;;  %v2671_v7 = vcombine.low %v283_v1, %v299_v59  ;;  %v2578_v35 = vcombine.high %v188_v29, %v204_v30 }
  0xf7   : > { %2821 = vtanh.f32 %v1752_v43  ;;  %2292 = vmatpush1.bf16.msra.mxu0 %v2767_v38  ;;  %2333 = vmatpush1.bf16.msra.mxu1 %v2769_v41  ;;  %v2577_v36 = vcombine.low %v188_v29, %v204_v30 }
  0xf8   : > { %2823 = vtanh.f32 %v1793_v48  ;;  %v1754_v54 = vpop.f32.mrf.mxu0  ;;  %2293 = vmatprep.subr.bf16.mxu0 %v2736_v42  ;;  %v1795_v57 = vpop.f32.mrf.mxu1  ;;  %2334 = vmatprep.subr.bf16.mxu1 %v2738_v45 }
  0xfb   : > { %2294 = vmatpush1.bf16.msra.mxu0 %v2735_v53  ;;  %2335 = vmatpush1.bf16.msra.mxu1 %v2737_v55 }
  0xfc   : > { %2295 = vmatprep.subr.bf16.mxu0 %v2704_v56  ;;  %2336 = vmatprep.subr.bf16.mxu1 %v2706_v58 }
  0xff   : > { %2296 = vmatpush1.bf16.msra.mxu0 %v2703_v62  ;;  %2337 = vmatpush1.bf16.msra.mxu1 %v2705_v63 }
 0x100   : > { %2297 = vmatprep.subr.bf16.mxu0 %v2672_v0  ;;  %2338 = vmatprep.subr.bf16.mxu1 %v2674_v2 }
 0x102   : > { %v2818_v14 = vpop.eup %2817 }
 0x103   : > { %v2820_v17 = vpop.eup %2819  ;;  %2298 = vmatpush1.bf16.msra.mxu0 %v2671_v7  ;;  %2339 = vmatpush1.bf16.msra.mxu1 %v2673_v8 }
 0x104   : > { %v2822_v19 = vpop.eup %2821  ;;  %2299 = vmatprep.subr.bf16.mxu0 %v2640_v9  ;;  %2340 = vmatprep.subr.bf16.mxu1 %v2642_v10 }
 0x105   : > { %v2824_v22 = vpop.eup %2823  ;;  %v2435_v23 = vcombine.low %v2818_v14, %v2822_v19 }
 0x106   : > { %v2436_v27 = vcombine.low %v2820_v17, %v2824_v22 }
 0x107   : > { %2467 = vst [vmem:[%s3233_s27] sm:$0x77] %v2435_v23  ;;  %2300 = vmatpush1.bf16.msra.mxu0 %v2639_v18  ;;  %2341 = vmatpush1.bf16.msra.mxu1 %v2641_v20 }
 0x108   : > { %2468 = vst [vmem:[%s3233_s27 + $0x8] sm:$0x77] %v2436_v27  ;;  %2301 = vmatprep.subr.bf16.mxu0 %v2608_v21  ;;  %2342 = vmatprep.subr.bf16.mxu1 %v2610_v24 }
 0x10b   : > { %2302 = vmatpush1.bf16.msra.mxu0 %v2607_v31  ;;  %2343 = vmatpush1.bf16.msra.mxu1 %v2609_v33 }
 0x10c   : > { %2303 = vmatprep.subr.bf16.mxu0 %v2576_v34  ;;  %2344 = vmatprep.subr.bf16.mxu1 %v2578_v35 }
 0x10f   : > { %2304 = vmatpush1.bf16.msra.mxu0 %v2575_v13  ;;  %2345 = vmatpush1.bf16.msra.mxu1 %v2577_v36 }
 0x112   : > { %v1831_v37 = vpop.f32.mrf.mxu0  ;;  %2322 = vmatmul.mubr.bf16.vlgmr.msra.gmra.mxu0 %v3166_v32  ;;  %v1872_v39 = vpop.f32.mrf.mxu1  ;;  %2363 = vmatmul.mubr.bf16.vlgmr.msra.gmra.mxu1 %v3166_v32 }
 0x113   : > { %v1832_v38 = vadd.f32 %v1831_v37, %v3199_v28  ;;  %v1873_v40 = vadd.f32 %v1872_v39, %v3199_v28 }
 0x114   : > { %v1833_v41 = vpop.f32.mrf.mxu0  ;;  %v1874_v43 = vpop.f32.mrf.mxu1 }
 0x115   : > { %2825 = vtanh.f32 %v1832_v38  ;;  %v1834_v42 = vadd.f32 %v1833_v41, %v3199_v28  ;;  %v1875_v44 = vadd.f32 %v1874_v43, %v3199_v28 }
 0x116   : > { %2827 = vtanh.f32 %v1873_v40  ;;  %v1835_v45 = vpop.f32.mrf.mxu0  ;;  %v1876_v46 = vpop.f32.mrf.mxu1 }
 0x117   : > { %2829 = vtanh.f32 %v1834_v42 }
 0x118   : > { %2831 = vtanh.f32 %v1875_v44  ;;  %v1836_v47 = vpop.f32.mrf.mxu0  ;;  %v1877_v48 = vpop.f32.mrf.mxu1 }
 0x122   : > { %v2826_v49 = vpop.eup %2825 }
 0x123   : > { %v2828_v32 = vpop.eup %2827 }
 0x124   : > { %v2830_v50 = vpop.eup %2829 }
 0x125   : > { %v2832_v51 = vpop.eup %2831  ;;  %v2437_v52 = vcombine.low %v2826_v49, %v2830_v50 }
 0x126   : > { %v2438_v53 = vcombine.low %v2828_v32, %v2832_v51 }
 0x127   : > { %2469 = vst [vmem:[%s3233_s27 + $0x10] sm:$0x77] %v2437_v52 }
 0x128   : > { %2470 = vst [vmem:[%s3233_s27 + $0x18] sm:$0x77] %v2438_v53 }
 0x132   : > { %v1913_v54 = vpop.f32.mrf.mxu0  ;;  %v1954_v56 = vpop.f32.mrf.mxu1 }
 0x133   : > { %v1914_v55 = vadd.f32 %v1913_v54, %v3199_v28  ;;  %v1955_v57 = vadd.f32 %v1954_v56, %v3199_v28 }
 0x134   : > { %v1915_v58 = vpop.f32.mrf.mxu0  ;;  %v1956_v59 = vpop.f32.mrf.mxu1 }
 0x135   : > { %2833 = vtanh.f32 %v1914_v55  ;;  %v1916_v1 = vadd.f32 %v1915_v58, %v3199_v28  ;;  %v1957_v60 = vadd.f32 %v1956_v59, %v3199_v28 }
 0x136   : > { %2835 = vtanh.f32 %v1955_v57  ;;  %v1917_v61 = vpop.f32.mrf.mxu0  ;;  %v1958_v62 = vpop.f32.mrf.mxu1 }
 0x137   : > { %2837 = vtanh.f32 %v1916_v1 }
 0x138   : > { %2839 = vtanh.f32 %v1957_v60  ;;  %v1918_v63 = vpop.f32.mrf.mxu0  ;;  %v1959_v0 = vpop.f32.mrf.mxu1 }
 0x142   : > { %v2834_v2 = vpop.eup %2833 }
 0x143   : > { %v2836_v3 = vpop.eup %2835 }
 0x144   : > { %v2838_v4 = vpop.eup %2837 }
 0x145   : > { %v2840_v5 = vpop.eup %2839  ;;  %v2439_v6 = vcombine.low %v2834_v2, %v2838_v4 }
 0x146   : > { %v2440_v7 = vcombine.low %v2836_v3, %v2840_v5 }
 0x147   : > { %2471 = vst [vmem:[%s3233_s27 + $0x20] sm:$0x77] %v2439_v6 }
 0x148   : > { %2472 = vst [vmem:[%s3233_s27 + $0x28] sm:$0x77] %v2440_v7 }
 0x152   : > { %v1995_v8 = vpop.f32.mrf.mxu0  ;;  %v2036_v10 = vpop.f32.mrf.mxu1 }
 0x153   : > { %v1996_v9 = vadd.f32 %v1995_v8, %v3199_v28  ;;  %v2037_v11 = vadd.f32 %v2036_v10, %v3199_v28 }
 0x154   : > { %v1997_v12 = vpop.f32.mrf.mxu0  ;;  %v2038_v15 = vpop.f32.mrf.mxu1 }
 0x155   : > { %2841 = vtanh.f32 %v1996_v9  ;;  %v1998_v14 = vadd.f32 %v1997_v12, %v3199_v28  ;;  %v2039_v16 = vadd.f32 %v2038_v15, %v3199_v28 }
 0x156   : > { %2843 = vtanh.f32 %v2037_v11  ;;  %v1999_v17 = vpop.f32.mrf.mxu0  ;;  %v2040_v18 = vpop.f32.mrf.mxu1 }
 0x157   : > { %2845 = vtanh.f32 %v1998_v14 }
 0x158   : > { %2847 = vtanh.f32 %v2039_v16  ;;  %v2000_v19 = vpop.f32.mrf.mxu0  ;;  %v2041_v20 = vpop.f32.mrf.mxu1 }
 0x162   : > { %v2842_v21 = vpop.eup %2841 }
 0x163   : > { %v2844_v22 = vpop.eup %2843 }
 0x164   : > { %v2846_v23 = vpop.eup %2845 }
 0x165   : > { %v2848_v24 = vpop.eup %2847  ;;  %v2441_v25 = vcombine.low %v2842_v21, %v2846_v23 }
 0x166   : > { %v2442_v26 = vcombine.low %v2844_v22, %v2848_v24 }
 0x167   : > { %2473 = vst [vmem:[%s3233_s27 + $0x30] sm:$0x77] %v2441_v25 }
 0x168   : > { %2474 = vst [vmem:[%s3233_s27 + $0x38] sm:$0x77] %v2442_v26 }
 0x172   : > { %v2077_v27 = vpop.f32.mrf.mxu0  ;;  %v2118_v30 = vpop.f32.mrf.mxu1 }
 0x173   : > { %v2078_v29 = vadd.f32 %v2077_v27, %v3199_v28  ;;  %v2119_v31 = vadd.f32 %v2118_v30, %v3199_v28 }
 0x174   : > { %v2079_v33 = vpop.f32.mrf.mxu0  ;;  %v2120_v35 = vpop.f32.mrf.mxu1 }
 0x175   : > { %2849 = vtanh.f32 %v2078_v29  ;;  %v2080_v34 = vadd.f32 %v2079_v33, %v3199_v28  ;;  %v2121_v13 = vadd.f32 %v2120_v35, %v3199_v28 }
 0x176   : > { %2851 = vtanh.f32 %v2119_v31  ;;  %v2081_v36 = vpop.f32.mrf.mxu0  ;;  %v2122_v37 = vpop.f32.mrf.mxu1 }
 0x177   : > { %2853 = vtanh.f32 %v2080_v34 }
 0x178   : > { %2855 = vtanh.f32 %v2121_v13  ;;  %v2082_v38 = vpop.f32.mrf.mxu0  ;;  %v2123_v39 = vpop.f32.mrf.mxu1 }
 0x182   : > { %v2850_v40 = vpop.eup %2849 }
 0x183   : > { %v2852_v41 = vpop.eup %2851 }
 0x184   : > { %v2854_v42 = vpop.eup %2853 }
 0x185   : > { %v2856_v43 = vpop.eup %2855  ;;  %v2443_v44 = vcombine.low %v2850_v40, %v2854_v42 }
 0x186   : > { %v2444_v45 = vcombine.low %v2852_v41, %v2856_v43 }
 0x187   : > { %2475 = vst [vmem:[%s3233_s27 + $0x40] sm:$0x77] %v2443_v44 }
 0x188   : > { %2476 = vst [vmem:[%s3233_s27 + $0x48] sm:$0x77] %v2444_v45 }
 0x192   : > { %v2159_v46 = vpop.f32.mrf.mxu0  ;;  %v2200_v48 = vpop.f32.mrf.mxu1 }
 0x193   : > { %v2160_v47 = vadd.f32 %v2159_v46, %v3199_v28  ;;  %v2201_v49 = vadd.f32 %v2200_v48, %v3199_v28 }
 0x194   : > { %v2161_v32 = vpop.f32.mrf.mxu0  ;;  %v2202_v51 = vpop.f32.mrf.mxu1 }
 0x195   : > { %2857 = vtanh.f32 %v2160_v47  ;;  %v2162_v50 = vadd.f32 %v2161_v32, %v3199_v28  ;;  %v2203_v52 = vadd.f32 %v2202_v51, %v3199_v28 }
 0x196   : > { %2859 = vtanh.f32 %v2201_v49  ;;  %v2163_v53 = vpop.f32.mrf.mxu0  ;;  %v2204_v54 = vpop.f32.mrf.mxu1 }
 0x197   : > { %2861 = vtanh.f32 %v2162_v50 }
 0x198   : > { %2863 = vtanh.f32 %v2203_v52  ;;  %v2164_v55 = vpop.f32.mrf.mxu0  ;;  %v2205_v56 = vpop.f32.mrf.mxu1 }
 0x1a2   : > { %v2858_v57 = vpop.eup %2857 }
 0x1a3   : > { %v2860_v58 = vpop.eup %2859 }
 0x1a4   : > { %v2862_v1 = vpop.eup %2861 }
 0x1a5   : > { %v2864_v59 = vpop.eup %2863  ;;  %v2445_v60 = vcombine.low %v2858_v57, %v2862_v1 }
 0x1a6   : > { %v2446_v61 = vcombine.low %v2860_v58, %v2864_v59 }
 0x1a7   : > { %2477 = vst [vmem:[%s3233_s27 + $0x50] sm:$0x77] %v2445_v60 }
 0x1a8   : > { %2478 = vst [vmem:[%s3233_s27 + $0x58] sm:$0x77] %v2446_v61 }
 0x1b2   : > { %v2241_v62 = vpop.f32.mrf.mxu0  ;;  %v2282_v0 = vpop.f32.mrf.mxu1 }
 0x1b3   : > { %v2242_v63 = vadd.f32 %v2241_v62, %v3199_v28  ;;  %v2283_v2 = vadd.f32 %v2282_v0, %v3199_v28 }
 0x1b4   : > { %v2243_v3 = vpop.f32.mrf.mxu0  ;;  %v2284_v5 = vpop.f32.mrf.mxu1 }
 0x1b5   : > { %2865 = vtanh.f32 %v2242_v63  ;;  %v2244_v4 = vadd.f32 %v2243_v3, %v3199_v28  ;;  %v2285_v6 = vadd.f32 %v2284_v5, %v3199_v28 }
 0x1b6   : > { %2867 = vtanh.f32 %v2283_v2  ;;  %v2245_v7 = vpop.f32.mrf.mxu0  ;;  %v2286_v8 = vpop.f32.mrf.mxu1 }
 0x1b7   : > { %2869 = vtanh.f32 %v2244_v4 }
 0x1b8   : > { %2871 = vtanh.f32 %v2285_v6  ;;  %v2246_v9 = vpop.f32.mrf.mxu0  ;;  %v2287_v10 = vpop.f32.mrf.mxu1 }
 0x1c2   : > { %v2866_v11 = vpop.eup %2865 }
 0x1c3   : > { %v2868_v12 = vpop.eup %2867 }
 0x1c4   : > { %v2870_v14 = vpop.eup %2869 }
 0x1c5   : > { %v2872_v15 = vpop.eup %2871  ;;  %v2447_v16 = vcombine.low %v2866_v11, %v2870_v14 }
 0x1c6   : > { %v2448_v17 = vcombine.low %v2868_v12, %v2872_v15 }
 0x1c7   : > { %2479 = vst [vmem:[%s3233_s27 + $0x60] sm:$0x77] %v2447_v16 }
 0x1c8   : > { %2480 = vst [vmem:[%s3233_s27 + $0x68] sm:$0x77] %v2448_v17 }
 0x1d2   : > { %v2323_v18 = vpop.f32.mrf.mxu0  ;;  %v2364_v20 = vpop.f32.mrf.mxu1 }
 0x1d3   : > { %v2324_v19 = vadd.f32 %v2323_v18, %v3199_v28  ;;  %v2365_v21 = vadd.f32 %v2364_v20, %v3199_v28 }
 0x1d4   : > { %v2325_v22 = vpop.f32.mrf.mxu0  ;;  %v2366_v24 = vpop.f32.mrf.mxu1 }
 0x1d5   : > { %2873 = vtanh.f32 %v2324_v19  ;;  %v2326_v23 = vadd.f32 %v2325_v22, %v3199_v28  ;;  %v2367_v25 = vadd.f32 %v2366_v24, %v3199_v28 }
 0x1d6   : > { %2875 = vtanh.f32 %v2365_v21  ;;  %v2327_v26 = vpop.f32.mrf.mxu0  ;;  %v2368_v27 = vpop.f32.mrf.mxu1 }
 0x1d7   : > { %2877 = vtanh.f32 %v2326_v23 }
 0x1d8   : > { %2879 = vtanh.f32 %v2367_v25  ;;  %v2328_v29 = vpop.f32.mrf.mxu0  ;;  %v2369_v30 = vpop.f32.mrf.mxu1 }
 0x1e2   : > { %v2874_v31 = vpop.eup %2873 }
 0x1e3   : > { %v2876_v33 = vpop.eup %2875 }
 0x1e4   : > { %v2878_v34 = vpop.eup %2877 }
 0x1e5   : > { %v2880_v35 = vpop.eup %2879  ;;  %v2449_v13 = vcombine.low %v2874_v31, %v2878_v34 }
 0x1e6   : > { %v2450_v36 = vcombine.low %v2876_v33, %v2880_v35 }
 0x1e7   : > { %2481 = vst [vmem:[%s3233_s27 + $0x70] sm:$0x77] %v2449_v13 }
 0x1e8   : > { %2482 = vst [vmem:[%s3233_s27 + $0x78] sm:$0x77] %v2450_v36 }
 0x1e9 PF: > { %s13_s12 = sadd.s32 1, %s2888_s12  }
 0x1ea   : > { %p10_p4 = scmp.ge.s32.totalorder %s13_s12, 4  }
 0x1ec   :  { %12 = sbr.rel (!%p10_p4) target bundleno = 1 (0x1), region = 62 }

</bundles_post_ra>
